<compile_context>
chip_gen: v7x
topology: tpu7x:2x2x1
jax: 0.10.0
libtpu: 0.0.40
codegen_flags: <defaults>
</compile_context>

<pallas_src>
import math

import jax
import jax.numpy as jnp
from jax.experimental import pallas as pl
from jax.experimental.pallas import tpu as pltpu

# ----------------------------- configuration ---------------------------------
D_MODEL = 32          # scaled-down from 256 for the small test
NHEAD = 4
DIM_FF = 64           # scaled-down from 1024
NUM_CLS = 6
NUM_LAYERS = 1
EPS = 1e-5
HEAD_DIM = D_MODEL // NHEAD
L_PAD = ((NUM_CLS + 7) // 8) * 8          # queries padded to a full sublane tile (8)
SLAB_COLS = max(3 * D_MODEL, DIM_FF)      # lane width of the packed weight slab
NEG_INF = -1e30


def _round_up(n, m):
    return ((n + m - 1) // m) * m


# --------------------------- packed weight layout ------------------------------
def _build_layout():
    """Row layout of the single packed f32 weight slab (each entry 8-row aligned)."""
    entries = []
    for l in range(NUM_LAYERS):
        p = f"l{l}_"
        entries += [
            (p + "sa_wqkv", D_MODEL, 3 * D_MODEL),   # fused self-attn Q|K|V (scale folded into Q)
            (p + "sa_bqkv", 1, 3 * D_MODEL),
            (p + "sa_wo", D_MODEL, D_MODEL),
            (p + "sa_bo", 1, D_MODEL),
            (p + "ca_wq", D_MODEL, D_MODEL),         # cross-attn Q (scale folded in)
            (p + "ca_bq", 1, D_MODEL),
            (p + "ca_wkv", D_MODEL, 2 * D_MODEL),    # fused cross-attn K|V
            (p + "ca_bkv", 1, 2 * D_MODEL),
            (p + "ca_wo", D_MODEL, D_MODEL),
            (p + "ca_bo", 1, D_MODEL),
            (p + "norms", 6, D_MODEL),               # rows: n1 g, n1 b, n2 g, n2 b, n3 g, n3 b
            (p + "ffn_w1", D_MODEL, DIM_FF),
            (p + "ffn_b1", 1, DIM_FF),
            (p + "ffn_w2", DIM_FF, D_MODEL),
            (p + "ffn_b2", 1, D_MODEL),
        ]
    # rows: final LN gamma, final LN beta, classifier weight row, [classifier bias, 0, ...]
    entries.append(("final", 4, D_MODEL))

    layout, row = {}, 0
    for name, rows, cols in entries:
        layout[name] = (row, rows, cols)
        row += _round_up(rows, 8)
    return layout, row


LAYOUT, SLAB_ROWS = _build_layout()


# ------------------------------ kernel helpers --------------------------------
def _layernorm(x, g, b):
    mu = jnp.mean(x, axis=-1, keepdims=True)
    var = jnp.mean((x - mu) ** 2, axis=-1, keepdims=True)
    return (x - mu) * jax.lax.rsqrt(var + EPS) * g + b


def _attention(q3, k3, v3, key_mask):
    """q3: (Bt, Lq, D); k3, v3: (Bt, Lk, D). 1/sqrt(head_dim) already folded into Wq."""
    ctx = []
    for h in range(NHEAD):                          # static loop; each matmul batched over Bt
        sl = slice(h * HEAD_DIM, (h + 1) * HEAD_DIM)
        qh, kh, vh = q3[:, :, sl], k3[:, :, sl], v3[:, :, sl]
        s = jnp.einsum('bqd,bkd->bqk', qh, kh, preferred_element_type=jnp.float32)
        if key_mask is not None:
            s = s + key_mask                        # mask padded query rows used as keys
        s = s - jnp.max(s, axis=-1, keepdims=True)
        p = jnp.exp(s)
        p = p * pl.reciprocal(jnp.sum(p, axis=-1, keepdims=True), approx=True)
        ctx.append(jnp.einsum('bqk,bkd->bqd', p, vh, preferred_element_type=jnp.float32))
    return jnp.concatenate(ctx, axis=-1)            # (Bt, Lq, D)


# --------------------------------- kernel -------------------------------------
def emotion_decoder_kernel(q0_ref, mem_ref, w_ref, out_ref):
    Bt, S, _ = mem_ref.shape
    M = Bt * L_PAD

    def get(name):
        r0, nr, nc = LAYOUT[name]
        return w_ref[r0:r0 + nr, 0:nc]              # static slice of the packed slab

    x = q0_ref[...]                                 # (M, D)  batch-tiled padded queries
    mem = mem_ref[...].reshape(Bt * S, D_MODEL)     # (Bt*S, D) for the fused KV projection

    # mask for padded query rows when they appear as self-attention *keys*
    key_ids = jax.lax.broadcasted_iota(jnp.int32, (1, L_PAD), 1)
    self_mask = jnp.where(key_ids < NUM_CLS, 0.0, NEG_INF).astype(jnp.float32)

    for l in range(NUM_LAYERS):
        p = f"l{l}_"
        nrm = get(p + "norms")                      # (6, D)

        # ---- self-attention block (post-norm), fused QKV projection ----
        qkv = jnp.dot(x, get(p + "sa_wqkv"),
                      preferred_element_type=jnp.float32) + get(p + "sa_bqkv")
        q3 = qkv[:, 0:D_MODEL].reshape(Bt, L_PAD, D_MODEL)
        k3 = qkv[:, D_MODEL:2 * D_MODEL].reshape(Bt, L_PAD, D_MODEL)
        v3 = qkv[:, 2 * D_MODEL:3 * D_MODEL].reshape(Bt, L_PAD, D_MODEL)
        ctx = _attention(q3, k3, v3, self_mask).reshape(M, D_MODEL)
        attn = jnp.dot(ctx, get(p + "sa_wo"),
                       preferred_element_type=jnp.float32) + get(p + "sa_bo")
        x = _layernorm(x + attn, nrm[0:1], nrm[1:2])

        # ---- cross-attention block, fused KV projection over the memory slab ----
        q = jnp.dot(x, get(p + "ca_wq"),
                    preferred_element_type=jnp.float32) + get(p + "ca_bq")
        kv = jnp.dot(mem, get(p + "ca_wkv"),
                     preferred_element_type=jnp.float32) + get(p + "ca_bkv")
        q3 = q.reshape(Bt, L_PAD, D_MODEL)
        k3 = kv[:, 0:D_MODEL].reshape(Bt, S, D_MODEL)
        v3 = kv[:, D_MODEL:2 * D_MODEL].reshape(Bt, S, D_MODEL)
        ctx = _attention(q3, k3, v3, None).reshape(M, D_MODEL)
        attn = jnp.dot(ctx, get(p + "ca_wo"),
                       preferred_element_type=jnp.float32) + get(p + "ca_bo")
        x = _layernorm(x + attn, nrm[2:3], nrm[3:4])

        # ---- feed-forward block (relu) ----
        h = jnp.maximum(
            jnp.dot(x, get(p + "ffn_w1"),
                    preferred_element_type=jnp.float32) + get(p + "ffn_b1"), 0.0)
        ff = jnp.dot(h, get(p + "ffn_w2"),
                     preferred_element_type=jnp.float32) + get(p + "ffn_b2")
        x = _layernorm(x + ff, nrm[4:5], nrm[5:6])

    # ---- final LayerNorm + classifier: VPU multiply + lane reduce (no 1-column MXU op) ----
    fin = get("final")                              # (4, D)
    x = _layernorm(x, fin[0:1], fin[1:2])
    x3 = x.reshape(Bt, L_PAD, D_MODEL)
    logits = jnp.sum(x3 * fin[2:3], axis=-1) + fin[3:4, 0:1]      # (Bt, L_PAD)
    out_ref[0] = jax.nn.sigmoid(logits)             # dense 2D block store


# -------------------------------- wrapper --------------------------------------
def emotion_decoder_forward(memory, emb, w_slab, *, batch_block=4):
    """memory: (B, S, D_MODEL) f32 -> (B, NUM_CLS) sigmoid probabilities."""
    B, S, D = memory.shape
    assert D == D_MODEL
    assert S % 8 == 0, "memory sequence length must be a multiple of the 8-row sublane tile"

    Bt = max(1, min(batch_block, B))
    G = pl.cdiv(B, Bt)          # >= 2 grid steps keeps both v7x TensorCores busy
    B_pad = G * Bt
    if B_pad != B:
        memory = jnp.concatenate(
            [memory, jnp.zeros((B_pad - B, S, D), memory.dtype)], axis=0)

    # batch-tiled, row-padded emotion queries: row b*L_PAD + l == emb[l] (zeros for pad rows)
    q_pad = jnp.zeros((L_PAD, D_MODEL), jnp.float32).at[:NUM_CLS].set(emb)
    q0 = jnp.tile(q_pad, (Bt, 1))                    # (Bt*L_PAD, D)

    # NOTE: for the full-size model (D=256, FF=1024) on v7x, size Bt against the 64 MiB
    # physical / 32 MiB scoped VMEM (or raise vmem_limit_bytes); trivial at these shapes.
    out = pl.pallas_call(
        emotion_decoder_kernel,
        out_shape=jax.ShapeDtypeStruct((G, Bt, L_PAD), jnp.float32),
        grid_spec=pltpu.PrefetchScalarGridSpec(
            num_scalar_prefetch=0,
            grid=(G,),
            in_specs=[
                pl.BlockSpec((Bt * L_PAD, D_MODEL), lambda i: (0, 0)),   # queries (reused)
                pl.BlockSpec((Bt, S, D_MODEL), lambda i: (i, 0, 0)),     # per-block memory
                pl.BlockSpec((SLAB_ROWS, SLAB_COLS), lambda i: (0, 0)),  # packed weights (reused)
            ],
            out_specs=pl.BlockSpec((1, Bt, L_PAD), lambda i: (i, 0, 0)),
        ),
        compiler_params=pltpu.CompilerParams(
            dimension_semantics=("parallel",),
        ),
    )(q0, memory, w_slab)

    return out.reshape(B_pad, L_PAD)[:B, :NUM_CLS]   # drop batch / query padding


# ---------------------------- parameter creation -------------------------------
def init_params(key):
    keys = iter(jax.random.split(key, 64))

    def mat(fan_in, fan_out):
        bound = 1.0 / math.sqrt(fan_in)
        return jax.random.uniform(next(keys), (fan_in, fan_out), jnp.float32, -bound, bound)

    def vec(fan_in, n):
        bound = 1.0 / math.sqrt(fan_in)
        return jax.random.uniform(next(keys), (1, n), jnp.float32, -bound, bound)

    emb = jax.random.normal(next(keys), (NUM_CLS, D_MODEL), jnp.float32)

    scale = 1.0 / math.sqrt(HEAD_DIM)
    ones_row = jnp.ones((1, D_MODEL), jnp.float32)
    zeros_row = jnp.zeros((1, D_MODEL), jnp.float32)

    params = {}
    for l in range(NUM_LAYERS):
        p = f"l{l}_"
        sa_wqkv = mat(D_MODEL, 3 * D_MODEL)
        sa_bqkv = jnp.zeros((1, 3 * D_MODEL), jnp.float32)
        # fold the 1/sqrt(head_dim) attention scale into the Q projection
        sa_wqkv = sa_wqkv.at[:, :D_MODEL].multiply(scale)
        sa_bqkv = sa_bqkv.at[:, :D_MODEL].multiply(scale)
        params[p + "sa_wqkv"] = sa_wqkv
        params[p + "sa_bqkv"] = sa_bqkv
        params[p + "sa_wo"] = mat(D_MODEL, D_MODEL)
        params[p + "sa_bo"] = jnp.zeros((1, D_MODEL), jnp.float32)
        params[p + "ca_wq"] = mat(D_MODEL, D_MODEL) * scale
        params[p + "ca_bq"] = jnp.zeros((1, D_MODEL), jnp.float32)
        params[p + "ca_wkv"] = mat(D_MODEL, 2 * D_MODEL)
        params[p + "ca_bkv"] = jnp.zeros((1, 2 * D_MODEL), jnp.float32)
        params[p + "ca_wo"] = mat(D_MODEL, D_MODEL)
        params[p + "ca_bo"] = jnp.zeros((1, D_MODEL), jnp.float32)
        params[p + "norms"] = jnp.concatenate(
            [ones_row, zeros_row, ones_row, zeros_row, ones_row, zeros_row], axis=0)
        params[p + "ffn_w1"] = mat(D_MODEL, DIM_FF)
        params[p + "ffn_b1"] = vec(D_MODEL, DIM_FF)
        params[p + "ffn_w2"] = mat(DIM_FF, D_MODEL)
        params[p + "ffn_b2"] = vec(DIM_FF, D_MODEL)

    cls_w = mat(D_MODEL, 1)                  # Linear(d_model, 1) weight, (in, out) layout
    cls_b = vec(D_MODEL, 1)
    final = jnp.zeros((4, D_MODEL), jnp.float32)
    final = final.at[0].set(1.0)             # final LayerNorm gamma (beta stays 0 in row 1)
    final = final.at[2].set(cls_w[:, 0])     # classifier weight row
    final = final.at[3, 0].set(cls_b[0, 0])  # classifier bias
    params["final"] = final
    return emb, params


def pack_weights(params):
    slab = jnp.zeros((SLAB_ROWS, SLAB_COLS), jnp.float32)
    for name, (r0, rows, cols) in LAYOUT.items():
        w = params[name]
        assert w.shape == (rows, cols), (name, w.shape, (rows, cols))
        slab = slab.at[r0:r0 + rows, 0:cols].set(w)
    return slab


# ---------------------------- pure-JAX reference --------------------------------
def reference_forward(memory, emb, params):
    B = memory.shape[0]
    x = jnp.broadcast_to(emb[None], (B, NUM_CLS, D_MODEL)).astype(jnp.float32)

    def ln(v, g, b):
        mu = jnp.mean(v, axis=-1, keepdims=True)
        var = jnp.mean((v - mu) ** 2, axis=-1, keepdims=True)
        return (v - mu) * jax.lax.rsqrt(var + EPS) * g + b

    def attn(q, k, v):                       # scale already folded into Wq
        Lq, Lk = q.shape[1], k.shape[1]
        qh = q.reshape(B, Lq, NHEAD, HEAD_DIM)
        kh = k.reshape(B, Lk, NHEAD, HEAD_DIM)
        vh = v.reshape(B, Lk, NHEAD, HEAD_DIM)
        s = jnp.einsum('bqhd,bkhd->bhqk', qh, kh)
        p = jax.nn.softmax(s, axis=-1)
        return jnp.einsum('bhqk,bkhd->bqhd', p, vh).reshape(B, Lq, D_MODEL)

    for l in range(NUM_LAYERS):
        pfx = f"l{l}_"
        nrm = params[pfx + "norms"]
        qkv = jnp.einsum('bld,de->ble', x, params[pfx + "sa_wqkv"]) + params[pfx + "sa_bqkv"]
        q, k, v = jnp.split(qkv, 3, axis=-1)
        sa = jnp.einsum('bld,de->ble', attn(q, k, v), params[pfx + "sa_wo"]) + params[pfx + "sa_bo"]
        x = ln(x + sa, nrm[0], nrm[1])
        q = jnp.einsum('bld,de->ble', x, params[pfx + "ca_wq"]) + params[pfx + "ca_bq"]
        kv = jnp.einsum('bsd,de->bse', memory, params[pfx + "ca_wkv"]) + params[pfx + "ca_bkv"]
        k, v = jnp.split(kv, 2, axis=-1)
        ca = jnp.einsum('bld,de->ble', attn(q, k, v), params[pfx + "ca_wo"]) + params[pfx + "ca_bo"]
        x = ln(x + ca, nrm[2], nrm[3])
        h = jax.nn.relu(jnp.einsum('bld,de->ble', x, params[pfx + "ffn_w1"]) + params[pfx + "ffn_b1"])
        ff = jnp.einsum('bld,de->ble', h, params[pfx + "ffn_w2"]) + params[pfx + "ffn_b2"]
        x = ln(x + ff, nrm[4], nrm[5])

    fin = params["final"]
    x = ln(x, fin[0], fin[1])
    logits = jnp.einsum('bld,d->bl', x, fin[2]) + fin[3, 0]
    return jax.nn.sigmoid(logits)            # (B, NUM_CLS)


# ----------------------------------- main ---------------------------------------
if __name__ == "__main__":
    key = jax.random.PRNGKey(0)
    k_mem, k_par = jax.random.split(key)

    B, S = 8, 8
    memory = jax.random.normal(k_mem, (B, S, D_MODEL), jnp.float32)   # (B, S, d_model)

    emb, params = init_params(k_par)
    w_slab = pack_weights(params)

    probs = emotion_decoder_forward(memory, emb, w_slab, batch_block=4)
    probs = jax.block_until_ready(probs)

    assert probs.shape == (B, NUM_CLS)
    assert bool(jnp.all(jnp.isfinite(probs)))

    ref = reference_forward(memory, emb, params)
    max_err = float(jnp.max(jnp.abs(probs - ref)))
    assert bool(jnp.allclose(probs, ref, atol=2e-2, rtol=2e-2)), max_err

    print("KERNEL_OK")
</pallas_src>

<mosaic_0001>
module attributes {stable_mosaic.version = 11 : i64} {
  func.func @emotion_decoder_kernel(%arg0: i32, %arg1: memref<32x32xf32, #tpu.memory_space<vmem>>, %arg2: memref<4x8x32xf32, #tpu.memory_space<vmem>>, %arg3: memref<328x96xf32, #tpu.memory_space<vmem>>, %arg4: memref<1x4x8xf32, #tpu.memory_space<vmem>>) attributes {dimension_semantics = [#tpu.dimension_semantics<parallel>], iteration_bounds = array<i64: 2>, scalar_prefetch = 0 : i64, scratch_operands = 0 : i64, tpu.core_type = #tpu.core_type<tc>, window_params = [{pipeline_mode = #tpu.pipeline_mode<synchronous>, transform_indices = @transform_0, window_bounds = array<i64: 32, 32>}, {transform_indices = @transform_1, window_bounds = array<i64: 4, 8, 32>}, {pipeline_mode = #tpu.pipeline_mode<synchronous>, transform_indices = @transform_2, window_bounds = array<i64: 328, 96>}, {transform_indices = @transform_3, window_bounds = array<i64: 1, 4, 8>}]} {
    %c0 = arith.constant 0 : index
    %c0_0 = arith.constant 0 : index
    %0 = vector.load %arg1[%c0, %c0_0] : memref<32x32xf32, #tpu.memory_space<vmem>>, vector<32x32xf32>
    %c0_1 = arith.constant 0 : index
    %c0_2 = arith.constant 0 : index
    %c0_3 = arith.constant 0 : index
    %1 = vector.load %arg2[%c0_1, %c0_2, %c0_3] : memref<4x8x32xf32, #tpu.memory_space<vmem>>, vector<4x8x32xf32>
    %2 = vector.shape_cast %1 : vector<4x8x32xf32> to vector<32x32xf32>
    %3 = tpu.iota {dimensions = array<i32: 1>} : vector<1x8xi32>
    %c6_i32 = arith.constant 6 : i32
    %4 = vector.broadcast %c6_i32 : i32 to vector<1x8xi32>
    %5 = arith.cmpi slt, %3, %4 : vector<1x8xi32>
    %cst = arith.constant 0.000000e+00 : f32
    %cst_4 = arith.constant -1.000000e+30 : f32
    %6 = vector.broadcast %cst : f32 to vector<1x8xf32>
    %7 = vector.broadcast %cst_4 : f32 to vector<1x8xf32>
    %8 = arith.select %5, %6, %7 : vector<1x8xi1>, vector<1x8xf32>
    %c200 = arith.constant 200 : index
    %c0_5 = arith.constant 0 : index
    %9 = vector.load %arg3[%c200, %c0_5] : memref<328x96xf32, #tpu.memory_space<vmem>>, vector<6x32xf32>
    %c0_6 = arith.constant 0 : index
    %c0_7 = arith.constant 0 : index
    %10 = vector.load %arg3[%c0_6, %c0_7] : memref<328x96xf32, #tpu.memory_space<vmem>>, vector<32x96xf32>
    %cst_8 = arith.constant dense<0.000000e+00> : vector<32x96xf32>
    %11 = tpu.matmul %0, %10, %cst_8 {dimension_numbers = #tpu.dot_dimension_numbers<[1], [0], [0], [1], [0, 0, 1, 1], [], []>} : vector<32x32xf32>, vector<32x96xf32>, vector<32x96xf32> -> vector<32x96xf32>
    %c32 = arith.constant 32 : index
    %c0_9 = arith.constant 0 : index
    %12 = vector.load %arg3[%c32, %c0_9] : memref<328x96xf32, #tpu.memory_space<vmem>>, vector<1x96xf32>
    %13 = vector.broadcast %12 : vector<1x96xf32> to vector<32x96xf32>
    %14 = arith.addf %11, %13 : vector<32x96xf32>
    %15 = vector.extract_strided_slice %14 {offsets = [0, 0], sizes = [32, 32], strides = [1, 1]} : vector<32x96xf32> to vector<32x32xf32>
    %16 = vector.shape_cast %15 : vector<32x32xf32> to vector<4x8x32xf32>
    %17 = vector.extract_strided_slice %14 {offsets = [0, 32], sizes = [32, 32], strides = [1, 1]} : vector<32x96xf32> to vector<32x32xf32>
    %18 = vector.shape_cast %17 : vector<32x32xf32> to vector<4x8x32xf32>
    %19 = vector.extract_strided_slice %14 {offsets = [0, 64], sizes = [32, 32], strides = [1, 1]} : vector<32x96xf32> to vector<32x32xf32>
    %20 = vector.shape_cast %19 : vector<32x32xf32> to vector<4x8x32xf32>
    %21 = vector.extract_strided_slice %16 {offsets = [0, 0, 0], sizes = [4, 8, 8], strides = [1, 1, 1]} : vector<4x8x32xf32> to vector<4x8x8xf32>
    %22 = vector.extract_strided_slice %18 {offsets = [0, 0, 0], sizes = [4, 8, 8], strides = [1, 1, 1]} : vector<4x8x32xf32> to vector<4x8x8xf32>
    %23 = vector.extract_strided_slice %20 {offsets = [0, 0, 0], sizes = [4, 8, 8], strides = [1, 1, 1]} : vector<4x8x32xf32> to vector<4x8x8xf32>
    "tpu.trace_start"() <{level = 10 : i32, message = "bqd,bkd->bqk"}> : () -> ()
    %cst_10 = arith.constant dense<0.000000e+00> : vector<4x8x8xf32>
    %24 = tpu.matmul %21, %22, %cst_10 {dimension_numbers = #tpu.dot_dimension_numbers<[2], [2], [1], [1], [0, 0, 0, 1, 1, 1], [0], [0]>} : vector<4x8x8xf32>, vector<4x8x8xf32>, vector<4x8x8xf32> -> vector<4x8x8xf32>
    "tpu.trace_stop"() : () -> ()
    %25 = vector.shape_cast %8 : vector<1x8xf32> to vector<1x1x8xf32>
    %26 = vector.broadcast %25 : vector<1x1x8xf32> to vector<4x8x8xf32>
    %27 = arith.addf %24, %26 : vector<4x8x8xf32>
    %cst_11 = arith.constant dense<0xFF800000> : vector<4x8xf32>
    %28 = vector.multi_reduction <maximumf>, %27, %cst_11 [2] : vector<4x8x8xf32> to vector<4x8xf32>
    %29 = vector.shape_cast %28 : vector<4x8xf32> to vector<4x8x1xf32>
    %30 = vector.broadcast %29 : vector<4x8x1xf32> to vector<4x8x8xf32>
    %31 = arith.subf %27, %30 : vector<4x8x8xf32>
    %32 = math.exp %31 : vector<4x8x8xf32>
    %cst_12 = arith.constant dense<0.000000e+00> : vector<4x8xf32>
    %33 = vector.multi_reduction <add>, %32, %cst_12 [2] : vector<4x8x8xf32> to vector<4x8xf32>
    %34 = vector.shape_cast %33 : vector<4x8xf32> to vector<4x8x1xf32>
    %35 = tpu.reciprocal %34 {approx = true} : vector<4x8x1xf32> -> vector<4x8x1xf32>
    %36 = vector.broadcast %35 : vector<4x8x1xf32> to vector<4x8x8xf32>
    %37 = arith.mulf %32, %36 : vector<4x8x8xf32>
    "tpu.trace_start"() <{level = 10 : i32, message = "bqk,bkd->bqd"}> : () -> ()
    %cst_13 = arith.constant dense<0.000000e+00> : vector<4x8x8xf32>
    %38 = tpu.matmul %37, %23, %cst_13 {dimension_numbers = #tpu.dot_dimension_numbers<[2], [1], [1], [2], [0, 0, 0, 1, 1, 2], [0], [0]>} : vector<4x8x8xf32>, vector<4x8x8xf32>, vector<4x8x8xf32> -> vector<4x8x8xf32>
    "tpu.trace_stop"() : () -> ()
    %39 = vector.extract_strided_slice %16 {offsets = [0, 0, 8], sizes = [4, 8, 8], strides = [1, 1, 1]} : vector<4x8x32xf32> to vector<4x8x8xf32>
    %40 = vector.extract_strided_slice %18 {offsets = [0, 0, 8], sizes = [4, 8, 8], strides = [1, 1, 1]} : vector<4x8x32xf32> to vector<4x8x8xf32>
    %41 = vector.extract_strided_slice %20 {offsets = [0, 0, 8], sizes = [4, 8, 8], strides = [1, 1, 1]} : vector<4x8x32xf32> to vector<4x8x8xf32>
    "tpu.trace_start"() <{level = 10 : i32, message = "bqd,bkd->bqk"}> : () -> ()
    %cst_14 = arith.constant dense<0.000000e+00> : vector<4x8x8xf32>
    %42 = tpu.matmul %39, %40, %cst_14 {dimension_numbers = #tpu.dot_dimension_numbers<[2], [2], [1], [1], [0, 0, 0, 1, 1, 1], [0], [0]>} : vector<4x8x8xf32>, vector<4x8x8xf32>, vector<4x8x8xf32> -> vector<4x8x8xf32>
    "tpu.trace_stop"() : () -> ()
    %43 = vector.shape_cast %8 : vector<1x8xf32> to vector<1x1x8xf32>
    %44 = vector.broadcast %43 : vector<1x1x8xf32> to vector<4x8x8xf32>
    %45 = arith.addf %42, %44 : vector<4x8x8xf32>
    %cst_15 = arith.constant dense<0xFF800000> : vector<4x8xf32>
    %46 = vector.multi_reduction <maximumf>, %45, %cst_15 [2] : vector<4x8x8xf32> to vector<4x8xf32>
    %47 = vector.shape_cast %46 : vector<4x8xf32> to vector<4x8x1xf32>
    %48 = vector.broadcast %47 : vector<4x8x1xf32> to vector<4x8x8xf32>
    %49 = arith.subf %45, %48 : vector<4x8x8xf32>
    %50 = math.exp %49 : vector<4x8x8xf32>
    %cst_16 = arith.constant dense<0.000000e+00> : vector<4x8xf32>
    %51 = vector.multi_reduction <add>, %50, %cst_16 [2] : vector<4x8x8xf32> to vector<4x8xf32>
    %52 = vector.shape_cast %51 : vector<4x8xf32> to vector<4x8x1xf32>
    %53 = tpu.reciprocal %52 {approx = true} : vector<4x8x1xf32> -> vector<4x8x1xf32>
    %54 = vector.broadcast %53 : vector<4x8x1xf32> to vector<4x8x8xf32>
    %55 = arith.mulf %50, %54 : vector<4x8x8xf32>
    "tpu.trace_start"() <{level = 10 : i32, message = "bqk,bkd->bqd"}> : () -> ()
    %cst_17 = arith.constant dense<0.000000e+00> : vector<4x8x8xf32>
    %56 = tpu.matmul %55, %41, %cst_17 {dimension_numbers = #tpu.dot_dimension_numbers<[2], [1], [1], [2], [0, 0, 0, 1, 1, 2], [0], [0]>} : vector<4x8x8xf32>, vector<4x8x8xf32>, vector<4x8x8xf32> -> vector<4x8x8xf32>
    "tpu.trace_stop"() : () -> ()
    %57 = vector.extract_strided_slice %16 {offsets = [0, 0, 16], sizes = [4, 8, 8], strides = [1, 1, 1]} : vector<4x8x32xf32> to vector<4x8x8xf32>
    %58 = vector.extract_strided_slice %18 {offsets = [0, 0, 16], sizes = [4, 8, 8], strides = [1, 1, 1]} : vector<4x8x32xf32> to vector<4x8x8xf32>
    %59 = vector.extract_strided_slice %20 {offsets = [0, 0, 16], sizes = [4, 8, 8], strides = [1, 1, 1]} : vector<4x8x32xf32> to vector<4x8x8xf32>
    "tpu.trace_start"() <{level = 10 : i32, message = "bqd,bkd->bqk"}> : () -> ()
    %cst_18 = arith.constant dense<0.000000e+00> : vector<4x8x8xf32>
    %60 = tpu.matmul %57, %58, %cst_18 {dimension_numbers = #tpu.dot_dimension_numbers<[2], [2], [1], [1], [0, 0, 0, 1, 1, 1], [0], [0]>} : vector<4x8x8xf32>, vector<4x8x8xf32>, vector<4x8x8xf32> -> vector<4x8x8xf32>
    "tpu.trace_stop"() : () -> ()
    %61 = vector.shape_cast %8 : vector<1x8xf32> to vector<1x1x8xf32>
    %62 = vector.broadcast %61 : vector<1x1x8xf32> to vector<4x8x8xf32>
    %63 = arith.addf %60, %62 : vector<4x8x8xf32>
    %cst_19 = arith.constant dense<0xFF800000> : vector<4x8xf32>
    %64 = vector.multi_reduction <maximumf>, %63, %cst_19 [2] : vector<4x8x8xf32> to vector<4x8xf32>
    %65 = vector.shape_cast %64 : vector<4x8xf32> to vector<4x8x1xf32>
    %66 = vector.broadcast %65 : vector<4x8x1xf32> to vector<4x8x8xf32>
    %67 = arith.subf %63, %66 : vector<4x8x8xf32>
    %68 = math.exp %67 : vector<4x8x8xf32>
    %cst_20 = arith.constant dense<0.000000e+00> : vector<4x8xf32>
    %69 = vector.multi_reduction <add>, %68, %cst_20 [2] : vector<4x8x8xf32> to vector<4x8xf32>
    %70 = vector.shape_cast %69 : vector<4x8xf32> to vector<4x8x1xf32>
    %71 = tpu.reciprocal %70 {approx = true} : vector<4x8x1xf32> -> vector<4x8x1xf32>
    %72 = vector.broadcast %71 : vector<4x8x1xf32> to vector<4x8x8xf32>
    %73 = arith.mulf %68, %72 : vector<4x8x8xf32>
    "tpu.trace_start"() <{level = 10 : i32, message = "bqk,bkd->bqd"}> : () -> ()
    %cst_21 = arith.constant dense<0.000000e+00> : vector<4x8x8xf32>
    %74 = tpu.matmul %73, %59, %cst_21 {dimension_numbers = #tpu.dot_dimension_numbers<[2], [1], [1], [2], [0, 0, 0, 1, 1, 2], [0], [0]>} : vector<4x8x8xf32>, vector<4x8x8xf32>, vector<4x8x8xf32> -> vector<4x8x8xf32>
    "tpu.trace_stop"() : () -> ()
    %75 = vector.extract_strided_slice %16 {offsets = [0, 0, 24], sizes = [4, 8, 8], strides = [1, 1, 1]} : vector<4x8x32xf32> to vector<4x8x8xf32>
    %76 = vector.extract_strided_slice %18 {offsets = [0, 0, 24], sizes = [4, 8, 8], strides = [1, 1, 1]} : vector<4x8x32xf32> to vector<4x8x8xf32>
    %77 = vector.extract_strided_slice %20 {offsets = [0, 0, 24], sizes = [4, 8, 8], strides = [1, 1, 1]} : vector<4x8x32xf32> to vector<4x8x8xf32>
    "tpu.trace_start"() <{level = 10 : i32, message = "bqd,bkd->bqk"}> : () -> ()
    %cst_22 = arith.constant dense<0.000000e+00> : vector<4x8x8xf32>
    %78 = tpu.matmul %75, %76, %cst_22 {dimension_numbers = #tpu.dot_dimension_numbers<[2], [2], [1], [1], [0, 0, 0, 1, 1, 1], [0], [0]>} : vector<4x8x8xf32>, vector<4x8x8xf32>, vector<4x8x8xf32> -> vector<4x8x8xf32>
    "tpu.trace_stop"() : () -> ()
    %79 = vector.shape_cast %8 : vector<1x8xf32> to vector<1x1x8xf32>
    %80 = vector.broadcast %79 : vector<1x1x8xf32> to vector<4x8x8xf32>
    %81 = arith.addf %78, %80 : vector<4x8x8xf32>
    %cst_23 = arith.constant dense<0xFF800000> : vector<4x8xf32>
    %82 = vector.multi_reduction <maximumf>, %81, %cst_23 [2] : vector<4x8x8xf32> to vector<4x8xf32>
    %83 = vector.shape_cast %82 : vector<4x8xf32> to vector<4x8x1xf32>
    %84 = vector.broadcast %83 : vector<4x8x1xf32> to vector<4x8x8xf32>
    %85 = arith.subf %81, %84 : vector<4x8x8xf32>
    %86 = math.exp %85 : vector<4x8x8xf32>
    %cst_24 = arith.constant dense<0.000000e+00> : vector<4x8xf32>
    %87 = vector.multi_reduction <add>, %86, %cst_24 [2] : vector<4x8x8xf32> to vector<4x8xf32>
    %88 = vector.shape_cast %87 : vector<4x8xf32> to vector<4x8x1xf32>
    %89 = tpu.reciprocal %88 {approx = true} : vector<4x8x1xf32> -> vector<4x8x1xf32>
    %90 = vector.broadcast %89 : vector<4x8x1xf32> to vector<4x8x8xf32>
    %91 = arith.mulf %86, %90 : vector<4x8x8xf32>
    "tpu.trace_start"() <{level = 10 : i32, message = "bqk,bkd->bqd"}> : () -> ()
    %cst_25 = arith.constant dense<0.000000e+00> : vector<4x8x8xf32>
    %92 = tpu.matmul %91, %77, %cst_25 {dimension_numbers = #tpu.dot_dimension_numbers<[2], [1], [1], [2], [0, 0, 0, 1, 1, 2], [0], [0]>} : vector<4x8x8xf32>, vector<4x8x8xf32>, vector<4x8x8xf32> -> vector<4x8x8xf32>
    "tpu.trace_stop"() : () -> ()
    %93 = tpu.concatenate %38, %56, %74, %92 in 2 : vector<4x8x8xf32>, vector<4x8x8xf32>, vector<4x8x8xf32>, vector<4x8x8xf32> -> vector<4x8x32xf32>
    %94 = vector.shape_cast %93 : vector<4x8x32xf32> to vector<32x32xf32>
    %c40 = arith.constant 40 : index
    %c0_26 = arith.constant 0 : index
    %95 = vector.load %arg3[%c40, %c0_26] : memref<328x96xf32, #tpu.memory_space<vmem>>, vector<32x32xf32>
    %cst_27 = arith.constant dense<0.000000e+00> : vector<32x32xf32>
    %96 = tpu.matmul %94, %95, %cst_27 {dimension_numbers = #tpu.dot_dimension_numbers<[1], [0], [0], [1], [0, 0, 1, 1], [], []>} : vector<32x32xf32>, vector<32x32xf32>, vector<32x32xf32> -> vector<32x32xf32>
    %c72 = arith.constant 72 : index
    %c0_28 = arith.constant 0 : index
    %97 = vector.load %arg3[%c72, %c0_28] : memref<328x96xf32, #tpu.memory_space<vmem>>, vector<1x32xf32>
    %98 = vector.broadcast %97 : vector<1x32xf32> to vector<32x32xf32>
    %99 = arith.addf %96, %98 : vector<32x32xf32>
    %100 = arith.addf %0, %99 : vector<32x32xf32>
    %101 = vector.extract_strided_slice %9 {offsets = [0, 0], sizes = [1, 32], strides = [1, 1]} : vector<6x32xf32> to vector<1x32xf32>
    %102 = vector.extract_strided_slice %9 {offsets = [1, 0], sizes = [1, 32], strides = [1, 1]} : vector<6x32xf32> to vector<1x32xf32>
    %cst_29 = arith.constant dense<0.000000e+00> : vector<32xf32>
    %103 = vector.multi_reduction <add>, %100, %cst_29 [1] : vector<32x32xf32> to vector<32xf32>
    %104 = vector.shape_cast %103 : vector<32xf32> to vector<32x1xf32>
    %cst_30 = arith.constant 3.200000e+01 : f32
    %105 = vector.broadcast %cst_30 : f32 to vector<32x1xf32>
    %106 = arith.divf %104, %105 : vector<32x1xf32>
    %107 = vector.broadcast %106 : vector<32x1xf32> to vector<32x32xf32>
    %108 = arith.subf %100, %107 : vector<32x32xf32>
    %109 = arith.mulf %108, %108 : vector<32x32xf32>
    %cst_31 = arith.constant dense<0.000000e+00> : vector<32xf32>
    %110 = vector.multi_reduction <add>, %109, %cst_31 [1] : vector<32x32xf32> to vector<32xf32>
    %111 = vector.shape_cast %110 : vector<32xf32> to vector<32x1xf32>
    %cst_32 = arith.constant 3.200000e+01 : f32
    %112 = vector.broadcast %cst_32 : f32 to vector<32x1xf32>
    %113 = arith.divf %111, %112 : vector<32x1xf32>
    %114 = vector.broadcast %106 : vector<32x1xf32> to vector<32x32xf32>
    %115 = arith.subf %100, %114 : vector<32x32xf32>
    %cst_33 = arith.constant 9.99999974E-6 : f32
    %116 = vector.broadcast %cst_33 : f32 to vector<32x1xf32>
    %117 = arith.addf %113, %116 : vector<32x1xf32>
    %118 = math.rsqrt %117 : vector<32x1xf32>
    %119 = vector.broadcast %118 : vector<32x1xf32> to vector<32x32xf32>
    %120 = arith.mulf %115, %119 : vector<32x32xf32>
    %121 = vector.broadcast %101 : vector<1x32xf32> to vector<32x32xf32>
    %122 = arith.mulf %120, %121 : vector<32x32xf32>
    %123 = vector.broadcast %102 : vector<1x32xf32> to vector<32x32xf32>
    %124 = arith.addf %122, %123 : vector<32x32xf32>
    %c80 = arith.constant 80 : index
    %c0_34 = arith.constant 0 : index
    %125 = vector.load %arg3[%c80, %c0_34] : memref<328x96xf32, #tpu.memory_space<vmem>>, vector<32x32xf32>
    %cst_35 = arith.constant dense<0.000000e+00> : vector<32x32xf32>
    %126 = tpu.matmul %124, %125, %cst_35 {dimension_numbers = #tpu.dot_dimension_numbers<[1], [0], [0], [1], [0, 0, 1, 1], [], []>} : vector<32x32xf32>, vector<32x32xf32>, vector<32x32xf32> -> vector<32x32xf32>
    %c112 = arith.constant 112 : index
    %c0_36 = arith.constant 0 : index
    %127 = vector.load %arg3[%c112, %c0_36] : memref<328x96xf32, #tpu.memory_space<vmem>>, vector<1x32xf32>
    %128 = vector.broadcast %127 : vector<1x32xf32> to vector<32x32xf32>
    %129 = arith.addf %126, %128 : vector<32x32xf32>
    %c120 = arith.constant 120 : index
    %c0_37 = arith.constant 0 : index
    %130 = vector.load %arg3[%c120, %c0_37] : memref<328x96xf32, #tpu.memory_space<vmem>>, vector<32x64xf32>
    %cst_38 = arith.constant dense<0.000000e+00> : vector<32x64xf32>
    %131 = tpu.matmul %2, %130, %cst_38 {dimension_numbers = #tpu.dot_dimension_numbers<[1], [0], [0], [1], [0, 0, 1, 1], [], []>} : vector<32x32xf32>, vector<32x64xf32>, vector<32x64xf32> -> vector<32x64xf32>
    %c152 = arith.constant 152 : index
    %c0_39 = arith.constant 0 : index
    %132 = vector.load %arg3[%c152, %c0_39] : memref<328x96xf32, #tpu.memory_space<vmem>>, vector<1x64xf32>
    %133 = vector.broadcast %132 : vector<1x64xf32> to vector<32x64xf32>
    %134 = arith.addf %131, %133 : vector<32x64xf32>
    %135 = vector.shape_cast %129 : vector<32x32xf32> to vector<4x8x32xf32>
    %136 = vector.extract_strided_slice %134 {offsets = [0, 0], sizes = [32, 32], strides = [1, 1]} : vector<32x64xf32> to vector<32x32xf32>
    %137 = vector.shape_cast %136 : vector<32x32xf32> to vector<4x8x32xf32>
    %138 = vector.extract_strided_slice %134 {offsets = [0, 32], sizes = [32, 32], strides = [1, 1]} : vector<32x64xf32> to vector<32x32xf32>
    %139 = vector.shape_cast %138 : vector<32x32xf32> to vector<4x8x32xf32>
    %140 = vector.extract_strided_slice %135 {offsets = [0, 0, 0], sizes = [4, 8, 8], strides = [1, 1, 1]} : vector<4x8x32xf32> to vector<4x8x8xf32>
    %141 = vector.extract_strided_slice %137 {offsets = [0, 0, 0], sizes = [4, 8, 8], strides = [1, 1, 1]} : vector<4x8x32xf32> to vector<4x8x8xf32>
    %142 = vector.extract_strided_slice %139 {offsets = [0, 0, 0], sizes = [4, 8, 8], strides = [1, 1, 1]} : vector<4x8x32xf32> to vector<4x8x8xf32>
    "tpu.trace_start"() <{level = 10 : i32, message = "bqd,bkd->bqk"}> : () -> ()
    %cst_40 = arith.constant dense<0.000000e+00> : vector<4x8x8xf32>
    %143 = tpu.matmul %140, %141, %cst_40 {dimension_numbers = #tpu.dot_dimension_numbers<[2], [2], [1], [1], [0, 0, 0, 1, 1, 1], [0], [0]>} : vector<4x8x8xf32>, vector<4x8x8xf32>, vector<4x8x8xf32> -> vector<4x8x8xf32>
    "tpu.trace_stop"() : () -> ()
    %cst_41 = arith.constant dense<0xFF800000> : vector<4x8xf32>
    %144 = vector.multi_reduction <maximumf>, %143, %cst_41 [2] : vector<4x8x8xf32> to vector<4x8xf32>
    %145 = vector.shape_cast %144 : vector<4x8xf32> to vector<4x8x1xf32>
    %146 = vector.broadcast %145 : vector<4x8x1xf32> to vector<4x8x8xf32>
    %147 = arith.subf %143, %146 : vector<4x8x8xf32>
    %148 = math.exp %147 : vector<4x8x8xf32>
    %cst_42 = arith.constant dense<0.000000e+00> : vector<4x8xf32>
    %149 = vector.multi_reduction <add>, %148, %cst_42 [2] : vector<4x8x8xf32> to vector<4x8xf32>
    %150 = vector.shape_cast %149 : vector<4x8xf32> to vector<4x8x1xf32>
    %151 = tpu.reciprocal %150 {approx = true} : vector<4x8x1xf32> -> vector<4x8x1xf32>
    %152 = vector.broadcast %151 : vector<4x8x1xf32> to vector<4x8x8xf32>
    %153 = arith.mulf %148, %152 : vector<4x8x8xf32>
    "tpu.trace_start"() <{level = 10 : i32, message = "bqk,bkd->bqd"}> : () -> ()
    %cst_43 = arith.constant dense<0.000000e+00> : vector<4x8x8xf32>
    %154 = tpu.matmul %153, %142, %cst_43 {dimension_numbers = #tpu.dot_dimension_numbers<[2], [1], [1], [2], [0, 0, 0, 1, 1, 2], [0], [0]>} : vector<4x8x8xf32>, vector<4x8x8xf32>, vector<4x8x8xf32> -> vector<4x8x8xf32>
    "tpu.trace_stop"() : () -> ()
    %155 = vector.extract_strided_slice %135 {offsets = [0, 0, 8], sizes = [4, 8, 8], strides = [1, 1, 1]} : vector<4x8x32xf32> to vector<4x8x8xf32>
    %156 = vector.extract_strided_slice %137 {offsets = [0, 0, 8], sizes = [4, 8, 8], strides = [1, 1, 1]} : vector<4x8x32xf32> to vector<4x8x8xf32>
    %157 = vector.extract_strided_slice %139 {offsets = [0, 0, 8], sizes = [4, 8, 8], strides = [1, 1, 1]} : vector<4x8x32xf32> to vector<4x8x8xf32>
    "tpu.trace_start"() <{level = 10 : i32, message = "bqd,bkd->bqk"}> : () -> ()
    %cst_44 = arith.constant dense<0.000000e+00> : vector<4x8x8xf32>
    %158 = tpu.matmul %155, %156, %cst_44 {dimension_numbers = #tpu.dot_dimension_numbers<[2], [2], [1], [1], [0, 0, 0, 1, 1, 1], [0], [0]>} : vector<4x8x8xf32>, vector<4x8x8xf32>, vector<4x8x8xf32> -> vector<4x8x8xf32>
    "tpu.trace_stop"() : () -> ()
    %cst_45 = arith.constant dense<0xFF800000> : vector<4x8xf32>
    %159 = vector.multi_reduction <maximumf>, %158, %cst_45 [2] : vector<4x8x8xf32> to vector<4x8xf32>
    %160 = vector.shape_cast %159 : vector<4x8xf32> to vector<4x8x1xf32>
    %161 = vector.broadcast %160 : vector<4x8x1xf32> to vector<4x8x8xf32>
    %162 = arith.subf %158, %161 : vector<4x8x8xf32>
    %163 = math.exp %162 : vector<4x8x8xf32>
    %cst_46 = arith.constant dense<0.000000e+00> : vector<4x8xf32>
    %164 = vector.multi_reduction <add>, %163, %cst_46 [2] : vector<4x8x8xf32> to vector<4x8xf32>
    %165 = vector.shape_cast %164 : vector<4x8xf32> to vector<4x8x1xf32>
    %166 = tpu.reciprocal %165 {approx = true} : vector<4x8x1xf32> -> vector<4x8x1xf32>
    %167 = vector.broadcast %166 : vector<4x8x1xf32> to vector<4x8x8xf32>
    %168 = arith.mulf %163, %167 : vector<4x8x8xf32>
    "tpu.trace_start"() <{level = 10 : i32, message = "bqk,bkd->bqd"}> : () -> ()
    %cst_47 = arith.constant dense<0.000000e+00> : vector<4x8x8xf32>
    %169 = tpu.matmul %168, %157, %cst_47 {dimension_numbers = #tpu.dot_dimension_numbers<[2], [1], [1], [2], [0, 0, 0, 1, 1, 2], [0], [0]>} : vector<4x8x8xf32>, vector<4x8x8xf32>, vector<4x8x8xf32> -> vector<4x8x8xf32>
    "tpu.trace_stop"() : () -> ()
    %170 = vector.extract_strided_slice %135 {offsets = [0, 0, 16], sizes = [4, 8, 8], strides = [1, 1, 1]} : vector<4x8x32xf32> to vector<4x8x8xf32>
    %171 = vector.extract_strided_slice %137 {offsets = [0, 0, 16], sizes = [4, 8, 8], strides = [1, 1, 1]} : vector<4x8x32xf32> to vector<4x8x8xf32>
    %172 = vector.extract_strided_slice %139 {offsets = [0, 0, 16], sizes = [4, 8, 8], strides = [1, 1, 1]} : vector<4x8x32xf32> to vector<4x8x8xf32>
    "tpu.trace_start"() <{level = 10 : i32, message = "bqd,bkd->bqk"}> : () -> ()
    %cst_48 = arith.constant dense<0.000000e+00> : vector<4x8x8xf32>
    %173 = tpu.matmul %170, %171, %cst_48 {dimension_numbers = #tpu.dot_dimension_numbers<[2], [2], [1], [1], [0, 0, 0, 1, 1, 1], [0], [0]>} : vector<4x8x8xf32>, vector<4x8x8xf32>, vector<4x8x8xf32> -> vector<4x8x8xf32>
    "tpu.trace_stop"() : () -> ()
    %cst_49 = arith.constant dense<0xFF800000> : vector<4x8xf32>
    %174 = vector.multi_reduction <maximumf>, %173, %cst_49 [2] : vector<4x8x8xf32> to vector<4x8xf32>
    %175 = vector.shape_cast %174 : vector<4x8xf32> to vector<4x8x1xf32>
    %176 = vector.broadcast %175 : vector<4x8x1xf32> to vector<4x8x8xf32>
    %177 = arith.subf %173, %176 : vector<4x8x8xf32>
    %178 = math.exp %177 : vector<4x8x8xf32>
    %cst_50 = arith.constant dense<0.000000e+00> : vector<4x8xf32>
    %179 = vector.multi_reduction <add>, %178, %cst_50 [2] : vector<4x8x8xf32> to vector<4x8xf32>
    %180 = vector.shape_cast %179 : vector<4x8xf32> to vector<4x8x1xf32>
    %181 = tpu.reciprocal %180 {approx = true} : vector<4x8x1xf32> -> vector<4x8x1xf32>
    %182 = vector.broadcast %181 : vector<4x8x1xf32> to vector<4x8x8xf32>
    %183 = arith.mulf %178, %182 : vector<4x8x8xf32>
    "tpu.trace_start"() <{level = 10 : i32, message = "bqk,bkd->bqd"}> : () -> ()
    %cst_51 = arith.constant dense<0.000000e+00> : vector<4x8x8xf32>
    %184 = tpu.matmul %183, %172, %cst_51 {dimension_numbers = #tpu.dot_dimension_numbers<[2], [1], [1], [2], [0, 0, 0, 1, 1, 2], [0], [0]>} : vector<4x8x8xf32>, vector<4x8x8xf32>, vector<4x8x8xf32> -> vector<4x8x8xf32>
    "tpu.trace_stop"() : () -> ()
    %185 = vector.extract_strided_slice %135 {offsets = [0, 0, 24], sizes = [4, 8, 8], strides = [1, 1, 1]} : vector<4x8x32xf32> to vector<4x8x8xf32>
    %186 = vector.extract_strided_slice %137 {offsets = [0, 0, 24], sizes = [4, 8, 8], strides = [1, 1, 1]} : vector<4x8x32xf32> to vector<4x8x8xf32>
    %187 = vector.extract_strided_slice %139 {offsets = [0, 0, 24], sizes = [4, 8, 8], strides = [1, 1, 1]} : vector<4x8x32xf32> to vector<4x8x8xf32>
    "tpu.trace_start"() <{level = 10 : i32, message = "bqd,bkd->bqk"}> : () -> ()
    %cst_52 = arith.constant dense<0.000000e+00> : vector<4x8x8xf32>
    %188 = tpu.matmul %185, %186, %cst_52 {dimension_numbers = #tpu.dot_dimension_numbers<[2], [2], [1], [1], [0, 0, 0, 1, 1, 1], [0], [0]>} : vector<4x8x8xf32>, vector<4x8x8xf32>, vector<4x8x8xf32> -> vector<4x8x8xf32>
    "tpu.trace_stop"() : () -> ()
    %cst_53 = arith.constant dense<0xFF800000> : vector<4x8xf32>
    %189 = vector.multi_reduction <maximumf>, %188, %cst_53 [2] : vector<4x8x8xf32> to vector<4x8xf32>
    %190 = vector.shape_cast %189 : vector<4x8xf32> to vector<4x8x1xf32>
    %191 = vector.broadcast %190 : vector<4x8x1xf32> to vector<4x8x8xf32>
    %192 = arith.subf %188, %191 : vector<4x8x8xf32>
    %193 = math.exp %192 : vector<4x8x8xf32>
    %cst_54 = arith.constant dense<0.000000e+00> : vector<4x8xf32>
    %194 = vector.multi_reduction <add>, %193, %cst_54 [2] : vector<4x8x8xf32> to vector<4x8xf32>
    %195 = vector.shape_cast %194 : vector<4x8xf32> to vector<4x8x1xf32>
    %196 = tpu.reciprocal %195 {approx = true} : vector<4x8x1xf32> -> vector<4x8x1xf32>
    %197 = vector.broadcast %196 : vector<4x8x1xf32> to vector<4x8x8xf32>
    %198 = arith.mulf %193, %197 : vector<4x8x8xf32>
    "tpu.trace_start"() <{level = 10 : i32, message = "bqk,bkd->bqd"}> : () -> ()
    %cst_55 = arith.constant dense<0.000000e+00> : vector<4x8x8xf32>
    %199 = tpu.matmul %198, %187, %cst_55 {dimension_numbers = #tpu.dot_dimension_numbers<[2], [1], [1], [2], [0, 0, 0, 1, 1, 2], [0], [0]>} : vector<4x8x8xf32>, vector<4x8x8xf32>, vector<4x8x8xf32> -> vector<4x8x8xf32>
    "tpu.trace_stop"() : () -> ()
    %200 = tpu.concatenate %154, %169, %184, %199 in 2 : vector<4x8x8xf32>, vector<4x8x8xf32>, vector<4x8x8xf32>, vector<4x8x8xf32> -> vector<4x8x32xf32>
    %201 = vector.shape_cast %200 : vector<4x8x32xf32> to vector<32x32xf32>
    %c160 = arith.constant 160 : index
    %c0_56 = arith.constant 0 : index
    %202 = vector.load %arg3[%c160, %c0_56] : memref<328x96xf32, #tpu.memory_space<vmem>>, vector<32x32xf32>
    %cst_57 = arith.constant dense<0.000000e+00> : vector<32x32xf32>
    %203 = tpu.matmul %201, %202, %cst_57 {dimension_numbers = #tpu.dot_dimension_numbers<[1], [0], [0], [1], [0, 0, 1, 1], [], []>} : vector<32x32xf32>, vector<32x32xf32>, vector<32x32xf32> -> vector<32x32xf32>
    %c192 = arith.constant 192 : index
    %c0_58 = arith.constant 0 : index
    %204 = vector.load %arg3[%c192, %c0_58] : memref<328x96xf32, #tpu.memory_space<vmem>>, vector<1x32xf32>
    %205 = vector.broadcast %204 : vector<1x32xf32> to vector<32x32xf32>
    %206 = arith.addf %203, %205 : vector<32x32xf32>
    %207 = arith.addf %124, %206 : vector<32x32xf32>
    %208 = vector.extract_strided_slice %9 {offsets = [2, 0], sizes = [1, 32], strides = [1, 1]} : vector<6x32xf32> to vector<1x32xf32>
    %209 = vector.extract_strided_slice %9 {offsets = [3, 0], sizes = [1, 32], strides = [1, 1]} : vector<6x32xf32> to vector<1x32xf32>
    %cst_59 = arith.constant dense<0.000000e+00> : vector<32xf32>
    %210 = vector.multi_reduction <add>, %207, %cst_59 [1] : vector<32x32xf32> to vector<32xf32>
    %211 = vector.shape_cast %210 : vector<32xf32> to vector<32x1xf32>
    %cst_60 = arith.constant 3.200000e+01 : f32
    %212 = vector.broadcast %cst_60 : f32 to vector<32x1xf32>
    %213 = arith.divf %211, %212 : vector<32x1xf32>
    %214 = vector.broadcast %213 : vector<32x1xf32> to vector<32x32xf32>
    %215 = arith.subf %207, %214 : vector<32x32xf32>
    %216 = arith.mulf %215, %215 : vector<32x32xf32>
    %cst_61 = arith.constant dense<0.000000e+00> : vector<32xf32>
    %217 = vector.multi_reduction <add>, %216, %cst_61 [1] : vector<32x32xf32> to vector<32xf32>
    %218 = vector.shape_cast %217 : vector<32xf32> to vector<32x1xf32>
    %cst_62 = arith.constant 3.200000e+01 : f32
    %219 = vector.broadcast %cst_62 : f32 to vector<32x1xf32>
    %220 = arith.divf %218, %219 : vector<32x1xf32>
    %221 = vector.broadcast %213 : vector<32x1xf32> to vector<32x32xf32>
    %222 = arith.subf %207, %221 : vector<32x32xf32>
    %cst_63 = arith.constant 9.99999974E-6 : f32
    %223 = vector.broadcast %cst_63 : f32 to vector<32x1xf32>
    %224 = arith.addf %220, %223 : vector<32x1xf32>
    %225 = math.rsqrt %224 : vector<32x1xf32>
    %226 = vector.broadcast %225 : vector<32x1xf32> to vector<32x32xf32>
    %227 = arith.mulf %222, %226 : vector<32x32xf32>
    %228 = vector.broadcast %208 : vector<1x32xf32> to vector<32x32xf32>
    %229 = arith.mulf %227, %228 : vector<32x32xf32>
    %230 = vector.broadcast %209 : vector<1x32xf32> to vector<32x32xf32>
    %231 = arith.addf %229, %230 : vector<32x32xf32>
    %c208 = arith.constant 208 : index
    %c0_64 = arith.constant 0 : index
    %232 = vector.load %arg3[%c208, %c0_64] : memref<328x96xf32, #tpu.memory_space<vmem>>, vector<32x64xf32>
    %cst_65 = arith.constant dense<0.000000e+00> : vector<32x64xf32>
    %233 = tpu.matmul %231, %232, %cst_65 {dimension_numbers = #tpu.dot_dimension_numbers<[1], [0], [0], [1], [0, 0, 1, 1], [], []>} : vector<32x32xf32>, vector<32x64xf32>, vector<32x64xf32> -> vector<32x64xf32>
    %c240 = arith.constant 240 : index
    %c0_66 = arith.constant 0 : index
    %234 = vector.load %arg3[%c240, %c0_66] : memref<328x96xf32, #tpu.memory_space<vmem>>, vector<1x64xf32>
    %235 = vector.broadcast %234 : vector<1x64xf32> to vector<32x64xf32>
    %236 = arith.addf %233, %235 : vector<32x64xf32>
    %cst_67 = arith.constant 0.000000e+00 : f32
    %237 = vector.broadcast %cst_67 : f32 to vector<32x64xf32>
    %238 = arith.maximumf %236, %237 : vector<32x64xf32>
    %c248 = arith.constant 248 : index
    %c0_68 = arith.constant 0 : index
    %239 = vector.load %arg3[%c248, %c0_68] : memref<328x96xf32, #tpu.memory_space<vmem>>, vector<64x32xf32>
    %cst_69 = arith.constant dense<0.000000e+00> : vector<32x32xf32>
    %240 = tpu.matmul %238, %239, %cst_69 {dimension_numbers = #tpu.dot_dimension_numbers<[1], [0], [0], [1], [0, 0, 1, 1], [], []>} : vector<32x64xf32>, vector<64x32xf32>, vector<32x32xf32> -> vector<32x32xf32>
    %c312 = arith.constant 312 : index
    %c0_70 = arith.constant 0 : index
    %241 = vector.load %arg3[%c312, %c0_70] : memref<328x96xf32, #tpu.memory_space<vmem>>, vector<1x32xf32>
    %242 = vector.broadcast %241 : vector<1x32xf32> to vector<32x32xf32>
    %243 = arith.addf %240, %242 : vector<32x32xf32>
    %244 = arith.addf %231, %243 : vector<32x32xf32>
    %245 = vector.extract_strided_slice %9 {offsets = [4, 0], sizes = [1, 32], strides = [1, 1]} : vector<6x32xf32> to vector<1x32xf32>
    %246 = vector.extract_strided_slice %9 {offsets = [5, 0], sizes = [1, 32], strides = [1, 1]} : vector<6x32xf32> to vector<1x32xf32>
    %cst_71 = arith.constant dense<0.000000e+00> : vector<32xf32>
    %247 = vector.multi_reduction <add>, %244, %cst_71 [1] : vector<32x32xf32> to vector<32xf32>
    %248 = vector.shape_cast %247 : vector<32xf32> to vector<32x1xf32>
    %cst_72 = arith.constant 3.200000e+01 : f32
    %249 = vector.broadcast %cst_72 : f32 to vector<32x1xf32>
    %250 = arith.divf %248, %249 : vector<32x1xf32>
    %251 = vector.broadcast %250 : vector<32x1xf32> to vector<32x32xf32>
    %252 = arith.subf %244, %251 : vector<32x32xf32>
    %253 = arith.mulf %252, %252 : vector<32x32xf32>
    %cst_73 = arith.constant dense<0.000000e+00> : vector<32xf32>
    %254 = vector.multi_reduction <add>, %253, %cst_73 [1] : vector<32x32xf32> to vector<32xf32>
    %255 = vector.shape_cast %254 : vector<32xf32> to vector<32x1xf32>
    %cst_74 = arith.constant 3.200000e+01 : f32
    %256 = vector.broadcast %cst_74 : f32 to vector<32x1xf32>
    %257 = arith.divf %255, %256 : vector<32x1xf32>
    %258 = vector.broadcast %250 : vector<32x1xf32> to vector<32x32xf32>
    %259 = arith.subf %244, %258 : vector<32x32xf32>
    %cst_75 = arith.constant 9.99999974E-6 : f32
    %260 = vector.broadcast %cst_75 : f32 to vector<32x1xf32>
    %261 = arith.addf %257, %260 : vector<32x1xf32>
    %262 = math.rsqrt %261 : vector<32x1xf32>
    %263 = vector.broadcast %262 : vector<32x1xf32> to vector<32x32xf32>
    %264 = arith.mulf %259, %263 : vector<32x32xf32>
    %265 = vector.broadcast %245 : vector<1x32xf32> to vector<32x32xf32>
    %266 = arith.mulf %264, %265 : vector<32x32xf32>
    %267 = vector.broadcast %246 : vector<1x32xf32> to vector<32x32xf32>
    %268 = arith.addf %266, %267 : vector<32x32xf32>
    %c320 = arith.constant 320 : index
    %c0_76 = arith.constant 0 : index
    %269 = vector.load %arg3[%c320, %c0_76] : memref<328x96xf32, #tpu.memory_space<vmem>>, vector<4x32xf32>
    %270 = vector.extract_strided_slice %269 {offsets = [0, 0], sizes = [1, 32], strides = [1, 1]} : vector<4x32xf32> to vector<1x32xf32>
    %271 = vector.extract_strided_slice %269 {offsets = [1, 0], sizes = [1, 32], strides = [1, 1]} : vector<4x32xf32> to vector<1x32xf32>
    %cst_77 = arith.constant dense<0.000000e+00> : vector<32xf32>
    %272 = vector.multi_reduction <add>, %268, %cst_77 [1] : vector<32x32xf32> to vector<32xf32>
    %273 = vector.shape_cast %272 : vector<32xf32> to vector<32x1xf32>
    %cst_78 = arith.constant 3.200000e+01 : f32
    %274 = vector.broadcast %cst_78 : f32 to vector<32x1xf32>
    %275 = arith.divf %273, %274 : vector<32x1xf32>
    %276 = vector.broadcast %275 : vector<32x1xf32> to vector<32x32xf32>
    %277 = arith.subf %268, %276 : vector<32x32xf32>
    %278 = arith.mulf %277, %277 : vector<32x32xf32>
    %cst_79 = arith.constant dense<0.000000e+00> : vector<32xf32>
    %279 = vector.multi_reduction <add>, %278, %cst_79 [1] : vector<32x32xf32> to vector<32xf32>
    %280 = vector.shape_cast %279 : vector<32xf32> to vector<32x1xf32>
    %cst_80 = arith.constant 3.200000e+01 : f32
    %281 = vector.broadcast %cst_80 : f32 to vector<32x1xf32>
    %282 = arith.divf %280, %281 : vector<32x1xf32>
    %283 = vector.broadcast %275 : vector<32x1xf32> to vector<32x32xf32>
    %284 = arith.subf %268, %283 : vector<32x32xf32>
    %cst_81 = arith.constant 9.99999974E-6 : f32
    %285 = vector.broadcast %cst_81 : f32 to vector<32x1xf32>
    %286 = arith.addf %282, %285 : vector<32x1xf32>
    %287 = math.rsqrt %286 : vector<32x1xf32>
    %288 = vector.broadcast %287 : vector<32x1xf32> to vector<32x32xf32>
    %289 = arith.mulf %284, %288 : vector<32x32xf32>
    %290 = vector.broadcast %270 : vector<1x32xf32> to vector<32x32xf32>
    %291 = arith.mulf %289, %290 : vector<32x32xf32>
    %292 = vector.broadcast %271 : vector<1x32xf32> to vector<32x32xf32>
    %293 = arith.addf %291, %292 : vector<32x32xf32>
    %294 = vector.shape_cast %293 : vector<32x32xf32> to vector<4x8x32xf32>
    %295 = vector.extract_strided_slice %269 {offsets = [2, 0], sizes = [1, 32], strides = [1, 1]} : vector<4x32xf32> to vector<1x32xf32>
    %296 = vector.shape_cast %295 : vector<1x32xf32> to vector<1x1x32xf32>
    %297 = vector.broadcast %296 : vector<1x1x32xf32> to vector<4x8x32xf32>
    %298 = arith.mulf %294, %297 : vector<4x8x32xf32>
    %cst_82 = arith.constant dense<0.000000e+00> : vector<4x8xf32>
    %299 = vector.multi_reduction <add>, %298, %cst_82 [2] : vector<4x8x32xf32> to vector<4x8xf32>
    %300 = vector.extract_strided_slice %269 {offsets = [3, 0], sizes = [1, 1], strides = [1, 1]} : vector<4x32xf32> to vector<1x1xf32>
    %301 = vector.broadcast %300 : vector<1x1xf32> to vector<4x8xf32>
    %302 = arith.addf %299, %301 : vector<4x8xf32>
    %303 = arith.negf %302 : vector<4x8xf32>
    %304 = math.exp %303 : vector<4x8xf32>
    %cst_83 = arith.constant 1.000000e+00 : f32
    %305 = vector.broadcast %cst_83 : f32 to vector<4x8xf32>
    %306 = arith.addf %305, %304 : vector<4x8xf32>
    %307 = arith.divf %305, %306 : vector<4x8xf32>
    %c0_84 = arith.constant 0 : index
    %c0_85 = arith.constant 0 : index
    %c0_86 = arith.constant 0 : index
    %308 = vector.load %arg4[%c0_84, %c0_85, %c0_86] : memref<1x4x8xf32, #tpu.memory_space<vmem>>, vector<1x4x8xf32>
    %309 = vector.shape_cast %308 : vector<1x4x8xf32> to vector<4x8xf32>
    %310 = vector.shape_cast %307 : vector<4x8xf32> to vector<1x4x8xf32>
    tpu.vector_store %arg4[%c0_84, %c0_85, %c0_86], %310 {strides = array<i32>} : memref<1x4x8xf32, #tpu.memory_space<vmem>>, vector<1x4x8xf32>,
    return
  }
  func.func @transform_0(%arg0: i32) -> (i32, i32) {
    %c0_i32 = arith.constant 0 : i32
    %c0_i32_0 = arith.constant 0 : i32
    %c0_i32_1 = arith.constant 0 : i32
    return %c0_i32, %c0_i32_0 : i32, i32
  }
  func.func @transform_1(%arg0: i32) -> (i32, i32, i32) {
    %c0_i32 = arith.constant 0 : i32
    %c0_i32_0 = arith.constant 0 : i32
    %c0_i32_1 = arith.constant 0 : i32
    return %arg0, %c0_i32, %c0_i32_0 : i32, i32, i32
  }
  func.func @transform_2(%arg0: i32) -> (i32, i32) {
    %c0_i32 = arith.constant 0 : i32
    %c0_i32_0 = arith.constant 0 : i32
    %c0_i32_1 = arith.constant 0 : i32
    return %c0_i32, %c0_i32_0 : i32, i32
  }
  func.func @transform_3(%arg0: i32) -> (i32, i32, i32) {
    %c0_i32 = arith.constant 0 : i32
    %c0_i32_0 = arith.constant 0 : i32
    %c0_i32_1 = arith.constant 0 : i32
    return %arg0, %c0_i32, %c0_i32_0 : i32, i32, i32
  }
}

</mosaic_0001>

<bundles_post_ra>
// kernel: tpu_custom_call.1
= control target key start
LH: loop header
LB: loop body
LE: loop exit
PB: predicated region body
PF: predicated region fallthrough
CT: control target
= control target key end

     0   :  { %8 = vsyncpa [#allocation3], 0  ;;  %s8988_s0 = inlined_call_operand.vmem [shape: f32[32,32], index: 0, kind: input, shape index: {}]   ;;  %s8989_s1 = inlined_call_operand.vmem [shape: f32[8,8,32], index: 1, kind: input, shape index: {}]   ;;  %s8990_s2 = inlined_call_operand.vmem [shape: f32[328,96], index: 2, kind: input, shape index: {}]   ;;  %s8991_s3 = inlined_call_operand.hbm [shape: f32[2,4,8], index: 3, kind: output, shape index: {}]  }
   0x1   :  { %10 = vsyncpa [#allocation3 + $0x1], 0  ;;  %s7933_s12 = smov 0   ;;  %s7935_s13 = smov 0  }
   0x2   :  { %s7937_s14 = smov 0   ;;  %s7939_s15 = smov 0  }
   0x3 LB: > { %s7954_s16 = sadd.s32 4294967295, %s7893_s15   ;;  %s6768_s17 = sadd.s32 4294967294, %s7893_s15   ;;  %s7893_s15 = sphi %s7939_s15, %s9006_s15   ;;  %s7889_s14 = sphi %s7937_s14, %s9005_s14   ;;  %s7885_s13 = sphi %s7935_s13, %s9004_s13   ;;  %s7881_s12 = sphi %s7933_s12, %s9003_s12  }
   0x4   : > { %s7958_s18 = sadd.s32 1, %s7893_s15   ;;  %s91_s19 = sadd.s32 1, %s7889_s14 }
   0x5   : > { %s88_s20 = ssub.s32 %s7893_s15, %s7958_s18  ;;  %p101_p0 = scmp.ne.s32.totalorder %s7889_s14, %s7885_s13 }
   0x6   : > { %p89_p1 = scmp.eq.s32.totalorder %s88_s20, 0  ;;  %p102_p2 = scmp.eq.s32.totalorder %s7954_s16, 1 }
   0x7   : > { %p107_p3 = scmp.ne.s32.totalorder %s7885_s13, %s7881_s12  ;;  %p108_p4 = scmp.eq.s32.totalorder %s6768_s17, 1 }
   0x8   : > { %s7969_s21 = scalar_select %p89_p1, %s7889_s14, %s91_s19  }
   0x9   : > { %p7971_p5 = por %p102_p2, %p101_p0  ;;  %p7975_p6 = por %p108_p4, %p107_p3 }
   0xa   : > { %p6771_p7 = scmp.ge.s32.totalorder %s7893_s15, 1  ;;  %p141_p8 = scmp.lt.s32.totalorder %s7893_s15, 3 }
   0xc   : > { %p142_p9 = pnand %p6771_p7, %p141_p8 }
   0xd   : > { %v184_v0 = vld [vmem:[%s8990_s2] sm:$0xff] (!%p142_p9)  ;;  %v185_v1 = vld [vmem:[%s8990_s2 + $0x8] sm:$0xff] (!%p142_p9)  ;;  %v186_v2 = vld [vmem:[%s8990_s2 + $0x10] sm:$0xff] (!%p142_p9)  ;;  %vm193_vm0 = vcmask (!%p142_p9), 261120   ;;  %v7895_v10 = vmov (!%p142_p9), 0.0   ;;  %vm7896_vm1 = vmmov (!%p142_p9), 0   ;;  %v179_v24 = vlaneseq (!%p142_p9) }
   0xe   : > { %145 = sbr.rel (%p142_p9) target bundleno = 7979 (0x1f2b), region = 32  ;;  %v7528_v3 = vpack.c.bf16 (!%p142_p9), %v185_v1, %v184_v0  ;;  %v187_v4 = vld [vmem:[%s8990_s2 + $0x18] sm:$0xff] (!%p142_p9)  ;;  %v171_v5 = vld [vmem:[%s8988_s0] sm:$0xff] (!%p142_p9)  ;;  %v172_v7 = vld [vmem:[%s8988_s0 + $0x8] sm:$0xff] (!%p142_p9)  ;;  %7121 = vmatprep.subr.mxu1 (!%p142_p9), %v7895_v10  ;;  %7123 = vmatprep.mubr.msk.f32.mxu1 (!%p142_p9), %vm7896_vm1, %v7895_v10  ;;  %s7897_s24 = smov (!%p142_p9), 96   ;;  %vm294_vm2 = vcmask (!%p142_p9), 64512  }
   0xf   : > { %v7532_v6 = vpack.c.bf16 (!%p142_p9), %v187_v4, %v186_v2  ;;  %7110 = vmatprep.mubr.msk.f32.mxu0 (!%p142_p9), %vm193_vm0, %v171_v5  ;;  %v173_v8 = vld [vmem:[%s8988_s0 + $0x10] sm:$0xff] (!%p142_p9)  ;;  %v174_v9 = vld [vmem:[%s8988_s0 + $0x18] sm:$0xff] (!%p142_p9)  ;;  %v6775_v11 = vld [vmem:[%s8990_s2 + $0x20] ss:$0 sm:$0xff] (!%p142_p9)  ;;  %v8059_v25 = vand.u32 (!%p142_p9), 127, %v179_v24  ;;  %s7899_s25 = smov (!%p142_p9), 64  }
  0x10   : > { %7529 = vmatprep.subr.bf16.mxu0 (!%p142_p9), %v7528_v3  ;;  %v7898_v26 = vmov (!%p142_p9), -1e+30   ;;  %s7900_s26 = smov (!%p142_p9), 88   ;;  %s7901_s27 = smov (!%p142_p9), 120   ;;  %vm2980_vm4 = vcmask (!%p142_p9), 130048   ;;  %vm2985_vm5 = vcmask (!%p142_p9), 195584  }
  0x11   : > { %7531 = vmatpush3.bf16.msra.mxu0 (!%p142_p9), %v7528_v3  ;;  %vm181_vm3 = vcmp.lt.s32.totalorder (!%p142_p9), %v8059_v25, 6  ;;  %s7902_s28 = smov (!%p142_p9), 56   ;;  %s7903_s29 = smov (!%p142_p9), 80   ;;  %vm6374_vm6 = vcmask (!%p142_p9), 523264   ;;  %vm6686_vm7 = vcmask (!%p142_p9), 1041409   ;;  %vm6688_vm8 = vcmask (!%p142_p9), 1042434  }
  0x12   : > { %7533 = vmatprep.subr.bf16.mxu0 (!%p142_p9), %v7532_v6  ;;  %v8062_v27 = vsel (!%p142_p9), %vm181_vm3, 0.0, %v7898_v26  ;;  %s7904_s30 = smov (!%p142_p9), 112   ;;  %s7905_s4 = smov (!%p142_p9), 48   ;;  %vm6690_vm9 = vcmask (!%p142_p9), 1043459   ;;  %vm6693_vm10 = vcmask (!%p142_p9), 60416  }
  0x13   : > { %s7906_s5 = smov (!%p142_p9), 72   ;;  %s7907_s6 = smov (!%p142_p9), 104  }
  0x14   : > { %s7908_s7 = smov (!%p142_p9), 40   ;;  %s8996_s8 = smov (!%p142_p9), 8  }
  0x15   : > { %7535 = vmatpush3.bf16.msra.mxu0 %v7532_v6  ;;  %s8994_s9 = smov 16   ;;  %s9002_s17 = smov 24  }
  0x16   : > { %7116 = vmatprep.subr.mxu0 %v7895_v10 }
  0x18   : > { %7111 = vmatmul.mubr.msk.f32.vlgmr.msra.gmra.mrb[0].mxu0 %vm193_vm0, %v172_v7 }
  0x19   : > { %7113 = vmatprep.mubr.msk.f32.mxu0 %vm193_vm0, %v173_v8 }
  0x1c   : > { %7114 = vmatmul.mubr.msk.f32.gmra.mrb[2].mxu0 %vm193_vm0, %v174_v9 }
  0x1d   : > { %7118 = vmatprep.mubr.msk.f32.mxu0 %vm7896_vm1, %v7895_v10 }
  0xeb   : > { %v7112_v12 = vpop.f32.mrb[0].mxu0 }
  0xec   : > { %v272_v13 = vpop.f32.mrb[1].mxu0  ;;  %v8022_v17 = vadd.f32 %v7112_v12, %v6775_v11 }
  0xed   : > { %v8018_v14 = vadd.f32 %v6775_v11, %v272_v13 }
  0xef   : > { %v7115_v15 = vpop.f32.mrb[2].mxu0  ;;  %292 = vrot.lane.b32.xlu0 %v8018_v14, %s7897_s24 }
  0xf0   : > { %v282_v16 = vpop.f32.mrb[3].mxu0  ;;  %v8026_v19 = vadd.f32 %v7115_v15, %v6775_v11 }
  0xf1   : > { %v8024_v18 = vadd.f32 %v6775_v11, %v282_v16 }
  0xf3   : > { %447 = vrot.lane.b32.xlu1 %v8024_v18, %s7897_s24  ;;  %370 = vrot.lane.b32.xlu0 %v8022_v17, %s7897_s24 }
  0xf7   : > { %524 = vrot.lane.b32.xlu1 %v8026_v19, %s7897_s24 }
 0x161   : > { %v293_v20 = vpop.permute.xlu0 %292 }
 0x162   : > { %7117 = vmatpush3.xpose.msk.msra.mxu0 %vm294_vm2, %v293_v20 }
 0x163   : > { %7131 = vmatprep.subr.mxu0 %v7895_v10 }
 0x165   : > { %v448_v21 = vpop.permute.xlu1 %447  ;;  %7119 = vmatmul.mubr.msk.f32.vlgmr.msra.gmra.mrb[4].mxu0 %vm294_vm2, %v8018_v14  ;;  %v371_v22 = vpop.permute.xlu0 %370 }
 0x166   : > { %7122 = vmatpush3.xpose.msk.msra.mxu1 %vm294_vm2, %v371_v22  ;;  %7133 = vmatprep.mubr.msk.f32.mxu0 %vm7896_vm1, %v7895_v10 }
 0x167   : > { %7126 = vmatprep.subr.mxu1 %v7895_v10 }
 0x169   : > { %v525_v23 = vpop.permute.xlu1 %524  ;;  %7124 = vmatmul.mubr.msk.f32.vlgmr.msra.gmra.mrb[0].mxu1 %vm294_vm2, %v8022_v17 }
 0x16a   : > { %7127 = vmatpush3.xpose.msk.msra.mxu1 %vm294_vm2, %v448_v21  ;;  %7132 = vmatpush3.xpose.msk.msra.mxu0 %vm294_vm2, %v525_v23 }
 0x16b   : > { %7128 = vmatprep.mubr.msk.f32.mxu1 %vm7896_vm1, %v7895_v10  ;;  %7136 = vmatprep.subr.mxu1 %v7895_v10 }
 0x16c   : > { %7141 = vmatprep.subr.mxu0 %v7895_v10 }
 0x16d   : > { %7129 = vmatmul.mubr.msk.f32.vlgmr.msra.gmra.mrb[2].mxu1 %vm294_vm2, %v8024_v18  ;;  %7134 = vmatmul.mubr.msk.f32.vlgmr.msra.gmra.mrb[6].mxu0 %vm294_vm2, %v8026_v19 }
 0x16e   : > { %7138 = vmatprep.mubr.msk.f32.mxu1 %vm7896_vm1, %v7895_v10  ;;  %7143 = vmatprep.mubr.msk.f32.mxu0 %vm7896_vm1, %v7895_v10 }
 0x238   : > { %v365_v28 = vpop.f32.mrb[4].mxu0 }
 0x239   : > { %v366_v29 = vadd.f32 %v365_v28, %v8062_v27  ;;  %v7120_v30 = vpop.f32.mrb[5].mxu0 }
 0x23b   : > { %v600_v31 = vsel %vm294_vm2, %v366_v29, -inf }
 0x23c   : > { %601 = vmax.xlane.f32.xlu0 %v600_v31  ;;  %v442_v32 = vpop.f32.mrb[0].mxu1 }
 0x23d   : > { %v443_v33 = vadd.f32 %v442_v32, %v8062_v27  ;;  %v7125_v34 = vpop.f32.mrb[1].mxu1 }
 0x23f   : > { %v603_v35 = vsel %vm294_vm2, %v443_v33, -inf }
 0x240   : > { %v596_v36 = vpop.f32.mrb[6].mxu0  ;;  %604 = vmax.xlane.f32.xlu1 %v603_v35  ;;  %v519_v37 = vpop.f32.mrb[2].mxu1 }
 0x241   : > { %v520_v38 = vadd.f32 %v519_v37, %v8062_v27  ;;  %v7130_v39 = vpop.f32.mrb[3].mxu1  ;;  %v7135_v40 = vpop.f32.mrb[7].mxu0  ;;  %v597_v41 = vadd.f32 %v596_v36, %v8062_v27 }
 0x243   : > { %v606_v42 = vsel %vm294_vm2, %v520_v38, -inf  ;;  %v609_v43 = vsel %vm294_vm2, %v597_v41, -inf }
 0x244   : > { %607 = vmax.xlane.f32.xlu0 %v606_v42 }
 0x248   : > { %610 = vmax.xlane.f32.xlu0 %v609_v43 }
 0x251   : > { %644 = vrot.lane.b32.xlu1 %v8018_v14, %s7899_s25 }
 0x255   : > { %796 = vrot.lane.b32.xlu1 %v8024_v18, %s7899_s25 }
 0x259   : > { %872 = vrot.lane.b32.xlu1 %v8026_v19, %s7899_s25 }
 0x25d   : > { %1028 = vrot.lane.b32.xlu1 %v8022_v17, %s7900_s26 }
 0x25e   : > { %720 = vrot.lane.b32.xlu0 %v8022_v17, %s7899_s25 }
 0x262   : > { %950 = vrot.lane.b32.xlu0 %v8018_v14, %s7900_s26 }
 0x2c9   : > { %v602_v44 = vpop.xlane.xlu0 %601 }
 0x2ca   : > { %v612_v45 = vsub.f32 %v366_v29, %v602_v44 }
 0x2cc   : > { %v616_v46 = vmul.f32 1.442695, %v612_v45 }
 0x2cd   : > { %v605_v47 = vpop.xlane.xlu1 %604 }
 0x2ce   : > { %7650 = vpow2.f32 %v616_v46  ;;  %v613_v48 = vsub.f32 %v443_v33, %v605_v47 }
 0x2d0   : > { %v618_v49 = vmul.f32 1.442695, %v613_v48 }
 0x2d1   : > { %v645_v50 = vpop.permute.xlu1 %644  ;;  %v608_v51 = vpop.xlane.xlu0 %607 }
 0x2d2   : > { %7652 = vpow2.f32 %v618_v49  ;;  %v614_v52 = vsub.f32 %v520_v38, %v608_v51  ;;  %7137 = vmatpush3.msra.mxu1 %v645_v50 }
 0x2d3   : > { %7146 = vmatprep.subr.mxu1 %v7895_v10 }
 0x2d4   : > { %v620_v53 = vmul.f32 1.442695, %v614_v52 }
 0x2d5   : > { %v611_v54 = vpop.xlane.xlu0 %610  ;;  %v797_v2 = vpop.permute.xlu1 %796 }
 0x2d6   : > { %7654 = vpow2.f32 %v620_v53  ;;  %v615_v55 = vsub.f32 %v597_v41, %v611_v54 }
 0x2d8   : > { %v7651_v56 = vpop.eup %7650  ;;  %v622_v57 = vmul.f32 1.442695, %v615_v55 }
 0x2d9   : > { %v721_v58 = vpop.permute.xlu0 %720  ;;  %v624_v59 = vsel %vm294_vm2, %v7651_v56, 0.0  ;;  %v873_v3 = vpop.permute.xlu1 %872 }
 0x2da   : > { %7656 = vpow2.f32 %v622_v57  ;;  %625 = vadd.xlane.f32.xlu1 %v624_v59  ;;  %7142 = vmatpush3.msra.mxu0 %v721_v58 }
 0x2db   : > { %7151 = vmatprep.subr.mxu0 %v7895_v10 }
 0x2dc   : > { %v7653_v60 = vpop.eup %7652 }
 0x2dd   : > { %v627_v61 = vsel %vm294_vm2, %v7653_v60, 0.0  ;;  %v1029_v4 = vpop.permute.xlu1 %1028  ;;  %v951_v5 = vpop.permute.xlu0 %950 }
 0x2de   : > { %628 = vadd.xlane.f32.xlu0 %v627_v61 }
 0x2e0   : > { %v7655_v62 = vpop.eup %7654 }
 0x2e1   : > { %v630_v63 = vsel %vm294_vm2, %v7655_v62, 0.0 }
 0x2e2   : > { %631 = vadd.xlane.f32.xlu1 %v630_v63 }
 0x2e4   : > { %v7657_v0 = vpop.eup %7656 }
 0x2e5   : > { %v633_v1 = vsel %vm294_vm2, %v7657_v0, 0.0 }
 0x2e6   : > { %634 = vadd.xlane.f32.xlu0 %v633_v1 }
 0x2f3   : > { %1026 = vrot.lane.b32.xlu1 %v8022_v17, %s7901_s27 }
 0x2f7   : > { %1184 = vrot.lane.b32.xlu1 %v8026_v19, %s7900_s26 }
 0x2fb   : > { %1182 = vrot.lane.b32.xlu1 %v8026_v19, %s7901_s27 }
 0x2fc   : > { %948 = vrot.lane.b32.xlu0 %v8018_v14, %s7901_s27 }
 0x300   : > { %1106 = vrot.lane.b32.xlu0 %v8024_v18, %s7900_s26 }
 0x304   : > { %1104 = vrot.lane.b32.xlu0 %v8024_v18, %s7901_s27 }
 0x367   : > { %v626_v6 = vpop.xlane.xlu1 %625 }
 0x368   : > { %7658 = vrcp.f32 %v626_v6 }
 0x36b   : > { %v629_v7 = vpop.xlane.xlu0 %628 }
 0x36c   : > { %7660 = vrcp.f32 %v629_v7 }
 0x36f   : > { %v632_v8 = vpop.xlane.xlu1 %631 }
 0x370   : > { %7662 = vrcp.f32 %v632_v8 }
 0x372   : > { %v7659_v9 = vpop.eup %7658 }
 0x373   : > { %v635_v11 = vpop.xlane.xlu0 %634  ;;  %v640_v12 = vmul.f32 %v7659_v9, %v7651_v56  ;;  %v1027_v22 = vpop.permute.xlu1 %1026 }
 0x374   : > { %7664 = vrcp.f32 %v635_v11 }
 0x375   : > { %7139 = vmatmul.mubr.msk.f32.vlgmr.msra.gmra.mrb[4].mxu1 %vm294_vm2, %v640_v12 }
 0x376   : > { %v7661_v13 = vpop.eup %7660  ;;  %7147 = vmatpush3.msra.mxu1 %v797_v2  ;;  %7148 = vmatprep.mubr.msk.f32.mxu1 %vm7896_vm1, %v7895_v10 }
 0x377   : > { %v641_v15 = vmul.f32 %v7661_v13, %v7653_v60  ;;  %7156 = vmatprep.subr.mxu1 %v7895_v10  ;;  %v949_v16 = vpop.permute.xlu0 %948  ;;  %v1185_v29 = vpop.permute.xlu1 %1184 }
 0x379   : > { %7144 = vmatmul.mubr.msk.f32.vlgmr.msra.gmra.mrb[8].mxu0 %vm294_vm2, %v641_v15 }
 0x37a   : > { %v7663_v20 = vpop.eup %7662  ;;  %7152 = vmatpush3.msra.mxu0 %v873_v3  ;;  %7153 = vmatprep.mubr.msk.f32.mxu0 %vm7896_vm1, %v7895_v10 }
 0x37b   : > { %v642_v21 = vmul.f32 %v7663_v20, %v7655_v62  ;;  %7161 = vmatprep.subr.mxu0 %v7895_v10  ;;  %v1107_v26 = vpop.permute.xlu0 %1106  ;;  %v1183_v31 = vpop.permute.xlu1 %1182 }
 0x37d   : > { %7149 = vmatmul.mubr.msk.f32.vlgmr.msra.gmra.mrb[6].mxu1 %vm294_vm2, %v642_v21 }
 0x37e   : > { %v7665_v23 = vpop.eup %7664  ;;  %7157 = vmatpush3.xpose.msk.msra.mxu1 %vm294_vm2, %v951_v5  ;;  %7158 = vmatprep.mubr.msk.f32.mxu1 %vm7896_vm1, %v7895_v10 }
 0x37f   : > { %7166 = vmatprep.subr.mxu1 %v7895_v10  ;;  %v643_v28 = vmul.f32 %v7665_v23, %v7657_v0  ;;  %v1105_v30 = vpop.permute.xlu0 %1104 }
 0x381   : > { %7154 = vmatmul.mubr.msk.f32.vlgmr.msra.gmra.mrb[10].mxu0 %vm294_vm2, %v643_v28  ;;  %7159 = vmatmul.mubr.msk.f32.vlgmr.msra.gmra.mrb[8].mxu1 %vm294_vm2, %v949_v16 }
 0x382   : > { %7162 = vmatpush3.xpose.msk.msra.mxu0 %vm294_vm2, %v1029_v4  ;;  %7167 = vmatpush3.xpose.msk.msra.mxu1 %vm294_vm2, %v1107_v26 }
 0x383   : > { %7163 = vmatprep.mubr.msk.f32.mxu0 %vm7896_vm1, %v7895_v10  ;;  %7168 = vmatprep.mubr.msk.f32.mxu1 %vm7896_vm1, %v7895_v10 }
 0x384   : > { %7171 = vmatprep.subr.mxu0 %v7895_v10  ;;  %7176 = vmatprep.subr.mxu1 %v7895_v10 }
 0x385   : > { %7164 = vmatmul.mubr.msk.f32.vlgmr.msra.gmra.mrb[12].mxu0 %vm294_vm2, %v1027_v22  ;;  %7169 = vmatmul.mubr.msk.f32.vlgmr.msra.gmra.mrb[10].mxu1 %vm294_vm2, %v1105_v30 }
 0x386   : > { %7172 = vmatpush3.xpose.msk.msra.mxu0 %vm294_vm2, %v1185_v29  ;;  %7173 = vmatprep.mubr.msk.f32.mxu0 %vm7896_vm1, %v7895_v10 }
 0x387   : > { %7181 = vmatprep.subr.mxu0 %v7895_v10  ;;  %7178 = vmatprep.mubr.msk.f32.mxu1 %vm7896_vm1, %v7895_v10 }
 0x389   : > { %7174 = vmatmul.mubr.msk.f32.vlgmr.msra.gmra.mrb[14].mxu0 %vm294_vm2, %v1183_v31 }
 0x38a   : > { %7183 = vmatprep.mubr.msk.f32.mxu0 %vm7896_vm1, %v7895_v10 }
 0x448   : > { %v8132_v32 = vpop.f32.mrb[4].mxu1 }
 0x449   : > { %v7140_v33 = vpop.f32.mrb[5].mxu1 }
 0x44c   : > { %v8134_v34 = vpop.f32.mrb[8].mxu0 }
 0x44d   : > { %v7145_v35 = vpop.f32.mrb[9].mxu0 }
 0x450   : > { %v8136_v36 = vpop.f32.mrb[6].mxu1 }
 0x451   : > { %v7150_v37 = vpop.f32.mrb[7].mxu1 }
 0x454   : > { %v8138_v38 = vpop.f32.mrb[10].mxu0  ;;  %v1022_v39 = vpop.f32.mrb[8].mxu1 }
 0x455   : > { %v1023_v40 = vadd.f32 %v1022_v39, %v8062_v27  ;;  %v7155_v41 = vpop.f32.mrb[11].mxu0  ;;  %v7160_v42 = vpop.f32.mrb[9].mxu1 }
 0x457   : > { %v1260_v43 = vsel %vm294_vm2, %v1023_v40, -inf }
 0x458   : > { %v1100_v44 = vpop.f32.mrb[12].mxu0  ;;  %1261 = vmax.xlane.f32.xlu0 %v1260_v43  ;;  %v1178_v45 = vpop.f32.mrb[10].mxu1 }
 0x459   : > { %v1101_v46 = vadd.f32 %v1100_v44, %v8062_v27  ;;  %v1179_v47 = vadd.f32 %v1178_v45, %v8062_v27  ;;  %v7165_v48 = vpop.f32.mrb[13].mxu0  ;;  %v7170_v49 = vpop.f32.mrb[11].mxu1 }
 0x45b   : > { %v1263_v50 = vsel %vm294_vm2, %v1101_v46, -inf  ;;  %v1266_v51 = vsel %vm294_vm2, %v1179_v47, -inf }
 0x45c   : > { %1264 = vmax.xlane.f32.xlu1 %v1263_v50  ;;  %v1256_v52 = vpop.f32.mrb[14].mxu0  ;;  %1267 = vmax.xlane.f32.xlu0 %v1266_v51 }
 0x45d   : > { %v1257_v53 = vadd.f32 %v1256_v52, %v8062_v27  ;;  %v7175_v54 = vpop.f32.mrb[15].mxu0 }
 0x45f   : > { %v1269_v55 = vsel %vm294_vm2, %v1257_v53, -inf }
 0x460   : > { %1270 = vmax.xlane.f32.xlu0 %v1269_v55 }
 0x46d   : > { %1304 = vrot.lane.b32.xlu1 %v8018_v14, %s7902_s28 }
 0x471   : > { %1456 = vrot.lane.b32.xlu1 %v8024_v18, %s7902_s28 }
 0x475   : > { %1532 = vrot.lane.b32.xlu1 %v8026_v19, %s7902_s28 }
 0x476   : > { %1380 = vrot.lane.b32.xlu0 %v8022_v17, %s7902_s28  ;;  %s6773_s28 = sshll.u32 %s7954_s16, 2 }
 0x477   : > { %p166_p10 = scmp.lt.s32.totalorder %s6773_s28, 7 }
 0x479   : > { %1688 = vrot.lane.b32.xlu1 %v8022_v17, %s7903_s29  ;;  %s9008_s28 = smov (!%p166_p10, %s6773_s28), 7 }
 0x47a   : > { %1610 = vrot.lane.b32.xlu0 %v8018_v14, %s7903_s29 }
 0x4e5   : > { %v1262_v56 = vpop.xlane.xlu0 %1261 }
 0x4e6   : > { %v1272_v57 = vsub.f32 %v1023_v40, %v1262_v56 }
 0x4e8   : > { %v1276_v58 = vmul.f32 1.442695, %v1272_v57 }
 0x4e9   : > { %v1265_v59 = vpop.xlane.xlu1 %1264  ;;  %v1268_v60 = vpop.xlane.xlu0 %1267 }
 0x4ea   : > { %7666 = vpow2.f32 %v1276_v58  ;;  %v1273_v61 = vsub.f32 %v1101_v46, %v1265_v59  ;;  %v1274_v11 = vsub.f32 %v1179_v47, %v1268_v60 }
 0x4ec   : > { %v1278_v62 = vmul.f32 1.442695, %v1273_v61  ;;  %v1280_v12 = vmul.f32 1.442695, %v1274_v11 }
 0x4ed   : > { %v1305_v63 = vpop.permute.xlu1 %1304  ;;  %v1271_v0 = vpop.xlane.xlu0 %1270 }
 0x4ee   : > { %7668 = vpow2.f32 %v1278_v62  ;;  %v1275_v1 = vsub.f32 %v1257_v53, %v1271_v0  ;;  %7177 = vmatpush3.msra.mxu1 %v1305_v63 }
 0x4ef   : > { %7186 = vmatprep.subr.mxu1 %v7895_v10 }
 0x4f0   : > { %v1282_v2 = vmul.f32 1.442695, %v1275_v1 }
 0x4f1   : > { %v1381_v3 = vpop.permute.xlu0 %1380  ;;  %v1457_v16 = vpop.permute.xlu1 %1456 }
 0x4f2   : > { %7670 = vpow2.f32 %v1282_v2  ;;  %7182 = vmatpush3.msra.mxu0 %v1381_v3 }
 0x4f3   : > { %7191 = vmatprep.subr.mxu0 %v7895_v10  ;;  %7672 = vpow2.f32 %v1280_v12 }
 0x4f4   : > { %v7667_v4 = vpop.eup %7666 }
 0x4f5   : > { %v1284_v5 = vsel %vm294_vm2, %v7667_v4, 0.0  ;;  %v1533_v20 = vpop.permute.xlu1 %1532  ;;  %v1611_v22 = vpop.permute.xlu0 %1610 }
 0x4f6   : > { %1285 = vadd.xlane.f32.xlu1 %v1284_v5 }
 0x4f8   : > { %v7669_v6 = vpop.eup %7668 }
 0x4f9   : > { %v1287_v7 = vsel %vm294_vm2, %v7669_v6, 0.0  ;;  %v1689_v21 = vpop.permute.xlu1 %1688 }
 0x4fa   : > { %1288 = vadd.xlane.f32.xlu0 %v1287_v7 }
 0x4fc   : > { %v7671_v8 = vpop.eup %7670 }
 0x4fd   : > { %v1293_v9 = vsel %vm294_vm2, %v7671_v8, 0.0  ;;  %v7673_v13 = vpop.eup %7672 }
 0x4fe   : > { %1294 = vadd.xlane.f32.xlu0 %v1293_v9  ;;  %v1290_v15 = vsel %vm294_vm2, %v7673_v13, 0.0 }
 0x507   : > { %1686 = vrot.lane.b32.xlu1 %v8022_v17, %s7904_s30 }
 0x514   : > { %1608 = vrot.lane.b32.xlu0 %v8018_v14, %s7904_s30 }
 0x518   : > { %1766 = vrot.lane.b32.xlu0 %v8024_v18, %s7903_s29 }
 0x51c   : > { %1764 = vrot.lane.b32.xlu0 %v8024_v18, %s7904_s30 }
 0x52b   : > { %1291 = vadd.xlane.f32.xlu1 %v1290_v15 }
 0x53c   : > { %1844 = vrot.lane.b32.xlu1 %v8026_v19, %s7903_s29 }
 0x540   : > { %1842 = vrot.lane.b32.xlu1 %v8026_v19, %s7904_s30 }
 0x583   : > { %v1286_v23 = vpop.xlane.xlu1 %1285 }
 0x584   : > { %7674 = vrcp.f32 %v1286_v23 }
 0x587   : > { %v1289_v26 = vpop.xlane.xlu0 %1288  ;;  %v1687_v39 = vpop.permute.xlu1 %1686 }
 0x588   : > { %7676 = vrcp.f32 %v1289_v26 }
 0x58b   : > { %v1295_v28 = vpop.xlane.xlu0 %1294 }
 0x58c   : > { %7678 = vrcp.f32 %v1295_v28 }
 0x58e   : > { %v7675_v29 = vpop.eup %7674 }
 0x58f   : > { %v1300_v30 = vmul.f32 %v7675_v29, %v7667_v4  ;;  %v1609_v43 = vpop.permute.xlu0 %1608 }
 0x591   : > { %7179 = vmatmul.mubr.msk.f32.vlgmr.msra.gmra.mrb[12].mxu1 %vm294_vm2, %v1300_v30 }
 0x592   : > { %v7677_v31 = vpop.eup %7676  ;;  %7187 = vmatpush3.msra.mxu1 %v1457_v16  ;;  %7188 = vmatprep.mubr.msk.f32.mxu1 %vm7896_vm1, %v7895_v10 }
 0x593   : > { %v1301_v33 = vmul.f32 %v7677_v31, %v7669_v6  ;;  %7196 = vmatprep.subr.mxu1 %v7895_v10  ;;  %v1767_v46 = vpop.permute.xlu0 %1766 }
 0x595   : > { %7184 = vmatmul.mubr.msk.f32.vlgmr.msra.gmra.mrb[16].mxu0 %vm294_vm2, %v1301_v33 }
 0x596   : > { %v7679_v35 = vpop.eup %7678  ;;  %7192 = vmatpush3.msra.mxu0 %v1533_v20  ;;  %7193 = vmatprep.mubr.msk.f32.mxu0 %vm7896_vm1, %v7895_v10 }
 0x597   : > { %v1303_v37 = vmul.f32 %v7679_v35, %v7671_v8  ;;  %7201 = vmatprep.subr.mxu0 %v7895_v10  ;;  %v1765_v47 = vpop.permute.xlu0 %1764 }
 0x599   : > { %7194 = vmatmul.mubr.msk.f32.vlgmr.msra.gmra.mrb[18].mxu0 %vm294_vm2, %v1303_v37 }
 0x59a   : > { %7203 = vmatprep.mubr.msk.f32.mxu0 %vm7896_vm1, %v7895_v10 }
 0x59d   : > { %7202 = vmatpush3.xpose.msk.msra.mxu0 %vm294_vm2, %v1689_v21 }
 0x59e   : > { %7211 = vmatprep.subr.mxu0 %v7895_v10 }
 0x5a0   : > { %7204 = vmatmul.mubr.msk.f32.vlgmr.msra.gmra.mrb[20].mxu0 %vm294_vm2, %v1687_v39 }
 0x5a1   : > { %7213 = vmatprep.mubr.msk.f32.mxu0 %vm7896_vm1, %v7895_v10 }
 0x5b8   : > { %v1292_v40 = vpop.xlane.xlu1 %1291 }
 0x5b9   : > { %7680 = vrcp.f32 %v1292_v40 }
 0x5bc   : > { %v1845_v41 = vpop.permute.xlu1 %1844 }
 0x5bd   : > { %7212 = vmatpush3.xpose.msk.msra.mxu0 %vm294_vm2, %v1845_v41 }
 0x5be   : > { %7221 = vmatprep.subr.mxu0 %v7895_v10 }
 0x5c0   : > { %v1843_v42 = vpop.permute.xlu1 %1842 }
 0x5c1   : > { %7214 = vmatmul.mubr.msk.f32.vlgmr.msra.gmra.mrb[22].mxu0 %vm294_vm2, %v1843_v42 }
 0x5c2   : > { %7223 = vmatprep.mubr.msk.f32.mxu0 %vm7896_vm1, %v7895_v10 }
 0x5c3   : > { %v7681_v44 = vpop.eup %7680 }
 0x5c4   : > { %v1302_v45 = vmul.f32 %v7681_v44, %v7673_v13 }
 0x5c6   : > { %7189 = vmatmul.mubr.msk.f32.vlgmr.msra.gmra.mrb[14].mxu1 %vm294_vm2, %v1302_v45 }
 0x5c7   : > { %7197 = vmatpush3.xpose.msk.msra.mxu1 %vm294_vm2, %v1611_v22  ;;  %7198 = vmatprep.mubr.msk.f32.mxu1 %vm7896_vm1, %v7895_v10 }
 0x5c8   : > { %7206 = vmatprep.subr.mxu1 %v7895_v10 }
 0x5ca   : > { %7199 = vmatmul.mubr.msk.f32.vlgmr.msra.gmra.mrb[16].mxu1 %vm294_vm2, %v1609_v43 }
 0x5cb   : > { %7207 = vmatpush3.xpose.msk.msra.mxu1 %vm294_vm2, %v1767_v46  ;;  %7208 = vmatprep.mubr.msk.f32.mxu1 %vm7896_vm1, %v7895_v10 }
 0x5cc   : > { %7216 = vmatprep.subr.mxu1 %v7895_v10 }
 0x5ce   : > { %7209 = vmatmul.mubr.msk.f32.vlgmr.msra.gmra.mrb[18].mxu1 %vm294_vm2, %v1765_v47 }
 0x5cf   : > { %7218 = vmatprep.mubr.msk.f32.mxu1 %vm7896_vm1, %v7895_v10 }
 0x664   : > { %v8208_v48 = vpop.f32.mrb[12].mxu1 }
 0x665   : > { %v7180_v49 = vpop.f32.mrb[13].mxu1 }
 0x668   : > { %v8210_v50 = vpop.f32.mrb[16].mxu0 }
 0x669   : > { %v7185_v51 = vpop.f32.mrb[17].mxu0 }
 0x66c   : > { %v8212_v52 = vpop.f32.mrb[18].mxu0 }
 0x66d   : > { %v7195_v53 = vpop.f32.mrb[19].mxu0 }
 0x673   : > { %v1760_v54 = vpop.f32.mrb[20].mxu0 }
 0x674   : > { %v1761_v55 = vadd.f32 %v1760_v54, %v8062_v27  ;;  %v7205_v56 = vpop.f32.mrb[21].mxu0 }
 0x676   : > { %v1923_v57 = vsel %vm294_vm2, %v1761_v55, -inf }
 0x677   : > { %1924 = vmax.xlane.f32.xlu1 %v1923_v57 }
 0x688   : > { %1964 = vrot.lane.b32.xlu1 %v8018_v14, %s7905_s4 }
 0x68c   : > { %2116 = vrot.lane.b32.xlu1 %v8024_v18, %s7905_s4 }
 0x690   : > { %2192 = vrot.lane.b32.xlu1 %v8026_v19, %s7905_s4 }
 0x694   : > { %2348 = vrot.lane.b32.xlu1 %v8022_v17, %s7906_s5  ;;  %v1916_v58 = vpop.f32.mrb[22].mxu0 }
 0x695   : > { %v7215_v59 = vpop.f32.mrb[23].mxu0  ;;  %v1917_v1 = vadd.f32 %v1916_v58, %v8062_v27 }
 0x697   : > { %v1929_v6 = vsel %vm294_vm2, %v1917_v1, -inf }
 0x699   : > { %v8221_v60 = vpop.f32.mrb[14].mxu1 }
 0x69a   : > { %v7190_v61 = vpop.f32.mrb[15].mxu1 }
 0x69d   : > { %v1682_v62 = vpop.f32.mrb[16].mxu1 }
 0x69e   : > { %v1683_v63 = vadd.f32 %v1682_v62, %v8062_v27  ;;  %v7200_v0 = vpop.f32.mrb[17].mxu1 }
 0x6a0   : > { %v1920_v2 = vsel %vm294_vm2, %v1683_v63, -inf }
 0x6a1   : > { %1921 = vmax.xlane.f32.xlu0 %v1920_v2  ;;  %v1838_v3 = vpop.f32.mrb[18].mxu1 }
 0x6a2   : > { %v7210_v4 = vpop.f32.mrb[19].mxu1  ;;  %v1839_v5 = vadd.f32 %v1838_v3, %v8062_v27 }
 0x6a4   : > { %v1926_v7 = vsel %vm294_vm2, %v1839_v5, -inf }
 0x6a5   : > { %1930 = vmax.xlane.f32.xlu0 %v1929_v6 }
 0x6a9   : > { %1927 = vmax.xlane.f32.xlu0 %v1926_v7 }
 0x6bf   : > { %2040 = vrot.lane.b32.xlu0 %v8022_v17, %s7905_s4 }
 0x704   : > { %v1925_v8 = vpop.xlane.xlu1 %1924 }
 0x705   : > { %v1933_v9 = vsub.f32 %v1761_v55, %v1925_v8 }
 0x707   : > { %v1938_v11 = vmul.f32 1.442695, %v1933_v9 }
 0x708   : > { %v1965_v12 = vpop.permute.xlu1 %1964 }
 0x709   : > { %7682 = vpow2.f32 %v1938_v11  ;;  %7217 = vmatpush3.msra.mxu1 %v1965_v12 }
 0x70a   : > { %7226 = vmatprep.subr.mxu1 %v7895_v10 }
 0x70c   : > { %v2117_v43 = vpop.permute.xlu1 %2116 }
 0x710   : > { %v2193_v46 = vpop.permute.xlu1 %2192 }
 0x713   : > { %v7683_v13 = vpop.eup %7682 }
 0x714   : > { %v1947_v15 = vsel %vm294_vm2, %v7683_v13, 0.0  ;;  %v2349_v47 = vpop.permute.xlu1 %2348 }
 0x715   : > { %1948 = vadd.xlane.f32.xlu0 %v1947_v15 }
 0x72b   : > { %2270 = vrot.lane.b32.xlu0 %v8018_v14, %s7906_s5 }
 0x72e   : > { %v1922_v16 = vpop.xlane.xlu0 %1921 }
 0x72f   : > { %v1932_v20 = vsub.f32 %v1683_v63, %v1922_v16 }
 0x731   : > { %v1936_v21 = vmul.f32 1.442695, %v1932_v20 }
 0x732   : > { %v1931_v22 = vpop.xlane.xlu0 %1930 }
 0x733   : > { %7684 = vpow2.f32 %v1936_v21  ;;  %v1935_v23 = vsub.f32 %v1917_v1, %v1931_v22 }
 0x735   : > { %v1942_v29 = vmul.f32 1.442695, %v1935_v23 }
 0x736   : > { %v1928_v26 = vpop.xlane.xlu0 %1927 }
 0x737   : > { %v1934_v28 = vsub.f32 %v1839_v5, %v1928_v26 }
 0x739   : > { %v1940_v30 = vmul.f32 1.442695, %v1934_v28 }
 0x73a   : > { %v2041_v31 = vpop.permute.xlu0 %2040 }
 0x73b   : > { %7686 = vpow2.f32 %v1940_v30  ;;  %7222 = vmatpush3.msra.mxu0 %v2041_v31 }
 0x73c   : > { %7688 = vpow2.f32 %v1942_v29  ;;  %7231 = vmatprep.subr.mxu0 %v7895_v10 }
 0x73d   : > { %v7685_v33 = vpop.eup %7684 }
 0x73e   : > { %v1944_v35 = vsel %vm294_vm2, %v7685_v33, 0.0 }
 0x73f   : > { %1945 = vadd.xlane.f32.xlu1 %v1944_v35 }
 0x745   : > { %v7687_v37 = vpop.eup %7686 }
 0x746   : > { %v7689_v39 = vpop.eup %7688  ;;  %v1950_v40 = vsel %vm294_vm2, %v7687_v37, 0.0 }
 0x747   : > { %1951 = vadd.xlane.f32.xlu1 %v1950_v40  ;;  %v1953_v41 = vsel %vm294_vm2, %v7689_v39, 0.0 }
 0x74a   : > { %1954 = vadd.xlane.f32.xlu0 %v1953_v41 }
 0x758   : > { %2346 = vrot.lane.b32.xlu1 %v8022_v17, %s7907_s6 }
 0x75c   : > { %2504 = vrot.lane.b32.xlu1 %v8026_v19, %s7906_s5 }
 0x760   : > { %2268 = vrot.lane.b32.xlu0 %v8018_v14, %s7907_s6  ;;  %2502 = vrot.lane.b32.xlu1 %v8026_v19, %s7907_s6 }
 0x764   : > { %2426 = vrot.lane.b32.xlu0 %v8024_v18, %s7906_s5 }
 0x768   : > { %2424 = vrot.lane.b32.xlu0 %v8024_v18, %s7907_s6 }
 0x7a2   : > { %v1949_v42 = vpop.xlane.xlu0 %1948 }
 0x7a3   : > { %7690 = vrcp.f32 %v1949_v42 }
 0x7a6   : > { %v2271_v51 = vpop.permute.xlu0 %2270 }
 0x7ad   : > { %v7691_v44 = vpop.eup %7690 }
 0x7ae   : > { %v1961_v45 = vmul.f32 %v7691_v44, %v7683_v13 }
 0x7b0   : > { %7224 = vmatmul.mubr.msk.f32.vlgmr.msra.gmra.mrb[24].mxu0 %vm294_vm2, %v1961_v45 }
 0x7b1   : > { %7232 = vmatpush3.msra.mxu0 %v2193_v46  ;;  %7233 = vmatprep.mubr.msk.f32.mxu0 %vm7896_vm1, %v7895_v10 }
 0x7b2   : > { %7241 = vmatprep.subr.mxu0 %v7895_v10 }
 0x7cc   : > { %v1946_v49 = vpop.xlane.xlu1 %1945 }
 0x7cd   : > { %7692 = vrcp.f32 %v1946_v49 }
 0x7d4   : > { %v1952_v53 = vpop.xlane.xlu1 %1951 }
 0x7d5   : > { %7694 = vrcp.f32 %v1952_v53 }
 0x7d7   : > { %v7693_v54 = vpop.eup %7692  ;;  %v1955_v55 = vpop.xlane.xlu0 %1954 }
 0x7d8   : > { %7696 = vrcp.f32 %v1955_v55  ;;  %v1960_v56 = vmul.f32 %v7693_v54, %v7685_v33  ;;  %v2347_v59 = vpop.permute.xlu1 %2346 }
 0x7da   : > { %7219 = vmatmul.mubr.msk.f32.vlgmr.msra.gmra.mrb[20].mxu1 %vm294_vm2, %v1960_v56 }
 0x7db   : > { %7227 = vmatpush3.msra.mxu1 %v2117_v43  ;;  %7228 = vmatprep.mubr.msk.f32.mxu1 %vm7896_vm1, %v7895_v10  ;;  %v2269_v57 = vpop.permute.xlu0 %2268 }
 0x7dc   : > { %7236 = vmatprep.subr.mxu1 %v7895_v10  ;;  %v2505_v1 = vpop.permute.xlu1 %2504 }
 0x7df   : > { %v7695_v58 = vpop.eup %7694  ;;  %v2427_v63 = vpop.permute.xlu0 %2426 }
 0x7e0   : > { %v1962_v61 = vmul.f32 %v7695_v58, %v7687_v37  ;;  %v2503_v3 = vpop.permute.xlu1 %2502 }
 0x7e2   : > { %v7697_v62 = vpop.eup %7696  ;;  %7229 = vmatmul.mubr.msk.f32.vlgmr.msra.gmra.mrb[22].mxu1 %vm294_vm2, %v1962_v61 }
 0x7e3   : > { %7237 = vmatpush3.xpose.msk.msra.mxu1 %vm294_vm2, %v2271_v51  ;;  %v1963_v0 = vmul.f32 %v7697_v62, %v7689_v39  ;;  %7238 = vmatprep.mubr.msk.f32.mxu1 %vm7896_vm1, %v7895_v10  ;;  %v2425_v2 = vpop.permute.xlu0 %2424 }
 0x7e4   : > { %7246 = vmatprep.subr.mxu1 %v7895_v10 }
 0x7e5   : > { %7234 = vmatmul.mubr.msk.f32.vlgmr.msra.gmra.mrb[26].mxu0 %vm294_vm2, %v1963_v0 }
 0x7e6   : > { %7242 = vmatpush3.xpose.msk.msra.mxu0 %vm294_vm2, %v2349_v47  ;;  %7239 = vmatmul.mubr.msk.f32.vlgmr.msra.gmra.mrb[24].mxu1 %vm294_vm2, %v2269_v57 }
 0x7e7   : > { %7247 = vmatpush3.xpose.msk.msra.mxu1 %vm294_vm2, %v2427_v63  ;;  %7243 = vmatprep.mubr.msk.f32.mxu0 %vm7896_vm1, %v7895_v10 }
 0x7e8   : > { %7251 = vmatprep.subr.mxu0 %v7895_v10  ;;  %7248 = vmatprep.mubr.msk.f32.mxu1 %vm7896_vm1, %v7895_v10 }
 0x7e9   : > { %7244 = vmatmul.mubr.msk.f32.vlgmr.msra.gmra.mrb[28].mxu0 %vm294_vm2, %v2347_v59  ;;  %7256 = vmatprep.subr.mxu1 %v7895_v10 }
 0x7ea   : > { %7252 = vmatpush3.xpose.msk.msra.mxu0 %vm294_vm2, %v2505_v1  ;;  %7249 = vmatmul.mubr.msk.f32.vlgmr.msra.gmra.mrb[26].mxu1 %vm294_vm2, %v2425_v2 }
 0x7eb   : > { %7253 = vmatprep.mubr.msk.f32.mxu0 %vm7896_vm1, %v7895_v10  ;;  %7261 = vmatprep.subr.mxu0 %v7895_v10 }
 0x7ec   : > { %7258 = vmatprep.mubr.msk.f32.mxu1 %vm7896_vm1, %v7895_v10 }
 0x7ed   : > { %7254 = vmatmul.mubr.msk.f32.vlgmr.msra.gmra.mrb[30].mxu0 %vm294_vm2, %v2503_v3 }
 0x7ee   : > { %7263 = vmatprep.mubr.msk.f32.mxu0 %vm7896_vm1, %v7895_v10 }
 0x883   : > { %v8284_v4 = vpop.f32.mrb[24].mxu0 }
 0x884   : > { %v7225_v5 = vpop.f32.mrb[25].mxu0 }
 0x8ad   : > { %v2036_v6 = vpop.f32.mrb[20].mxu1 }
 0x8ae   : > { %v7220_v7 = vpop.f32.mrb[21].mxu1 }
 0x8b5   : > { %v8286_v8 = vpop.f32.mrb[22].mxu1 }
 0x8b6   : > { %v7230_v9 = vpop.f32.mrb[23].mxu1 }
 0x8b8   : > { %v8288_v11 = vpop.f32.mrb[26].mxu0 }
 0x8b9   : > { %v7235_v12 = vpop.f32.mrb[27].mxu0  ;;  %v2342_v13 = vpop.f32.mrb[24].mxu1 }
 0x8ba   : > { %v2343_v15 = vadd.f32 %v2342_v13, %v8062_v27  ;;  %v7240_v16 = vpop.f32.mrb[25].mxu1  ;;  %v2990_v12 = vld [vmem:[%s8990_s2 + $0x28] sm:$0xff]  ;;  %v2991_v13 = vld [vmem:[%s8990_s2 + $0x30] sm:$0xff] }
 0x8bb   : > { %v7536_v16 = vpack.c.bf16 %v2991_v13, %v2990_v12 }
 0x8bc   : > { %v2420_v20 = vpop.f32.mrb[28].mxu0  ;;  %v2580_v21 = vsel %vm294_vm2, %v2343_v15, -inf }
 0x8bd   : > { %v2421_v22 = vadd.f32 %v2420_v20, %v8062_v27  ;;  %v7245_v23 = vpop.f32.mrb[29].mxu0  ;;  %2581 = vmax.xlane.f32.xlu0 %v2580_v21  ;;  %v2498_v26 = vpop.f32.mrb[26].mxu1  ;;  %v2993_v20 = vld [vmem:[%s8990_s2 + $0x40] sm:$0xff] }
 0x8be   : > { %v2499_v28 = vadd.f32 %v2498_v26, %v8062_v27  ;;  %v7250_v29 = vpop.f32.mrb[27].mxu1 }
 0x8bf   : > { %v2583_v30 = vsel %vm294_vm2, %v2421_v22, -inf }
 0x8c0   : > { %2584 = vmax.xlane.f32.xlu1 %v2583_v30  ;;  %v2576_v31 = vpop.f32.mrb[30].mxu0  ;;  %v2586_v33 = vsel %vm294_vm2, %v2499_v28, -inf }
 0x8c1   : > { %v2577_v35 = vadd.f32 %v2576_v31, %v8062_v27  ;;  %v7255_v37 = vpop.f32.mrb[31].mxu0  ;;  %2587 = vmax.xlane.f32.xlu0 %v2586_v33 }
 0x8c3   : > { %v2589_v39 = vsel %vm294_vm2, %v2577_v35, -inf }
 0x8c5   : > { %2590 = vmax.xlane.f32.xlu0 %v2589_v39 }
 0x8d1   : > { %2624 = vrot.lane.b32.xlu1 %v8018_v14, %s7908_s7 }
 0x94a   : > { %v2582_v40 = vpop.xlane.xlu0 %2581 }
 0x94b   : > { %v2592_v41 = vsub.f32 %v2343_v15, %v2582_v40  ;;  %v2992_v15 = vld [vmem:[%s8990_s2 + $0x38] sm:$0xff] }
 0x94c   : > { %v7540_v21 = vpack.c.bf16 %v2993_v20, %v2992_v15 }
 0x94d   : > { %v2596_v42 = vmul.f32 1.442695, %v2592_v41  ;;  %v2585_v43 = vpop.xlane.xlu1 %2584 }
 0x94e   : > { %v2593_v44 = vsub.f32 %v2421_v22, %v2585_v43  ;;  %v2588_v45 = vpop.xlane.xlu0 %2587 }
 0x94f   : > { %7698 = vpow2.f32 %v2596_v42  ;;  %v2594_v58 = vsub.f32 %v2499_v28, %v2588_v45 }
 0x950   : > { %v2598_v46 = vmul.f32 1.442695, %v2593_v44 }
 0x951   : > { %v2625_v47 = vpop.permute.xlu1 %2624  ;;  %v2600_v59 = vmul.f32 1.442695, %v2594_v58 }
 0x952   : > { %7700 = vpow2.f32 %v2598_v46  ;;  %7257 = vmatpush3.msra.mxu1 %v2625_v47  ;;  %v2591_v27 = vpop.xlane.xlu0 %2590 }
 0x953   : > { %v2595_v49 = vsub.f32 %v2577_v35, %v2591_v27  ;;  %7266 = vmatprep.subr.mxu1 %v7895_v10 }
 0x955   : > { %v2602_v51 = vmul.f32 1.442695, %v2595_v49 }
 0x957   : > { %7702 = vpow2.f32 %v2602_v51 }
 0x958   : > { %7704 = vpow2.f32 %v2600_v59  ;;  %v7826_v59 = vld [vmem:[%s8988_s0 + $0x8] sm:$0xff] }
 0x959   : > { %v7699_v53 = vpop.eup %7698 }
 0x95a   : > { %v2604_v14 = vsel %vm294_vm2, %v7699_v53, 0.0 }
 0x95b   : > { %2605 = vadd.xlane.f32.xlu1 %v2604_v14 }
 0x95c   : > { %v7701_v54 = vpop.eup %7700 }
 0x95d   : > { %v2607_v55 = vsel %vm294_vm2, %v7701_v54, 0.0 }
 0x95e   : > { %2608 = vadd.xlane.f32.xlu0 %v2607_v55 }
 0x961   : > { %v7703_v56 = vpop.eup %7702 }
 0x962   : > { %v2613_v57 = vsel %vm294_vm2, %v7703_v56, 0.0  ;;  %v7705_v61 = vpop.eup %7704 }
 0x963   : > { %2614 = vadd.xlane.f32.xlu0 %v2613_v57  ;;  %v2610_v62 = vsel %vm294_vm2, %v7705_v61, 0.0 }
 0x96c   : > { %2776 = vrot.lane.b32.xlu1 %v8024_v18, %s7908_s7 }
 0x979   : > { %2700 = vrot.lane.b32.xlu0 %v8022_v17, %s7908_s7 }
 0x97d   : > { %2932 = vrot.lane.b32.xlu0 %v8208_v48, %s8996_s8 }
 0x981   : > { %2948 = vrot.lane.b32.xlu0 %v2036_v6, %s8994_s9 }
 0x990   : > { %2611 = vadd.xlane.f32.xlu1 %v2610_v62  ;;  %v7827_v62 = vld [vmem:[%s8988_s0] sm:$0xff] }
 0x9a1   : > { %2852 = vrot.lane.b32.xlu1 %v8026_v19, %s7908_s7  ;;  %s8992_s7 = smov 24  }
 0x9a5   : > { %2934 = vrot.lane.b32.xlu1 %v8210_v50, %s8996_s8 }
 0x9a9   : > { %2950 = vrot.lane.b32.xlu1 %v8284_v4, %s8994_s9 }
 0x9e8   : > { %v2606_v17 = vpop.xlane.xlu1 %2605 }
 0x9e9   : > { %7706 = vrcp.f32 %v2606_v17 }
 0x9eb   : > { %v2609_v18 = vpop.xlane.xlu0 %2608 }
 0x9ec   : > { %7708 = vrcp.f32 %v2609_v18  ;;  %v2777_v3 = vpop.permute.xlu1 %2776 }
 0x9f0   : > { %v2615_v48 = vpop.xlane.xlu0 %2614 }
 0x9f1   : > { %7710 = vrcp.f32 %v2615_v48 }
 0x9f3   : > { %v7707_v63 = vpop.eup %7706 }
 0x9f4   : > { %v2701_v0 = vpop.permute.xlu0 %2700  ;;  %v2620_v1 = vmul.f32 %v7707_v63, %v7699_v53 }
 0x9f5   : > { %7262 = vmatpush3.msra.mxu0 %v2701_v0 }
 0x9f6   : > { %v7709_v2 = vpop.eup %7708  ;;  %7259 = vmatmul.mubr.msk.f32.vlgmr.msra.gmra.mrb[28].mxu1 %vm294_vm2, %v2620_v1  ;;  %7271 = vmatprep.subr.mxu0 %v7895_v10 }
 0x9f7   : > { %7267 = vmatpush3.msra.mxu1 %v2777_v3  ;;  %v2621_v19 = vmul.f32 %v7709_v2, %v7701_v54  ;;  %7268 = vmatprep.mubr.msk.f32.mxu1 %vm7896_vm1, %v7895_v10  ;;  %v7828_v3 = vld [vmem:[%s8988_s0 + $0x10] sm:$0xff] }
 0x9f8   : > { %7537 = vmatprep.subr.bf16.mxu1 %v7536_v16  ;;  %v2933_v35 = vpop.permute.xlu0 %2932 }
 0x9f9   : > { %7264 = vmatmul.mubr.msk.f32.vlgmr.msra.gmra.mrb[32].mxu0 %vm294_vm2, %v2621_v19 }
 0x9fa   : > { %7273 = vmatprep.mubr.msk.f32.mxu0 %vm7896_vm1, %v7895_v10 }
 0x9fb   : > { %v7711_v4 = vpop.eup %7710 }
 0x9fc   : > { %v2623_v6 = vmul.f32 %v7711_v4, %v7703_v56  ;;  %v7829_v4 = vld [vmem:[%s8988_s0 + $0x18] sm:$0xff] }
 0xa1d   : > { %v2612_v50 = vpop.xlane.xlu1 %2611 }
 0xa1e   : > { %7712 = vrcp.f32 %v2612_v50 }
 0xa21   : > { %v2853_v5 = vpop.permute.xlu1 %2852 }
 0xa22   : > { %7272 = vmatpush3.msra.mxu0 %v2853_v5 }
 0xa23   : > { %7274 = vmatmul.mubr.msk.f32.vlgmr.msra.gmra.mrb[34].mxu0 %vm294_vm2, %v2623_v6 }
 0xa25   : > { %v2935_v37 = vpop.permute.xlu1 %2934 }
 0xa26   : > { %v2977_v41 = vsel %vm294_vm2, %v8134_v34, %v2935_v37  ;;  %v3278_v37 = vld [vmem:[%s8990_s2 + $0x90] sm:$0xff] }
 0xa28   : > { %v7713_v7 = vpop.eup %7712 }
 0xa29   : > { %v2622_v9 = vmul.f32 %v7713_v7, %v7705_v61 }
 0xa2b   : > { %7269 = vmatmul.mubr.msk.f32.vlgmr.msra.gmra.mrb[30].mxu1 %vm294_vm2, %v2622_v9 }
 0xa2c   : > { %7539 = vmatpush3.bf16.msra.mxu1 %v7536_v16 }
 0xa2d   : > { %7541 = vmatprep.subr.bf16.mxu1 %v7540_v21 }
 0xa30   : > { %7543 = vmatpush3.bf16.msra.mxu1 %v7540_v21 }
 0xac9   : > { %v2696_v22 = vpop.f32.mrb[28].mxu1 }
 0xaca   : > { %v7260_v23 = vpop.f32.mrb[29].mxu1  ;;  %2964 = vrot.lane.b32.xlu0 %v2696_v22, %s8992_s7 }
 0xacc   : > { %v2772_v26 = vpop.f32.mrb[32].mxu0 }
 0xacd   : > { %2966 = vrot.lane.b32.xlu1 %v2772_v26, %s8992_s7  ;;  %v7265_v28 = vpop.f32.mrb[33].mxu0  ;;  %v3275_v26 = vld [vmem:[%s8990_s2 + $0x78] sm:$0xff] }
 0xace   : > { %2936 = vrot.lane.b32.xlu0 %v8221_v60, %s8996_s8  ;;  %v2949_v60 = vpop.permute.xlu0 %2948  ;;  %v3276_v28 = vld [vmem:[%s8990_s2 + $0x80] sm:$0xff] }
 0xad1   : > { %2938 = vrot.lane.b32.xlu1 %v8212_v52, %s8996_s8  ;;  %v2976_v52 = vsel %vm294_vm2, %v8132_v32, %v2933_v35  ;;  %v3277_v35 = vld [vmem:[%s8990_s2 + $0x88] sm:$0xff]  ;;  %s6911_s8 = sshll.u32 %s7954_s16, 6 }
 0xad2   : > { %2952 = vrot.lane.b32.xlu0 %v8286_v8, %s8994_s9  ;;  %v2951_v8 = vpop.permute.xlu1 %2950  ;;  %v2981_v39 = vsel %vm2980_vm4, %v2976_v52, %v2949_v60  ;;  %v7556_v60 = vpack.c.bf16 %v3278_v37, %v3277_v35  ;;  %v3171_v52 = vld [vmem:[%s8990_s2 + $0x60] sm:$0xff]  ;;  %v6833_v37 = vld [vmem:[%s8990_s2 + $0x70] ss:$0 sm:$0xff]  ;;  %s8946_s4 = scalar_lea.hbm %s8991_s3, %s6911_s8 }
 0xad3   : > { %v2982_v42 = vsel %vm2980_vm4, %v2977_v41, %v2951_v8  ;;  %v3172_v8 = vld [vmem:[%s8990_s2 + $0x68] sm:$0xff] }
 0xad5   : > { %2954 = vrot.lane.b32.xlu1 %v8288_v11, %s8994_s9 }
 0xaf6   : > { %v2924_v29 = vpop.f32.mrb[34].mxu0 }
 0xaf7   : > { %2970 = vrot.lane.b32.xlu1 %v2924_v29, %s8992_s7  ;;  %v7275_v30 = vpop.f32.mrb[35].mxu0  ;;  %v7552_v29 = vpack.c.bf16 %v3276_v28, %v3275_v26 }
 0xaf8   : > { %v3169_v30 = vld [vmem:[%s8990_s2 + $0x50] sm:$0xff] }
 0xaf9   : > { %7553 = vmatprep.subr.bf16.mxu1 %v7552_v29 }
 0xafe   : > { %v2848_v31 = vpop.f32.mrb[30].mxu1 }
 0xaff   : > { %v7270_v33 = vpop.f32.mrb[31].mxu1  ;;  %2968 = vrot.lane.b32.xlu0 %v2848_v31, %s8992_s7  ;;  %v3170_v31 = vld [vmem:[%s8990_s2 + $0x58] sm:$0xff]  ;;  %s6774_s7 = sshll.u32 %s9008_s28, 3 }
 0xb00   : > { %v7544_v33 = vpack.c.bf16 %v3170_v31, %v3169_v30  ;;  %s169_s19 = scalar_lea.vmem %s8989_s1, %s6774_s7 }
 0xb02   : > { %7545 = vmatprep.subr.bf16.mxu0 %v7544_v33 }
 0xb03   : > { %7547 = vmatpush3.bf16.msra.mxu0 %v7544_v33 }
 0xb3c   : > { %v2965_v11 = vpop.permute.xlu0 %2964 }
 0xb3d   : > { %v2986_v40 = vsel %vm2985_vm5, %v2981_v39, %v2965_v11  ;;  %v7548_v39 = vpack.c.bf16 %v3172_v8, %v3171_v52  ;;  %v175_v11 = vld [vmem:[%s169_s19] sm:$0xff] }
 0xb3e   : > { %7284 = vmatprep.mubr.msk.f32.mxu1 %vm193_vm0, %v2986_v40  ;;  %v176_v40 = vld [vmem:[%s169_s19 + $0x8] sm:$0xff] }
 0xb3f   : > { %v2967_v43 = vpop.permute.xlu1 %2966  ;;  %7549 = vmatprep.subr.bf16.mxu0 %v7548_v39 }
 0xb40   : > { %v2987_v44 = vsel %vm2985_vm5, %v2982_v42, %v2967_v43  ;;  %v2937_v32 = vpop.permute.xlu0 %2936  ;;  %7551 = vmatpush3.bf16.msra.mxu0 %v7548_v39 }
 0xb41   : > { %7285 = vmatmul.mubr.msk.f32.vlgmr.msra.gmra.mrb[32].mxu1 %vm193_vm0, %v2987_v44  ;;  %v2978_v27 = vsel %vm294_vm2, %v8136_v36, %v2937_v32  ;;  %v6828_v36 = vld [vmem:[%s8990_s2 + $0x48] ss:$0 sm:$0xff]  ;;  %7318 = vmatprep.subr.mxu0 %v7895_v10 }
 0xb42   : > { %7555 = vmatpush3.bf16.msra.mxu1 %v7552_v29 }
 0xb43   : > { %v2939_v45 = vpop.permute.xlu1 %2938  ;;  %7557 = vmatprep.subr.bf16.mxu1 %v7556_v60 }
 0xb44   : > { %v2953_v47 = vpop.permute.xlu0 %2952  ;;  %v2979_v34 = vsel %vm294_vm2, %v8138_v38, %v2939_v45 }
 0xb45   : > { %v2983_v51 = vsel %vm2980_vm4, %v2978_v27, %v2953_v47 }
 0xb46   : > { %7559 = vmatpush3.bf16.msra.mxu1 %v7556_v60 }
 0xb47   : > { %v2955_v46 = vpop.permute.xlu1 %2954  ;;  %7328 = vmatprep.subr.mxu1 %v7895_v10 }
 0xb48   : > { %v2984_v14 = vsel %vm2980_vm4, %v2979_v34, %v2955_v46  ;;  %v177_v34 = vld [vmem:[%s169_s19 + $0x10] sm:$0xff] }
 0xb69   : > { %v2971_v49 = vpop.permute.xlu1 %2970 }
 0xb6a   : > { %v2989_v55 = vsel %vm2985_vm5, %v2984_v14, %v2971_v49 }
 0xb71   : > { %v2969_v53 = vpop.permute.xlu0 %2968 }
 0xb72   : > { %v2988_v54 = vsel %vm2985_vm5, %v2983_v51, %v2969_v53  ;;  %v178_v51 = vld [vmem:[%s169_s19 + $0x18] sm:$0xff] }
 0xb73   : > { %7287 = vmatprep.mubr.msk.f32.mxu1 %vm193_vm0, %v2988_v54 }
 0xb74   : > { %7288 = vmatmul.mubr.msk.f32.gmra.mrb[34].mxu1 %vm193_vm0, %v2989_v55 }
 0xb75   : > { %7312 = vmatprep.mubr.msk.f32.mxu1 %vm193_vm0, %v175_v11 }
 0xb78   : > { %7313 = vmatmul.mubr.msk.f32.vlgmr.msra.gmra.mrb[36].mxu1 %vm193_vm0, %v176_v40 }
 0xb79   : > { %7315 = vmatprep.mubr.msk.f32.mxu1 %vm193_vm0, %v177_v34 }
 0xb7c   : > { %7316 = vmatmul.mubr.msk.f32.gmra.mrb[38].mxu1 %vm193_vm0, %v178_v51 }
 0xb7d   : > { %7330 = vmatprep.mubr.msk.f32.mxu1 %vm7896_vm1, %v7895_v10 }
 0xc14   : > { %v7286_v56 = vpop.f32.mrb[32].mxu1 }
 0xc15   : > { %v3083_v57 = vadd.f32 %v7286_v56, %v6828_v36  ;;  %v3077_v38 = vpop.f32.mrb[33].mxu1 }
 0xc16   : > { %v3078_v58 = vadd.f32 %v6828_v36, %v3077_v38 }
 0xc17   : > { %v3097_v61 = vadd.f32 %v7826_v59, %v3083_v57  ;;  %v8439_v57 = vshrl.u32 %v179_v24, 7 }
 0xc18   : > { %v3096_v17 = vadd.f32 %v7827_v62, %v3078_v58  ;;  %v183_v58 = vld [vmem:[%s8990_s2 + $0xc8] sm:$0x3f] }
 0xc19   : > { %v3103_v18 = vsel %vm193_vm0, %v3097_v61, 0.0  ;;  %v3155_v38 = vsub.s32 0, %v8439_v57  ;;  %v3163_v59 = vsub.s32 1, %v8439_v57 }
 0xc1a   : > { %3104 = vadd.xlane.f32.xlu1 %v3103_v18  ;;  %v3100_v48 = vsel %vm193_vm0, %v3096_v17, 0.0 }
 0xc1b   : > { %3101 = vadd.xlane.f32.xlu0 %v3100_v48  ;;  %v3164_v24 = vrot.slane %v183_v58, %v3163_v59 }
 0xc47   : > { %v7289_v63 = vpop.f32.mrb[34].mxu1 }
 0xc48   : > { %v3087_v0 = vpop.f32.mrb[35].mxu1  ;;  %v3093_v1 = vadd.f32 %v7289_v63, %v6828_v36 }
 0xc49   : > { %v3088_v2 = vadd.f32 %v6828_v36, %v3087_v0 }
 0xc4a   : > { %v3099_v5 = vadd.f32 %v7829_v4, %v3093_v1 }
 0xc4b   : > { %v3098_v19 = vadd.f32 %v7828_v3, %v3088_v2 }
 0xc4c   : > { %v3109_v6 = vsel %vm193_vm0, %v3099_v5, 0.0 }
 0xc4d   : > { %v3106_v50 = vsel %vm193_vm0, %v3098_v19, 0.0 }
 0xc4e   : > { %3107 = vadd.xlane.f32.xlu0 %v3106_v50 }
 0xc52   : > { %3110 = vadd.xlane.f32.xlu0 %v3109_v6 }
 0xca7   : > { %v3105_v7 = vpop.xlane.xlu1 %3104 }
 0xca8   : > { %v3114_v9 = vmul.f32 0.03125, %v3105_v7  ;;  %v3102_v12 = vpop.xlane.xlu0 %3101 }
 0xca9   : > { %v3113_v13 = vmul.f32 0.03125, %v3102_v12 }
 0xcaa   : > { %v8390_v15 = vsub.f32 %v3097_v61, %v3114_v9  ;;  %v3156_v61 = vrot.slane %v183_v58, %v3155_v38 }
 0xcab   : > { %v8392_v16 = vsub.f32 %v3096_v17, %v3113_v13 }
 0xcac   : > { %v3122_v20 = vmul.f32 %v8390_v15, %v8390_v15 }
 0xcad   : > { %v3121_v21 = vmul.f32 %v8392_v16, %v8392_v16 }
 0xcae   : > { %v3128_v22 = vsel %vm193_vm0, %v3122_v20, 0.0 }
 0xcaf   : > { %3129 = vadd.xlane.f32.xlu0 %v3128_v22  ;;  %v3125_v23 = vsel %vm193_vm0, %v3121_v21, 0.0  ;;  %v6838_v22 = vld [vmem:[%s8990_s2 + $0x98] ss:$0 sm:$0xff] }
 0xcb0   : > { %3126 = vadd.xlane.f32.xlu1 %v3125_v23  ;;  %v7314_v23 = vpop.f32.mrb[36].mxu1 }
 0xcb1   : > { %v8473_v26 = vadd.f32 %v7314_v23, %v6838_v22  ;;  %v3362_v28 = vpop.f32.mrb[37].mxu1 }
 0xcb2   : > { %v8475_v29 = vadd.f32 %v6838_v22, %v3362_v28  ;;  %v7317_v30 = vpop.f32.mrb[38].mxu1 }
 0xcb3   : > { %v8480_v31 = vadd.f32 %v7317_v30, %v6838_v22  ;;  %v3372_v33 = vpop.f32.mrb[39].mxu1 }
 0xcb4   : > { %v8482_v35 = vadd.f32 %v6838_v22, %v3372_v33 }
 0xcb6   : > { %7329 = vmatpush3.xpose.msk.msra.mxu1 %vm294_vm2, %v8482_v35 }
 0xcb7   : > { %7338 = vmatprep.subr.mxu1 %v7895_v10 }
 0xcdb   : > { %v3108_v41 = vpop.xlane.xlu0 %3107 }
 0xcdc   : > { %v3115_v42 = vmul.f32 0.03125, %v3108_v41 }
 0xcde   : > { %v3119_v43 = vsub.f32 %v3098_v19, %v3115_v42 }
 0xcdf   : > { %v3111_v44 = vpop.xlane.xlu0 %3110 }
 0xce0   : > { %v3116_v45 = vmul.f32 0.03125, %v3111_v44  ;;  %v3123_v32 = vmul.f32 %v3119_v43, %v3119_v43 }
 0xce2   : > { %v3120_v46 = vsub.f32 %v3099_v5, %v3116_v45  ;;  %v3131_v47 = vsel %vm193_vm0, %v3123_v32, 0.0 }
 0xce3   : > { %3132 = vadd.xlane.f32.xlu1 %v3131_v47 }
 0xce4   : > { %v3124_v27 = vmul.f32 %v3120_v46, %v3120_v46 }
 0xce6   : > { %v3134_v49 = vsel %vm193_vm0, %v3124_v27, 0.0 }
 0xce7   : > { %3135 = vadd.xlane.f32.xlu0 %v3134_v49 }
 0xd3c   : > { %v3130_v53 = vpop.xlane.xlu0 %3129 }
 0xd3d   : > { %v3138_v14 = vmul.f32 0.03125, %v3130_v53  ;;  %v3127_v54 = vpop.xlane.xlu1 %3126 }
 0xd3e   : > { %v3137_v55 = vmul.f32 0.03125, %v3127_v54 }
 0xd3f   : > { %v3142_v36 = vadd.f32 1e-05, %v3138_v14 }
 0xd40   : > { %v3141_v56 = vadd.f32 1e-05, %v3137_v55 }
 0xd41   : > { %7714 = vrsqrt.f32 %v3142_v36 }
 0xd42   : > { %7716 = vrsqrt.f32 %v3141_v56 }
 0xd4b   : > { %v7715_v62 = vpop.eup %7714 }
 0xd4c   : > { %v7717_v17 = vpop.eup %7716  ;;  %v3150_v18 = vmul.f32 %v7715_v62, %v8390_v15 }
 0xd4d   : > { %v3149_v48 = vmul.f32 %v7717_v17, %v8392_v16 }
 0xd4e   : > { %v3158_v63 = vmul.f32 %v3156_v61, %v3150_v18 }
 0xd4f   : > { %v3157_v0 = vmul.f32 %v3156_v61, %v3149_v48 }
 0xd50   : > { %v8454_v2 = vadd.f32 %v3164_v24, %v3158_v63 }
 0xd51   : > { %v8452_v1 = vadd.f32 %v3164_v24, %v3157_v0 }
 0xd53   : > { %7298 = vmatprep.mubr.msk.f32.mxu0 %vm193_vm0, %v8452_v1 }
 0xd54   : > { %7299 = vmatmul.mubr.msk.f32.vlgmr.msra.gmra.mrb[36].mxu0 %vm193_vm0, %v8454_v2 }
 0xd55   : > { %7319 = vmatpush3.xpose.msk.msra.mxu0 %vm294_vm2, %v8475_v29 }
 0xd56   : > { %7323 = vmatprep.subr.mxu0 %v7895_v10 }
 0xd70   : > { %v3133_v3 = vpop.xlane.xlu1 %3132 }
 0xd71   : > { %v3139_v19 = vmul.f32 0.03125, %v3133_v3 }
 0xd73   : > { %v3143_v50 = vadd.f32 1e-05, %v3139_v19 }
 0xd74   : > { %v3136_v4 = vpop.xlane.xlu0 %3135 }
 0xd75   : > { %7718 = vrsqrt.f32 %v3143_v50  ;;  %v3140_v5 = vmul.f32 0.03125, %v3136_v4 }
 0xd77   : > { %v3144_v6 = vadd.f32 1e-05, %v3140_v5 }
 0xd79   : > { %7720 = vrsqrt.f32 %v3144_v6 }
 0xd7f   : > { %v7719_v7 = vpop.eup %7718 }
 0xd80   : > { %v3151_v9 = vmul.f32 %v7719_v7, %v3119_v43 }
 0xd82   : > { %v3159_v12 = vmul.f32 %v3156_v61, %v3151_v9 }
 0xd83   : > { %v7721_v13 = vpop.eup %7720 }
 0xd84   : > { %v8460_v15 = vadd.f32 %v3164_v24, %v3159_v12  ;;  %v3152_v16 = vmul.f32 %v7721_v13, %v3120_v46 }
 0xd86   : > { %7301 = vmatprep.mubr.msk.f32.mxu0 %vm193_vm0, %v8460_v15  ;;  %v3160_v20 = vmul.f32 %v3156_v61, %v3152_v16 }
 0xd88   : > { %v8464_v21 = vadd.f32 %v3164_v24, %v3160_v20 }
 0xd8a   : > { %7302 = vmatmul.mubr.msk.f32.gmra.mrb[38].mxu0 %vm193_vm0, %v8464_v21 }
 0xd8b   : > { %7320 = vmatprep.mubr.msk.f32.mxu0 %vm7896_vm1, %v7895_v10 }
 0xe27   : > { %v7300_v60 = vpop.f32.mrb[36].mxu0 }
 0xe28   : > { %v3256_v52 = vpop.f32.mrb[37].mxu0  ;;  %v8498_v39 = vadd.f32 %v7300_v60, %v6833_v37 }
 0xe29   : > { %v8490_v8 = vadd.f32 %v6833_v37, %v3256_v52 }
 0xe2b   : > { %7321 = vmatmul.mubr.msk.f32.vlgmr.msra.gmra.mrb[40].mxu0 %vm294_vm2, %v8490_v8 }
 0xe2c   : > { %7324 = vmatpush3.xpose.msk.msra.mxu0 %vm294_vm2, %v8473_v26  ;;  %7325 = vmatprep.mubr.msk.f32.mxu0 %vm7896_vm1, %v7895_v10 }
 0xe2d   : > { %7333 = vmatprep.subr.mxu0 %v7895_v10 }
 0xe2f   : > { %7326 = vmatmul.mubr.msk.f32.vlgmr.msra.gmra.mrb[42].mxu0 %vm294_vm2, %v8498_v39 }
 0xe30   : > { %7334 = vmatpush3.xpose.msk.msra.mxu0 %vm294_vm2, %v8480_v31  ;;  %7335 = vmatprep.mubr.msk.f32.mxu0 %vm7896_vm1, %v7895_v10 }
 0xe31   : > { %7343 = vmatprep.subr.mxu0 %v7895_v10 }
 0xe5d   : > { %v7303_v11 = vpop.f32.mrb[38].mxu0 }
 0xe5e   : > { %v8508_v40 = vadd.f32 %v7303_v11, %v6833_v37  ;;  %v3266_v41 = vpop.f32.mrb[39].mxu0 }
 0xe5f   : > { %v8510_v42 = vadd.f32 %v6833_v37, %v3266_v41 }
 0xe60   : > { %7336 = vmatmul.mubr.msk.f32.vlgmr.msra.gmra.mrb[44].mxu0 %vm294_vm2, %v8508_v40 }
 0xe61   : > { %7331 = vmatmul.mubr.msk.f32.vlgmr.msra.gmra.mrb[40].mxu1 %vm294_vm2, %v8510_v42  ;;  %7345 = vmatprep.mubr.msk.f32.mxu0 %vm7896_vm1, %v7895_v10 }
 0xe62   : > { %7340 = vmatprep.mubr.msk.f32.mxu1 %vm7896_vm1, %v7895_v10 }
 0xefe   : > { %v3453_v43 = vpop.f32.mrb[40].mxu0 }
 0xeff   : > { %v7322_v44 = vpop.f32.mrb[41].mxu0  ;;  %v3685_v45 = vsel %vm294_vm2, %v3453_v43, -inf }
 0xf00   : > { %3686 = vmax.xlane.f32.xlu1 %v3685_v45 }
 0xf02   : > { %v3529_v32 = vpop.f32.mrb[42].mxu0 }
 0xf03   : > { %v7327_v46 = vpop.f32.mrb[43].mxu0  ;;  %v3688_v47 = vsel %vm294_vm2, %v3529_v32, -inf }
 0xf04   : > { %3689 = vmax.xlane.f32.xlu0 %v3688_v47 }
 0xf33   : > { %v3681_v27 = vpop.f32.mrb[44].mxu0 }
 0xf34   : > { %v3605_v49 = vpop.f32.mrb[40].mxu1  ;;  %v7337_v34 = vpop.f32.mrb[45].mxu0  ;;  %v3694_v51 = vsel %vm294_vm2, %v3681_v27, -inf }
 0xf35   : > { %v7332_v53 = vpop.f32.mrb[41].mxu1  ;;  %3695 = vmax.xlane.f32.xlu0 %v3694_v51  ;;  %v3691_v14 = vsel %vm294_vm2, %v3605_v49, -inf }
 0xf36   : > { %3692 = vmax.xlane.f32.xlu1 %v3691_v14 }
 0xf47   : > { %3729 = vrot.lane.b32.xlu1 %v8475_v29, %s7897_s24 }
 0xf4b   : > { %3881 = vrot.lane.b32.xlu1 %v8482_v35, %s7897_s24  ;;  %3805 = vrot.lane.b32.xlu0 %v8473_v26, %s7897_s24 }
 0xf4f   : > { %3957 = vrot.lane.b32.xlu1 %v8480_v31, %s7897_s24  ;;  %4035 = vrot.lane.b32.xlu0 %v8475_v29, %s7901_s27  ;;  %s9000_s24 = smov 8  }
 0xf53   : > { %4113 = vrot.lane.b32.xlu1 %v8473_v26, %s7901_s27 }
 0xf8d   : > { %v3687_v54 = vpop.xlane.xlu1 %3686 }
 0xf8e   : > { %v3697_v55 = vsub.f32 %v3453_v43, %v3687_v54 }
 0xf90   : > { %v3701_v36 = vmul.f32 1.442695, %v3697_v55 }
 0xf91   : > { %v3690_v56 = vpop.xlane.xlu0 %3689 }
 0xf92   : > { %7722 = vpow2.f32 %v3701_v36  ;;  %v3698_v58 = vsub.f32 %v3529_v32, %v3690_v56 }
 0xf94   : > { %v3703_v61 = vmul.f32 1.442695, %v3698_v58 }
 0xf96   : > { %7724 = vpow2.f32 %v3703_v61 }
 0xf9c   : > { %v7723_v62 = vpop.eup %7722 }
 0xf9d   : > { %v3709_v17 = vsel %vm294_vm2, %v7723_v62, 0.0 }
 0xf9e   : > { %3710 = vadd.xlane.f32.xlu1 %v3709_v17 }
 0xfa0   : > { %v7725_v18 = vpop.eup %7724 }
 0xfa1   : > { %v3712_v48 = vsel %vm294_vm2, %v7725_v18, 0.0 }
 0xfa2   : > { %3713 = vadd.xlane.f32.xlu0 %v3712_v48 }
 0xfc2   : > { %v3696_v24 = vpop.xlane.xlu0 %3695 }
 0xfc3   : > { %v3700_v63 = vsub.f32 %v3681_v27, %v3696_v24  ;;  %v3693_v0 = vpop.xlane.xlu1 %3692 }
 0xfc4   : > { %v3699_v3 = vsub.f32 %v3605_v49, %v3693_v0 }
 0xfc5   : > { %v3707_v19 = vmul.f32 1.442695, %v3700_v63 }
 0xfc6   : > { %v3705_v50 = vmul.f32 1.442695, %v3699_v3  ;;  %v3806_v4 = vpop.permute.xlu0 %3805 }
 0xfc7   : > { %7726 = vpow2.f32 %v3707_v19  ;;  %v3730_v5 = vpop.permute.xlu1 %3729  ;;  %7344 = vmatpush3.msra.mxu0 %v3806_v4 }
 0xfc8   : > { %7728 = vpow2.f32 %v3705_v50  ;;  %7339 = vmatpush3.msra.mxu1 %v3730_v5  ;;  %7353 = vmatprep.subr.mxu0 %v7895_v10 }
 0xfc9   : > { %7348 = vmatprep.subr.mxu1 %v7895_v10 }
 0xfca   : > { %v4036_v22 = vpop.permute.xlu0 %4035 }
 0xfcb   : > { %v3882_v13 = vpop.permute.xlu1 %3881 }
 0xfcf   : > { %v3958_v16 = vpop.permute.xlu1 %3957 }
 0xfd1   : > { %v7727_v6 = vpop.eup %7726 }
 0xfd2   : > { %v7729_v7 = vpop.eup %7728  ;;  %v3718_v9 = vsel %vm294_vm2, %v7727_v6, 0.0 }
 0xfd3   : > { %3719 = vadd.xlane.f32.xlu0 %v3718_v9  ;;  %v3715_v12 = vsel %vm294_vm2, %v7729_v7, 0.0  ;;  %v4114_v20 = vpop.permute.xlu1 %4113 }
 0xfd4   : > { %3716 = vadd.xlane.f32.xlu1 %v3715_v12 }
 0xfe5   : > { %4111 = vrot.lane.b32.xlu1 %v8498_v39, %s7901_s27 }
 0xfe9   : > { %4269 = vrot.lane.b32.xlu1 %v8480_v31, %s7901_s27  ;;  %4033 = vrot.lane.b32.xlu0 %v8490_v8, %s7901_s27 }
 0xfed   : > { %4267 = vrot.lane.b32.xlu1 %v8508_v40, %s7901_s27  ;;  %4191 = vrot.lane.b32.xlu0 %v8482_v35, %s7901_s27 }
 0xff1   : > { %4189 = vrot.lane.b32.xlu0 %v8510_v42, %s7901_s27 }
0x102b   : > { %v3711_v23 = vpop.xlane.xlu1 %3710 }
0x102c   : > { %7730 = vrcp.f32 %v3711_v23 }
0x102f   : > { %v3714_v28 = vpop.xlane.xlu0 %3713 }
0x1030   : > { %7732 = vrcp.f32 %v3714_v28 }
0x1036   : > { %v7731_v30 = vpop.eup %7730 }
0x1037   : > { %v3725_v33 = vmul.f32 %v7731_v30, %v7723_v62 }
0x1039   : > { %7341 = vmatmul.mubr.msk.f32.vlgmr.msra.gmra.mrb[42].mxu1 %vm294_vm2, %v3725_v33 }
0x103a   : > { %v7733_v37 = vpop.eup %7732  ;;  %7349 = vmatpush3.msra.mxu1 %v3882_v13  ;;  %7350 = vmatprep.mubr.msk.f32.mxu1 %vm7896_vm1, %v7895_v10 }
0x103b   : > { %v3726_v60 = vmul.f32 %v7733_v37, %v7725_v18  ;;  %7358 = vmatprep.subr.mxu1 %v7895_v10 }
0x103d   : > { %7346 = vmatmul.mubr.msk.f32.vlgmr.msra.gmra.mrb[46].mxu0 %vm294_vm2, %v3726_v60 }
0x103e   : > { %7354 = vmatpush3.msra.mxu0 %v3958_v16  ;;  %7355 = vmatprep.mubr.msk.f32.mxu0 %vm7896_vm1, %v7895_v10 }
0x103f   : > { %7363 = vmatprep.subr.mxu0 %v7895_v10 }
0x1060   : > { %v3720_v52 = vpop.xlane.xlu0 %3719 }
0x1061   : > { %7734 = vrcp.f32 %v3720_v52  ;;  %v3717_v11 = vpop.xlane.xlu1 %3716 }
0x1062   : > { %7736 = vrcp.f32 %v3717_v11 }
0x1064   : > { %v4034_v43 = vpop.permute.xlu0 %4033 }
0x1065   : > { %v4112_v41 = vpop.permute.xlu1 %4111 }
0x1068   : > { %v4192_v27 = vpop.permute.xlu0 %4191 }
0x1069   : > { %v4270_v47 = vpop.permute.xlu1 %4269 }
0x106b   : > { %v7735_v44 = vpop.eup %7734 }
0x106c   : > { %v7737_v45 = vpop.eup %7736  ;;  %v3728_v32 = vmul.f32 %v7735_v44, %v7727_v6  ;;  %v4190_v34 = vpop.permute.xlu0 %4189 }
0x106d   : > { %v3727_v46 = vmul.f32 %v7737_v45, %v7729_v7  ;;  %v4268_v49 = vpop.permute.xlu1 %4267 }
0x106e   : > { %7356 = vmatmul.mubr.msk.f32.vlgmr.msra.gmra.mrb[48].mxu0 %vm294_vm2, %v3728_v32 }
0x106f   : > { %7364 = vmatpush3.xpose.msk.msra.mxu0 %vm294_vm2, %v4114_v20  ;;  %7351 = vmatmul.mubr.msk.f32.vlgmr.msra.gmra.mrb[44].mxu1 %vm294_vm2, %v3727_v46 }
0x1070   : > { %7359 = vmatpush3.xpose.msk.msra.mxu1 %vm294_vm2, %v4036_v22  ;;  %7365 = vmatprep.mubr.msk.f32.mxu0 %vm7896_vm1, %v7895_v10 }
0x1071   : > { %7373 = vmatprep.subr.mxu0 %v7895_v10  ;;  %7360 = vmatprep.mubr.msk.f32.mxu1 %vm7896_vm1, %v7895_v10 }
0x1072   : > { %7366 = vmatmul.mubr.msk.f32.vlgmr.msra.gmra.mrb[50].mxu0 %vm294_vm2, %v4112_v41  ;;  %7368 = vmatprep.subr.mxu1 %v7895_v10 }
0x1073   : > { %7374 = vmatpush3.xpose.msk.msra.mxu0 %vm294_vm2, %v4270_v47  ;;  %7361 = vmatmul.mubr.msk.f32.vlgmr.msra.gmra.mrb[46].mxu1 %vm294_vm2, %v4034_v43 }
0x1074   : > { %7369 = vmatpush3.xpose.msk.msra.mxu1 %vm294_vm2, %v4192_v27  ;;  %7375 = vmatprep.mubr.msk.f32.mxu0 %vm7896_vm1, %v7895_v10 }
0x1075   : > { %7370 = vmatprep.mubr.msk.f32.mxu1 %vm7896_vm1, %v7895_v10  ;;  %7378 = vmatprep.subr.mxu1 %v7895_v10 }
0x1076   : > { %7376 = vmatmul.mubr.msk.f32.vlgmr.msra.gmra.mrb[52].mxu0 %vm294_vm2, %v4268_v49  ;;  %7383 = vmatprep.subr.mxu0 %v7895_v10 }
0x1077   : > { %7371 = vmatmul.mubr.msk.f32.vlgmr.msra.gmra.mrb[48].mxu1 %vm294_vm2, %v4190_v34  ;;  %7385 = vmatprep.mubr.msk.f32.mxu0 %vm7896_vm1, %v7895_v10 }
0x1078   : > { %7380 = vmatprep.mubr.msk.f32.mxu1 %vm7896_vm1, %v7895_v10 }
0x110c   : > { %v8588_v51 = vpop.f32.mrb[42].mxu1 }
0x110d   : > { %v7342_v53 = vpop.f32.mrb[43].mxu1 }
0x1110   : > { %v8590_v14 = vpop.f32.mrb[46].mxu0 }
0x1111   : > { %v7347_v54 = vpop.f32.mrb[47].mxu0 }
0x1141   : > { %v8592_v55 = vpop.f32.mrb[48].mxu0 }
0x1142   : > { %v8594_v36 = vpop.f32.mrb[44].mxu1  ;;  %v7357_v56 = vpop.f32.mrb[49].mxu0 }
0x1143   : > { %v7352_v58 = vpop.f32.mrb[45].mxu1 }
0x1145   : > { %v4185_v61 = vpop.f32.mrb[50].mxu0 }
0x1146   : > { %v4107_v62 = vpop.f32.mrb[46].mxu1  ;;  %v7367_v17 = vpop.f32.mrb[51].mxu0  ;;  %v4348_v18 = vsel %vm294_vm2, %v4185_v61, -inf }
0x1147   : > { %v7362_v48 = vpop.f32.mrb[47].mxu1  ;;  %4349 = vmax.xlane.f32.xlu1 %v4348_v18  ;;  %v4345_v24 = vsel %vm294_vm2, %v4107_v62, -inf }
0x1148   : > { %4346 = vmax.xlane.f32.xlu0 %v4345_v24 }
0x1149   : > { %v4341_v63 = vpop.f32.mrb[52].mxu0 }
0x114a   : > { %v4263_v0 = vpop.f32.mrb[48].mxu1  ;;  %v7377_v3 = vpop.f32.mrb[53].mxu0  ;;  %v4354_v4 = vsel %vm294_vm2, %v4341_v63, -inf }
0x114b   : > { %v7372_v19 = vpop.f32.mrb[49].mxu1  ;;  %v4351_v50 = vsel %vm294_vm2, %v4263_v0, -inf }
0x114c   : > { %4352 = vmax.xlane.f32.xlu0 %v4351_v50 }
0x1150   : > { %4355 = vmax.xlane.f32.xlu0 %v4354_v4 }
0x1158   : > { %4389 = vrot.lane.b32.xlu1 %v8475_v29, %s7900_s26 }
0x115c   : > { %4541 = vrot.lane.b32.xlu1 %v8482_v35, %s7900_s26 }
0x1160   : > { %4617 = vrot.lane.b32.xlu1 %v8480_v31, %s7900_s26 }
0x1164   : > { %4773 = vrot.lane.b32.xlu1 %v8473_v26, %s7904_s30 }
0x1166   : > { %4465 = vrot.lane.b32.xlu0 %v8473_v26, %s7900_s26  ;;  %s9001_s26 = smov 16  }
0x116a   : > { %4695 = vrot.lane.b32.xlu0 %v8475_v29, %s7904_s30 }
0x11d4   : > { %v4350_v5 = vpop.xlane.xlu1 %4349 }
0x11d5   : > { %v4358_v6 = vsub.f32 %v4185_v61, %v4350_v5  ;;  %v4347_v7 = vpop.xlane.xlu0 %4346 }
0x11d6   : > { %v4357_v9 = vsub.f32 %v4107_v62, %v4347_v7 }
0x11d7   : > { %v4363_v12 = vmul.f32 1.442695, %v4358_v6 }
0x11d8   : > { %v4361_v13 = vmul.f32 1.442695, %v4357_v9  ;;  %v4390_v16 = vpop.permute.xlu1 %4389 }
0x11d9   : > { %7738 = vpow2.f32 %v4363_v12  ;;  %v4353_v20 = vpop.xlane.xlu0 %4352  ;;  %7379 = vmatpush3.msra.mxu1 %v4390_v16 }
0x11da   : > { %7740 = vpow2.f32 %v4361_v13  ;;  %v4359_v22 = vsub.f32 %v4263_v0, %v4353_v20  ;;  %7388 = vmatprep.subr.mxu1 %v7895_v10 }
0x11dc   : > { %v4365_v23 = vmul.f32 1.442695, %v4359_v22  ;;  %v4542_v46 = vpop.permute.xlu1 %4541 }
0x11dd   : > { %v4356_v28 = vpop.xlane.xlu0 %4355 }
0x11de   : > { %7742 = vpow2.f32 %v4365_v23  ;;  %v4360_v30 = vsub.f32 %v4341_v63, %v4356_v28 }
0x11e0   : > { %v4367_v33 = vmul.f32 1.442695, %v4360_v30  ;;  %v4618_v47 = vpop.permute.xlu1 %4617 }
0x11e1   : > { %v4466_v37 = vpop.permute.xlu0 %4465 }
0x11e2   : > { %7744 = vpow2.f32 %v4367_v33  ;;  %7384 = vmatpush3.msra.mxu0 %v4466_v37 }
0x11e3   : > { %v7739_v60 = vpop.eup %7738  ;;  %7393 = vmatprep.subr.mxu0 %v7895_v10 }
0x11e4   : > { %v7741_v52 = vpop.eup %7740  ;;  %v4372_v11 = vsel %vm294_vm2, %v7739_v60, 0.0  ;;  %v4774_v49 = vpop.permute.xlu1 %4773 }
0x11e5   : > { %4373 = vadd.xlane.f32.xlu0 %v4372_v11  ;;  %v4369_v41 = vsel %vm294_vm2, %v7741_v52, 0.0  ;;  %v4696_v27 = vpop.permute.xlu0 %4695 }
0x11e6   : > { %4370 = vadd.xlane.f32.xlu1 %v4369_v41 }
0x11e8   : > { %v7743_v43 = vpop.eup %7742 }
0x11e9   : > { %v4375_v44 = vsel %vm294_vm2, %v7743_v43, 0.0 }
0x11ea   : > { %4376 = vadd.xlane.f32.xlu1 %v4375_v44 }
0x11ec   : > { %v7745_v45 = vpop.eup %7744 }
0x11ed   : > { %v4378_v32 = vsel %vm294_vm2, %v7745_v45, 0.0 }
0x11ee   : > { %4379 = vadd.xlane.f32.xlu0 %v4378_v32 }
0x11fb   : > { %4771 = vrot.lane.b32.xlu1 %v8498_v39, %s7904_s30 }
0x11ff   : > { %4929 = vrot.lane.b32.xlu1 %v8480_v31, %s7904_s30 }
0x1203   : > { %4927 = vrot.lane.b32.xlu1 %v8508_v40, %s7904_s30 }
0x1204   : > { %4693 = vrot.lane.b32.xlu0 %v8490_v8, %s7904_s30 }
0x1207   : > { %5049 = vrot.lane.b32.xlu1 %v8475_v29, %s7903_s29 }
0x1208   : > { %4851 = vrot.lane.b32.xlu0 %v8482_v35, %s7904_s30 }
0x120b   : > { %5201 = vrot.lane.b32.xlu1 %v8482_v35, %s7903_s29 }
0x120c   : > { %4849 = vrot.lane.b32.xlu0 %v8510_v42, %s7904_s30 }
0x120f   : > { %5277 = vrot.lane.b32.xlu1 %v8480_v31, %s7903_s29 }
0x1210   : > { %5125 = vrot.lane.b32.xlu0 %v8473_v26, %s7903_s29 }
0x1272   : > { %v4374_v34 = vpop.xlane.xlu0 %4373 }
0x1273   : > { %7746 = vrcp.f32 %v4374_v34  ;;  %v4371_v53 = vpop.xlane.xlu1 %4370 }
0x1274   : > { %7748 = vrcp.f32 %v4371_v53 }
0x1277   : > { %v4377_v54 = vpop.xlane.xlu1 %4376 }
0x1278   : > { %7750 = vrcp.f32 %v4377_v54 }
0x127b   : > { %v4380_v56 = vpop.xlane.xlu0 %4379  ;;  %v4772_v17 = vpop.permute.xlu1 %4771 }
0x127c   : > { %7752 = vrcp.f32 %v4380_v56 }
0x127d   : > { %v7747_v58 = vpop.eup %7746 }
0x127e   : > { %v7749_v61 = vpop.eup %7748  ;;  %v4386_v62 = vmul.f32 %v7747_v58, %v7739_v60 }
0x127f   : > { %v4385_v18 = vmul.f32 %v7749_v61, %v7741_v52  ;;  %v4694_v48 = vpop.permute.xlu0 %4693  ;;  %v4930_v0 = vpop.permute.xlu1 %4929 }
0x1280   : > { %7386 = vmatmul.mubr.msk.f32.vlgmr.msra.gmra.mrb[54].mxu0 %vm294_vm2, %v4386_v62 }
0x1281   : > { %7394 = vmatpush3.msra.mxu0 %v4618_v47  ;;  %7381 = vmatmul.mubr.msk.f32.vlgmr.msra.gmra.mrb[50].mxu1 %vm294_vm2, %v4385_v18 }
0x1282   : > { %v7751_v24 = vpop.eup %7750  ;;  %7389 = vmatpush3.msra.mxu1 %v4542_v46  ;;  %7390 = vmatprep.mubr.msk.f32.mxu1 %vm7896_vm1, %v7895_v10 }
0x1283   : > { %v4387_v63 = vmul.f32 %v7751_v24, %v7743_v43  ;;  %7398 = vmatprep.subr.mxu1 %v7895_v10  ;;  %7395 = vmatprep.mubr.msk.f32.mxu0 %vm7896_vm1, %v7895_v10  ;;  %v4852_v3 = vpop.permute.xlu0 %4851  ;;  %v4928_v4 = vpop.permute.xlu1 %4927 }
0x1284   : > { %7403 = vmatprep.subr.mxu0 %v7895_v10 }
0x1285   : > { %7391 = vmatmul.mubr.msk.f32.vlgmr.msra.gmra.mrb[52].mxu1 %vm294_vm2, %v4387_v63 }
0x1286   : > { %v7753_v19 = vpop.eup %7752  ;;  %7400 = vmatprep.mubr.msk.f32.mxu1 %vm7896_vm1, %v7895_v10 }
0x1287   : > { %v4388_v50 = vmul.f32 %v7753_v19, %v7745_v45  ;;  %v4850_v5 = vpop.permute.xlu0 %4849  ;;  %v5050_v6 = vpop.permute.xlu1 %5049 }
0x1289   : > { %7399 = vmatpush3.xpose.msk.msra.mxu1 %vm294_vm2, %v4696_v27  ;;  %7396 = vmatmul.mubr.msk.f32.vlgmr.msra.gmra.mrb[56].mxu0 %vm294_vm2, %v4388_v50 }
0x128a   : > { %7404 = vmatpush3.xpose.msk.msra.mxu0 %vm294_vm2, %v4774_v49  ;;  %7408 = vmatprep.subr.mxu1 %v7895_v10 }
0x128b   : > { %7405 = vmatprep.mubr.msk.f32.mxu0 %vm7896_vm1, %v7895_v10  ;;  %7413 = vmatprep.subr.mxu0 %v7895_v10  ;;  %v5126_v7 = vpop.permute.xlu0 %5125  ;;  %v5202_v47 = vpop.permute.xlu1 %5201 }
0x128c   : > { %7401 = vmatmul.mubr.msk.f32.vlgmr.msra.gmra.mrb[54].mxu1 %vm294_vm2, %v4694_v48 }
0x128d   : > { %7409 = vmatpush3.xpose.msk.msra.mxu1 %vm294_vm2, %v4852_v3  ;;  %7406 = vmatmul.mubr.msk.f32.vlgmr.msra.gmra.mrb[58].mxu0 %vm294_vm2, %v4772_v17 }
0x128e   : > { %7414 = vmatpush3.xpose.msk.msra.mxu0 %vm294_vm2, %v4930_v0  ;;  %7410 = vmatprep.mubr.msk.f32.mxu1 %vm7896_vm1, %v7895_v10 }
0x128f   : > { %7418 = vmatprep.subr.mxu1 %v7895_v10  ;;  %7415 = vmatprep.mubr.msk.f32.mxu0 %vm7896_vm1, %v7895_v10  ;;  %v5278_v27 = vpop.permute.xlu1 %5277 }
0x1290   : > { %7411 = vmatmul.mubr.msk.f32.vlgmr.msra.gmra.mrb[56].mxu1 %vm294_vm2, %v4850_v5  ;;  %7423 = vmatprep.subr.mxu0 %v7895_v10 }
0x1291   : > { %7419 = vmatpush3.msra.mxu1 %v5050_v6  ;;  %7416 = vmatmul.mubr.msk.f32.vlgmr.msra.gmra.mrb[60].mxu0 %vm294_vm2, %v4928_v4 }
0x1292   : > { %7424 = vmatpush3.msra.mxu0 %v5126_v7  ;;  %7420 = vmatprep.mubr.msk.f32.mxu1 %vm7896_vm1, %v7895_v10 }
0x1293   : > { %7428 = vmatprep.subr.mxu1 %v7895_v10  ;;  %7425 = vmatprep.mubr.msk.f32.mxu0 %vm7896_vm1, %v7895_v10 }
0x1294   : > { %7433 = vmatprep.subr.mxu0 %v7895_v10 }
0x1353   : > { %v8674_v9 = vpop.f32.mrb[54].mxu0 }
0x1354   : > { %v8676_v12 = vpop.f32.mrb[50].mxu1  ;;  %v7387_v13 = vpop.f32.mrb[55].mxu0 }
0x1355   : > { %v7382_v16 = vpop.f32.mrb[51].mxu1 }
0x1358   : > { %v8678_v20 = vpop.f32.mrb[52].mxu1 }
0x1359   : > { %v7392_v22 = vpop.f32.mrb[53].mxu1 }
0x135c   : > { %v8680_v23 = vpop.f32.mrb[56].mxu0 }
0x135d   : > { %v7397_v28 = vpop.f32.mrb[57].mxu0 }
0x135f   : > { %v4767_v30 = vpop.f32.mrb[54].mxu1 }
0x1360   : > { %v7402_v33 = vpop.f32.mrb[55].mxu1  ;;  %v5005_v37 = vsel %vm294_vm2, %v4767_v30, -inf  ;;  %v4845_v60 = vpop.f32.mrb[58].mxu0 }
0x1361   : > { %5006 = vmax.xlane.f32.xlu0 %v5005_v37  ;;  %v7407_v52 = vpop.f32.mrb[59].mxu0  ;;  %v5008_v11 = vsel %vm294_vm2, %v4845_v60, -inf }
0x1362   : > { %5009 = vmax.xlane.f32.xlu1 %v5008_v11 }
0x1363   : > { %v4923_v41 = vpop.f32.mrb[56].mxu1 }
0x1364   : > { %v7412_v43 = vpop.f32.mrb[57].mxu1  ;;  %v5011_v44 = vsel %vm294_vm2, %v4923_v41, -inf  ;;  %v5001_v45 = vpop.f32.mrb[60].mxu0 }
0x1365   : > { %5012 = vmax.xlane.f32.xlu0 %v5011_v44  ;;  %v7417_v32 = vpop.f32.mrb[61].mxu0  ;;  %v5014_v46 = vsel %vm294_vm2, %v5001_v45, -inf }
0x1369   : > { %5015 = vmax.xlane.f32.xlu0 %v5014_v46 }
0x1373   : > { %5433 = vrot.lane.b32.xlu1 %v8473_v26, %s7907_s6 }
0x137f   : > { %5355 = vrot.lane.b32.xlu0 %v8475_v29, %s7907_s6 }
0x13ee   : > { %v5007_v49 = vpop.xlane.xlu0 %5006 }
0x13ef   : > { %v5017_v34 = vsub.f32 %v4767_v30, %v5007_v49  ;;  %v5010_v53 = vpop.xlane.xlu1 %5009 }
0x13f0   : > { %v5018_v54 = vsub.f32 %v4845_v60, %v5010_v53 }
0x13f1   : > { %v5021_v56 = vmul.f32 1.442695, %v5017_v34 }
0x13f2   : > { %v5023_v58 = vmul.f32 1.442695, %v5018_v54  ;;  %v5013_v48 = vpop.xlane.xlu0 %5012 }
0x13f3   : > { %7754 = vpow2.f32 %v5021_v56  ;;  %v5019_v63 = vsub.f32 %v4923_v41, %v5013_v48 }
0x13f4   : > { %7756 = vpow2.f32 %v5023_v58 }
0x13f5   : > { %v5025_v3 = vmul.f32 1.442695, %v5019_v63 }
0x13f6   : > { %v5016_v24 = vpop.xlane.xlu0 %5015 }
0x13f7   : > { %v5020_v0 = vsub.f32 %v5001_v45, %v5016_v24  ;;  %7758 = vpow2.f32 %v5025_v3 }
0x13f9   : > { %v5027_v19 = vmul.f32 1.442695, %v5020_v0 }
0x13fb   : > { %7760 = vpow2.f32 %v5027_v19 }
0x13fd   : > { %v7755_v61 = vpop.eup %7754 }
0x13fe   : > { %v7757_v62 = vpop.eup %7756  ;;  %v5029_v17 = vsel %vm294_vm2, %v7755_v61, 0.0 }
0x13ff   : > { %5030 = vadd.xlane.f32.xlu1 %v5029_v17  ;;  %v5032_v18 = vsel %vm294_vm2, %v7757_v62, 0.0 }
0x1400   : > { %5033 = vadd.xlane.f32.xlu0 %v5032_v18 }
0x1401   : > { %v7759_v50 = vpop.eup %7758 }
0x1402   : > { %v5035_v5 = vsel %vm294_vm2, %v7759_v50, 0.0 }
0x1405   : > { %v7761_v4 = vpop.eup %7760 }
0x1406   : > { %v5038_v6 = vsel %vm294_vm2, %v7761_v4, 0.0 }
0x1410   : > { %5431 = vrot.lane.b32.xlu1 %v8498_v39, %s7907_s6  ;;  %v5356_v39 = vpop.permute.xlu0 %5355 }
0x1416   : > { %5353 = vrot.lane.b32.xlu0 %v8490_v8, %s7907_s6  ;;  %v5434_v8 = vpop.permute.xlu1 %5433 }
0x1434   : > { %5036 = vadd.xlane.f32.xlu1 %v5035_v5 }
0x1435   : > { %5039 = vadd.xlane.f32.xlu0 %v5038_v6 }
0x1445   : > { %5589 = vrot.lane.b32.xlu1 %v8480_v31, %s7907_s6 }
0x1449   : > { %5587 = vrot.lane.b32.xlu1 %v8508_v40, %s7907_s6 }
0x144b   : > { %5511 = vrot.lane.b32.xlu0 %v8482_v35, %s7907_s6 }
0x144f   : > { %5509 = vrot.lane.b32.xlu0 %v8510_v42, %s7907_s6 }
0x148c   : > { %v5031_v7 = vpop.xlane.xlu1 %5030 }
0x148d   : > { %7762 = vrcp.f32 %v5031_v7  ;;  %v5034_v13 = vpop.xlane.xlu0 %5033 }
0x148e   : > { %7764 = vrcp.f32 %v5034_v13 }
0x1490   : > { %v5432_v40 = vpop.permute.xlu1 %5431 }
0x1491   : > { %v5354_v42 = vpop.permute.xlu0 %5353 }
0x1497   : > { %v7763_v16 = vpop.eup %7762 }
0x1498   : > { %v7765_v22 = vpop.eup %7764  ;;  %v5045_v28 = vmul.f32 %v7763_v16, %v7755_v61 }
0x1499   : > { %v5046_v30 = vmul.f32 %v7765_v22, %v7757_v62 }
0x149a   : > { %7421 = vmatmul.mubr.msk.f32.vlgmr.msra.gmra.mrb[58].mxu1 %vm294_vm2, %v5045_v28 }
0x149b   : > { %7429 = vmatpush3.msra.mxu1 %v5202_v47  ;;  %7426 = vmatmul.mubr.msk.f32.vlgmr.msra.gmra.mrb[62].mxu0 %vm294_vm2, %v5046_v30 }
0x149c   : > { %7434 = vmatpush3.msra.mxu0 %v5278_v27  ;;  %7430 = vmatprep.mubr.msk.f32.mxu1 %vm7896_vm1, %v7895_v10 }
0x149d   : > { %7438 = vmatprep.subr.mxu1 %v7895_v10  ;;  %7435 = vmatprep.mubr.msk.f32.mxu0 %vm7896_vm1, %v7895_v10 }
0x149e   : > { %7443 = vmatprep.subr.mxu0 %v7895_v10 }
0x14c1   : > { %v5037_v33 = vpop.xlane.xlu1 %5036 }
0x14c2   : > { %7766 = vrcp.f32 %v5037_v33  ;;  %v5040_v37 = vpop.xlane.xlu0 %5039 }
0x14c3   : > { %7768 = vrcp.f32 %v5040_v37 }
0x14c5   : > { %v5590_v44 = vpop.permute.xlu1 %5589 }
0x14c6   : > { %v5512_v43 = vpop.permute.xlu0 %5511 }
0x14c9   : > { %v5588_v32 = vpop.permute.xlu1 %5587 }
0x14ca   : > { %v5510_v45 = vpop.permute.xlu0 %5509 }
0x14cc   : > { %v7767_v60 = vpop.eup %7766 }
0x14cd   : > { %v7769_v52 = vpop.eup %7768  ;;  %v5047_v11 = vmul.f32 %v7767_v60, %v7759_v50 }
0x14ce   : > { %v5048_v41 = vmul.f32 %v7769_v52, %v7761_v4 }
0x14cf   : > { %7431 = vmatmul.mubr.msk.f32.vlgmr.msra.gmra.mrb[60].mxu1 %vm294_vm2, %v5047_v11 }
0x14d0   : > { %7439 = vmatpush3.xpose.msk.msra.mxu1 %vm294_vm2, %v5356_v39  ;;  %7436 = vmatmul.mubr.msk.f32.vlgmr.msra.gmra.mrb[64].mxu0 %vm294_vm2, %v5048_v41 }
0x14d1   : > { %7444 = vmatpush3.xpose.msk.msra.mxu0 %vm294_vm2, %v5434_v8  ;;  %7440 = vmatprep.mubr.msk.f32.mxu1 %vm7896_vm1, %v7895_v10 }
0x14d2   : > { %7448 = vmatprep.subr.mxu1 %v7895_v10  ;;  %7445 = vmatprep.mubr.msk.f32.mxu0 %vm7896_vm1, %v7895_v10 }
0x14d3   : > { %7441 = vmatmul.mubr.msk.f32.vlgmr.msra.gmra.mrb[62].mxu1 %vm294_vm2, %v5354_v42  ;;  %7453 = vmatprep.subr.mxu0 %v7895_v10 }
0x14d4   : > { %7449 = vmatpush3.xpose.msk.msra.mxu1 %vm294_vm2, %v5512_v43  ;;  %7446 = vmatmul.mubr.msk.f32.vlgmr.msra.gmra.mrb[66].mxu0 %vm294_vm2, %v5432_v40 }
0x14d5   : > { %7454 = vmatpush3.xpose.msk.msra.mxu0 %vm294_vm2, %v5590_v44  ;;  %7450 = vmatprep.mubr.msk.f32.mxu1 %vm7896_vm1, %v7895_v10 }
0x14d6   : > { %7455 = vmatprep.mubr.msk.f32.mxu0 %vm7896_vm1, %v7895_v10  ;;  %7458 = vmatprep.subr.mxu1 %v7895_v10 }
0x14d7   : > { %7451 = vmatmul.mubr.msk.f32.vlgmr.msra.gmra.mrb[64].mxu1 %vm294_vm2, %v5510_v45  ;;  %7463 = vmatprep.subr.mxu0 %v7895_v10 }
0x14d8   : > { %7456 = vmatmul.mubr.msk.f32.vlgmr.msra.gmra.mrb[68].mxu0 %vm294_vm2, %v5588_v32  ;;  %7460 = vmatprep.mubr.msk.f32.mxu1 %vm7896_vm1, %v7895_v10 }
0x14d9   : > { %7465 = vmatprep.mubr.msk.f32.mxu0 %vm7896_vm1, %v7895_v10 }
0x156d   : > { %v5121_v46 = vpop.f32.mrb[58].mxu1 }
0x156e   : > { %v7422_v47 = vpop.f32.mrb[59].mxu1  ;;  %v5197_v27 = vpop.f32.mrb[62].mxu0 }
0x156f   : > { %v7427_v49 = vpop.f32.mrb[63].mxu0 }
0x15a2   : > { %v5273_v34 = vpop.f32.mrb[60].mxu1 }
0x15a3   : > { %v7432_v53 = vpop.f32.mrb[61].mxu1  ;;  %v5349_v54 = vpop.f32.mrb[64].mxu0 }
0x15a4   : > { %v7437_v56 = vpop.f32.mrb[65].mxu0  ;;  %v6073_v53 = vld [vmem:[%s8990_s2 + $0xa0] sm:$0xff] }
0x15a5   : > { %v6075_v56 = vld [vmem:[%s8990_s2 + $0xb0] sm:$0xff] }
0x15a6   : > { %v5427_v58 = vpop.f32.mrb[62].mxu1 }
0x15a7   : > { %v7442_v61 = vpop.f32.mrb[63].mxu1  ;;  %v5665_v62 = vsel %vm294_vm2, %v5427_v58, -inf  ;;  %v5505_v17 = vpop.f32.mrb[66].mxu0 }
0x15a8   : > { %5666 = vmax.xlane.f32.xlu0 %v5665_v62  ;;  %v7447_v18 = vpop.f32.mrb[67].mxu0  ;;  %v5668_v48 = vsel %vm294_vm2, %v5505_v17, -inf }
0x15a9   : > { %5669 = vmax.xlane.f32.xlu1 %v5668_v48 }
0x15aa   : > { %v5583_v24 = vpop.f32.mrb[64].mxu1 }
0x15ab   : > { %v7452_v63 = vpop.f32.mrb[65].mxu1  ;;  %v5671_v0 = vsel %vm294_vm2, %v5583_v24, -inf  ;;  %v5661_v3 = vpop.f32.mrb[68].mxu0 }
0x15ac   : > { %5672 = vmax.xlane.f32.xlu0 %v5671_v0  ;;  %v7457_v19 = vpop.f32.mrb[69].mxu0  ;;  %v5674_v50 = vsel %vm294_vm2, %v5661_v3, -inf }
0x15b0   : > { %5675 = vmax.xlane.f32.xlu0 %v5674_v50 }
0x15ba   : > { %5709 = vrot.lane.b32.xlu1 %v8475_v29, %s7906_s5 }
0x1635   : > { %v5667_v4 = vpop.xlane.xlu0 %5666 }
0x1636   : > { %v5677_v5 = vsub.f32 %v5427_v58, %v5667_v4  ;;  %v5670_v6 = vpop.xlane.xlu1 %5669 }
0x1637   : > { %v5678_v8 = vsub.f32 %v5505_v17, %v5670_v6 }
0x1638   : > { %v5681_v39 = vmul.f32 1.442695, %v5677_v5 }
0x1639   : > { %v5683_v7 = vmul.f32 1.442695, %v5678_v8  ;;  %v5673_v13 = vpop.xlane.xlu0 %5672 }
0x163a   : > { %7770 = vpow2.f32 %v5681_v39  ;;  %v5679_v16 = vsub.f32 %v5583_v24, %v5673_v13  ;;  %v5710_v22 = vpop.permute.xlu1 %5709 }
0x163b   : > { %7772 = vpow2.f32 %v5683_v7  ;;  %7459 = vmatpush3.msra.mxu1 %v5710_v22 }
0x163c   : > { %v5685_v28 = vmul.f32 1.442695, %v5679_v16  ;;  %7468 = vmatprep.subr.mxu1 %v7895_v10 }
0x163d   : > { %v5676_v30 = vpop.xlane.xlu0 %5675 }
0x163e   : > { %7774 = vpow2.f32 %v5685_v28  ;;  %v5680_v40 = vsub.f32 %v5661_v3, %v5676_v30 }
0x1640   : > { %v5687_v42 = vmul.f32 1.442695, %v5680_v40 }
0x1642   : > { %7776 = vpow2.f32 %v5687_v42 }
0x1644   : > { %v7771_v29 = vpop.eup %7770 }
0x1645   : > { %v7773_v33 = vpop.eup %7772  ;;  %v5689_v37 = vsel %vm294_vm2, %v7771_v29, 0.0 }
0x1646   : > { %5690 = vadd.xlane.f32.xlu1 %v5689_v37  ;;  %v5692_v60 = vsel %vm294_vm2, %v7773_v33, 0.0 }
0x1647   : > { %5693 = vadd.xlane.f32.xlu0 %v5692_v60 }
0x1648   : > { %v7775_v52 = vpop.eup %7774 }
0x1649   : > { %v5695_v11 = vsel %vm294_vm2, %v7775_v52, 0.0 }
0x164a   : > { %5696 = vadd.xlane.f32.xlu1 %v5695_v11 }
0x164c   : > { %v7777_v41 = vpop.eup %7776 }
0x164d   : > { %v5698_v43 = vsel %vm294_vm2, %v7777_v41, 0.0 }
0x164e   : > { %5699 = vadd.xlane.f32.xlu0 %v5698_v43 }
0x165b   : > { %5861 = vrot.lane.b32.xlu1 %v8482_v35, %s7906_s5 }
0x165f   : > { %5937 = vrot.lane.b32.xlu1 %v8480_v31, %s7906_s5 }
0x1663   : > { %6019 = vrot.lane.b32.xlu1 %v8674_v9, %s9000_s24 }
0x1664   : > { %5785 = vrot.lane.b32.xlu0 %v8473_v26, %s7906_s5 }
0x1667   : > { %6035 = vrot.lane.b32.xlu1 %v5197_v27, %s9001_s26 }
0x1668   : > { %6017 = vrot.lane.b32.xlu0 %v8676_v12, %s9000_s24 }
0x166b   : > { %6023 = vrot.lane.b32.xlu1 %v8680_v23, %s9000_s24 }
0x166c   : > { %6033 = vrot.lane.b32.xlu0 %v5121_v46, %s9001_s26 }
0x166f   : > { %6039 = vrot.lane.b32.xlu1 %v5349_v54, %s9001_s26  ;;  %v6074_v54 = vld [vmem:[%s8990_s2 + $0xa8] sm:$0xff] }
0x1670   : > { %6021 = vrot.lane.b32.xlu0 %v8678_v20, %s9000_s24  ;;  %v7560_v58 = vpack.c.bf16 %v6074_v54, %v6073_v53 }
0x1674   : > { %6037 = vrot.lane.b32.xlu0 %v5273_v34, %s9001_s26  ;;  %s7912_s26 = smov [#allocation2]  }
0x1675   : > { %s7835_s27 = sshll.u32 %s7912_s26, 4  ;;  %s7836_s27 = int_to_ptr.vmem [resolvable:$false] %s7835_s27 }
0x1676   : > { %s7837_s29 = scalar_lea.vmem %s7836_s27, 128 }
0x16d3   : > { %v5691_v31 = vpop.xlane.xlu1 %5690 }
0x16d4   : > { %7778 = vrcp.f32 %v5691_v31  ;;  %v5694_v26 = vpop.xlane.xlu0 %5693 }
0x16d5   : > { %7780 = vrcp.f32 %v5694_v26 }
0x16d7   : > { %v5697_v35 = vpop.xlane.xlu1 %5696 }
0x16d8   : > { %7782 = vrcp.f32 %v5697_v35 }
0x16db   : > { %v5700_v9 = vpop.xlane.xlu0 %5699  ;;  %v5862_v12 = vpop.permute.xlu1 %5861 }
0x16dc   : > { %7784 = vrcp.f32 %v5700_v9 }
0x16de   : > { %v7779_v44 = vpop.eup %7778 }
0x16df   : > { %v7781_v23 = vpop.eup %7780  ;;  %v5705_v45 = vmul.f32 %v7779_v44, %v7771_v29  ;;  %v5786_v32 = vpop.permute.xlu0 %5785 }
0x16e0   : > { %v5706_v46 = vmul.f32 %v7781_v23, %v7773_v33  ;;  %7464 = vmatpush3.msra.mxu0 %v5786_v32  ;;  %v5938_v47 = vpop.permute.xlu1 %5937 }
0x16e1   : > { %7461 = vmatmul.mubr.msk.f32.vlgmr.msra.gmra.mrb[66].mxu1 %vm294_vm2, %v5705_v45  ;;  %7473 = vmatprep.subr.mxu0 %v7895_v10 }
0x16e2   : > { %v7783_v20 = vpop.eup %7782  ;;  %7469 = vmatpush3.msra.mxu1 %v5862_v12  ;;  %7466 = vmatmul.mubr.msk.f32.vlgmr.msra.gmra.mrb[70].mxu0 %vm294_vm2, %v5706_v46 }
0x16e3   : > { %v5707_v27 = vmul.f32 %v7783_v20, %v7775_v52  ;;  %7474 = vmatpush3.msra.mxu0 %v5938_v47  ;;  %7470 = vmatprep.mubr.msk.f32.mxu1 %vm7896_vm1, %v7895_v10  ;;  %v6018_v19 = vpop.permute.xlu0 %6017 }
0x16e4   : > { %7475 = vmatprep.mubr.msk.f32.mxu0 %vm7896_vm1, %v7895_v10  ;;  %v6076_v10 = vld [vmem:[%s8990_s2 + $0xb8] sm:$0xff]  ;;  %7561 = vmatprep.subr.bf16.mxu1 %v7560_v58  ;;  %v6020_v50 = vpop.permute.xlu1 %6019  ;;  %v6061_v13 = vsel %vm294_vm2, %v8588_v51, %v6018_v19 }
0x16e5   : > { %7471 = vmatmul.mubr.msk.f32.vlgmr.msra.gmra.mrb[68].mxu1 %vm294_vm2, %v5707_v27  ;;  %v7564_v61 = vpack.c.bf16 %v6076_v10, %v6075_v56  ;;  %v6062_v16 = vsel %vm294_vm2, %v8590_v14, %v6020_v50  ;;  %v6251_v50 = vld [vmem:[%s8990_s2 + $0xd0] sm:$0xff] }
0x16e6   : > { %v7785_v49 = vpop.eup %7784  ;;  %7563 = vmatpush3.bf16.msra.mxu1 %v7560_v58 }
0x16e7   : > { %v5708_v34 = vmul.f32 %v7785_v49, %v7777_v41  ;;  %7565 = vmatprep.subr.bf16.mxu1 %v7564_v61  ;;  %v6034_v4 = vpop.permute.xlu0 %6033 }
0x16e8   : > { %v6036_v5 = vpop.permute.xlu1 %6035  ;;  %v6065_v22 = vsel %vm2980_vm4, %v6061_v13, %v6034_v4  ;;  %v6252_v4 = vld [vmem:[%s8990_s2 + $0xd8] sm:$0xff]  ;;  %v6362_v13 = vld [vmem:[%s8990_s2 + $0x100] sm:$0xff] }
0x16e9   : > { %7476 = vmatmul.mubr.msk.f32.vlgmr.msra.gmra.mrb[72].mxu0 %vm294_vm2, %v5708_v34  ;;  %v6066_v30 = vsel %vm2980_vm4, %v6062_v16, %v6036_v5  ;;  %v7568_v5 = vpack.c.bf16 %v6252_v4, %v6251_v50  ;;  %v6363_v16 = vld [vmem:[%s8990_s2 + $0x108] sm:$0xff] }
0x16ea   : > { %7567 = vmatpush3.bf16.msra.mxu1 %v7564_v61 }
0x16eb   : > { %v6022_v6 = vpop.permute.xlu0 %6021  ;;  %7569 = vmatprep.subr.bf16.mxu0 %v7568_v5 }
0x16ec   : > { %v6024_v8 = vpop.permute.xlu1 %6023  ;;  %v6063_v33 = vsel %vm294_vm2, %v8594_v36, %v6022_v6  ;;  %v6891_v36 = vld [vmem:[%s8990_s2 + $0xc0] ss:$0 sm:$0xff]  ;;  %7571 = vmatpush3.bf16.msra.mxu0 %v7568_v5 }
0x16ed   : > { %v6064_v60 = vsel %vm294_vm2, %v8592_v55, %v6024_v8  ;;  %v6253_v6 = vld [vmem:[%s8990_s2 + $0xe0] sm:$0xff]  ;;  %v6254_v8 = vld [vmem:[%s8990_s2 + $0xe8] sm:$0xff] }
0x16ef   : > { %v6038_v39 = vpop.permute.xlu0 %6037 }
0x16f0   : > { %v6040_v7 = vpop.permute.xlu1 %6039  ;;  %v6067_v51 = vsel %vm2980_vm4, %v6063_v33, %v6038_v39  ;;  %v7572_v39 = vpack.c.bf16 %v6254_v8, %v6253_v6  ;;  %v6901_v8 = vld [vmem:[%s8990_s2 + $0x138] ss:$0 sm:$0xff] }
0x16f1   : > { %v6068_v52 = vsel %vm2980_vm4, %v6064_v60, %v6040_v7  ;;  %v6361_v7 = vld [vmem:[%s8990_s2 + $0xf8] sm:$0xff] }
0x16f2   : > { %7573 = vmatprep.subr.bf16.mxu0 %v7572_v39 }
0x16f3   : > { %7575 = vmatpush3.bf16.msra.mxu0 %v7572_v39 }
0x17b4   : > { %v5781_v62 = vpop.f32.mrb[66].mxu1 }
0x17b5   : > { %v7462_v17 = vpop.f32.mrb[67].mxu1  ;;  %6049 = vrot.lane.b32.xlu0 %v5781_v62, %s9002_s17  ;;  %v5857_v18 = vpop.f32.mrb[70].mxu0 }
0x17b6   : > { %6051 = vrot.lane.b32.xlu1 %v5857_v18, %s9002_s17  ;;  %v7467_v48 = vpop.f32.mrb[71].mxu0 }
0x17b8   : > { %v5933_v24 = vpop.f32.mrb[68].mxu1 }
0x17b9   : > { %v7472_v63 = vpop.f32.mrb[69].mxu1  ;;  %6053 = vrot.lane.b32.xlu0 %v5933_v24, %s9002_s17 }
0x17bc   : > { %v6009_v0 = vpop.f32.mrb[72].mxu0 }
0x17bd   : > { %6055 = vrot.lane.b32.xlu1 %v6009_v0, %s9002_s17  ;;  %v7477_v3 = vpop.f32.mrb[73].mxu0  ;;  %s162_s17 = sand.u32 1, %s7885_s13  }
0x17be   : > { %s6772_s19 = sshll.u32 %s162_s17, 2  ;;  %s6696_s16 = scalar_lea.sflag [#allocation3], %s162_s17 }
0x17bf   : > { %s164_s9 = scalar_lea.vmem [#allocation2], %s6772_s19 }
0x17c0   : > { %s6709_s28 = sshll.u32 %s164_s9, 4  ;;  %s8948_s28 = int_to_ptr.vmem [resolvable:$true] %s6709_s28 }
0x17c1   : > { %s7831_s24 = scalar_lea.vmem %s8948_s28, 64  ;;  %p7838_p0 = scmp.lt.s32.totalorder %s8948_s28, %s7836_s27 }
0x17c2   : > { %p7832_p11 = scmp.ne.s32.totalorder %s8948_s28, %s7831_s24  ;;  %p7839_p1 = scmp.lt.s32.totalorder %s7837_s29, %s7831_s24 }
0x17c4   : > { %p7833_p12 = pnand %p7832_p11, %p7971_p5  ;;  %p7840_p2 = por %p7839_p1, %p7838_p0 }
0x17c6   : > { %p7834_p13 = pneg %p7833_p12 }
0x17c8   : > { %p7841_p3 = pnand %p7840_p2, %p7834_p13 }
0x1827   : > { %v6050_v28 = vpop.permute.xlu0 %6049 }
0x1828   : > { %v6069_v40 = vsel %vm2985_vm5, %v6065_v22, %v6050_v28  ;;  %v6052_v42 = vpop.permute.xlu1 %6051  ;;  %v7576_v22 = vpack.c.bf16 %v6362_v13, %v6361_v7  ;;  %v6364_v28 = vld [vmem:[%s8990_s2 + $0x110] sm:$0xff] }
0x1829   : > { %7486 = vmatprep.mubr.msk.f32.mxu1 %vm193_vm0, %v6069_v40  ;;  %v6070_v29 = vsel %vm2985_vm5, %v6066_v30, %v6052_v42  ;;  %v7580_v30 = vpack.c.bf16 %v6364_v28, %v6363_v16  ;;  %v6365_v40 = vld [vmem:[%s8990_s2 + $0x118] sm:$0xff]  ;;  %v6366_v42 = vld [vmem:[%s8990_s2 + $0x120] sm:$0xff] }
0x182a   : > { %7487 = vmatmul.mubr.msk.f32.vlgmr.msra.gmra.mrb[70].mxu1 %vm193_vm0, %v6070_v29  ;;  %7577 = vmatprep.subr.bf16.mxu1 %v7576_v22  ;;  %v7584_v29 = vpack.c.bf16 %v6366_v42, %v6365_v40 }
0x182b   : > { %v6054_v14 = vpop.permute.xlu0 %6053  ;;  %7579 = vmatpush3.bf16.msra.mxu1 %v7576_v22 }
0x182c   : > { %v6071_v37 = vsel %vm2985_vm5, %v6067_v51, %v6054_v14  ;;  %7581 = vmatprep.subr.bf16.mxu1 %v7580_v30 }
0x182d   : > { %7489 = vmatprep.mubr.msk.f32.mxu1 %vm193_vm0, %v6071_v37 }
0x182f   : > { %v6056_v11 = vpop.permute.xlu1 %6055  ;;  %7583 = vmatpush3.bf16.msra.mxu1 %v7580_v30 }
0x1830   : > { %v6072_v41 = vsel %vm2985_vm5, %v6068_v52, %v6056_v11  ;;  %7585 = vmatprep.subr.bf16.mxu1 %v7584_v29 }
0x1831   : > { %7490 = vmatmul.mubr.msk.f32.gmra.mrb[72].mxu1 %vm193_vm0, %v6072_v41 }
0x1833   : > { %7587 = vmatpush3.bf16.msra.mxu1 %v7584_v29 }
0x18fd   : > { %v7488_v43 = vpop.f32.mrb[70].mxu1 }
0x18fe   : > { %v6166_v31 = vadd.f32 %v7488_v43, %v6891_v36  ;;  %v6160_v26 = vpop.f32.mrb[71].mxu1 }
0x18ff   : > { %v6161_v35 = vadd.f32 %v6891_v36, %v6160_v26 }
0x1900   : > { %v6180_v9 = vadd.f32 %v6166_v31, %v8454_v2 }
0x1901   : > { %v6179_v12 = vadd.f32 %v6161_v35, %v8452_v1  ;;  %v6245_v35 = vsub.s32 3, %v8439_v57 }
0x1902   : > { %v6186_v55 = vsel %vm193_vm0, %v6180_v9, 0.0 }
0x1903   : > { %6187 = vadd.xlane.f32.xlu1 %v6186_v55  ;;  %v6183_v44 = vsel %vm193_vm0, %v6179_v12, 0.0 }
0x1904   : > { %v7491_v23 = vpop.f32.mrb[72].mxu1  ;;  %6184 = vadd.xlane.f32.xlu0 %v6183_v44 }
0x1905   : > { %v6170_v45 = vpop.f32.mrb[73].mxu1  ;;  %v6176_v32 = vadd.f32 %v7491_v23, %v6891_v36 }
0x1906   : > { %v6171_v46 = vadd.f32 %v6891_v36, %v6170_v45  ;;  %v6237_v36 = vsub.s32 2, %v8439_v57 }
0x1907   : > { %v6182_v47 = vadd.f32 %v6176_v32, %v8464_v21 }
0x1908   : > { %v6181_v20 = vadd.f32 %v6171_v46, %v8460_v15 }
0x1909   : > { %v6192_v2 = vsel %vm193_vm0, %v6182_v47, 0.0 }
0x190a   : > { %v6189_v27 = vsel %vm193_vm0, %v6181_v20, 0.0 }
0x190b   : > { %6190 = vadd.xlane.f32.xlu0 %v6189_v27 }
0x190f   : > { %6193 = vadd.xlane.f32.xlu0 %v6192_v2 }
0x1990   : > { %v6188_v1 = vpop.xlane.xlu1 %6187 }
0x1991   : > { %v6196_v49 = vmul.f32 0.03125, %v6188_v1  ;;  %v6185_v34 = vpop.xlane.xlu0 %6184 }
0x1992   : > { %v6195_v53 = vmul.f32 0.03125, %v6185_v34 }
0x1993   : > { %v8825_v54 = vsub.f32 %v6180_v9, %v6196_v49  ;;  %v8880_v9 = vld [vmem:[%s8990_s2 + $0xc8] sm:$0x3f] }
0x1994   : > { %v8827_v56 = vsub.f32 %v6179_v12, %v6195_v53  ;;  %v6238_v12 = vrot.slane %v8880_v9, %v6237_v36  ;;  %v6246_v46 = vrot.slane %v8880_v9, %v6245_v35 }
0x1995   : > { %v6204_v58 = vmul.f32 %v8825_v54, %v8825_v54 }
0x1996   : > { %v6203_v15 = vmul.f32 %v8827_v56, %v8827_v56 }
0x1997   : > { %v6210_v21 = vsel %vm193_vm0, %v6204_v58, 0.0 }
0x1998   : > { %v6191_v10 = vpop.xlane.xlu0 %6190  ;;  %6211 = vadd.xlane.f32.xlu0 %v6210_v21  ;;  %v6207_v61 = vsel %vm193_vm0, %v6203_v15, 0.0  ;;  %v6367_v21 = vld [vmem:[%s8990_s2 + $0x128] sm:$0xff] }
0x1999   : > { %v6197_v62 = vmul.f32 0.03125, %v6191_v10  ;;  %6208 = vadd.xlane.f32.xlu1 %v6207_v61  ;;  %v6368_v10 = vld [vmem:[%s8990_s2 + $0x130] sm:$0xff] }
0x199a   : > { %v7588_v61 = vpack.c.bf16 %v6368_v10, %v6367_v21 }
0x199b   : > { %v8835_v17 = vsub.f32 %v6181_v20, %v6197_v62  ;;  %v6896_v62 = vld [vmem:[%s8990_s2 + $0xf0] ss:$0 sm:$0xff] }
0x199c   : > { %v6194_v18 = vpop.xlane.xlu0 %6193  ;;  %7589 = vmatprep.subr.bf16.mxu1 %v7588_v61 }
0x199d   : > { %v6198_v48 = vmul.f32 0.03125, %v6194_v18  ;;  %v6205_v24 = vmul.f32 %v8835_v17, %v8835_v17  ;;  %7591 = vmatpush3.bf16.msra.mxu1 %v7588_v61  ;;  %v6530_v61 = vsub.s32 4, %v8439_v57 }
0x199f   : > { %v8839_v63 = vsub.f32 %v6182_v47, %v6198_v48  ;;  %v6213_v0 = vsel %vm193_vm0, %v6205_v24, 0.0 }
0x19a0   : > { %6214 = vadd.xlane.f32.xlu1 %v6213_v0 }
0x19a1   : > { %v6206_v3 = vmul.f32 %v8839_v63, %v8839_v63 }
0x19a3   : > { %v6216_v19 = vsel %vm193_vm0, %v6206_v3, 0.0 }
0x19a4   : > { %6217 = vadd.xlane.f32.xlu0 %v6216_v19 }
0x1a25   : > { %v6212_v33 = vpop.xlane.xlu0 %6211 }
0x1a26   : > { %v6220_v51 = vmul.f32 0.03125, %v6212_v33  ;;  %v6209_v14 = vpop.xlane.xlu1 %6208 }
0x1a27   : > { %v6219_v37 = vmul.f32 0.03125, %v6209_v14 }
0x1a28   : > { %v6224_v60 = vadd.f32 1e-05, %v6220_v51 }
0x1a29   : > { %v6223_v52 = vadd.f32 1e-05, %v6219_v37 }
0x1a2a   : > { %7786 = vrsqrt.f32 %v6224_v60 }
0x1a2b   : > { %7788 = vrsqrt.f32 %v6223_v52 }
0x1a2d   : > { %v6215_v11 = vpop.xlane.xlu1 %6214 }
0x1a2e   : > { %v6221_v41 = vmul.f32 0.03125, %v6215_v11 }
0x1a30   : > { %v6225_v43 = vadd.f32 1e-05, %v6221_v41 }
0x1a31   : > { %v6218_v31 = vpop.xlane.xlu0 %6217 }
0x1a32   : > { %7790 = vrsqrt.f32 %v6225_v43  ;;  %v6222_v26 = vmul.f32 0.03125, %v6218_v31 }
0x1a34   : > { %v7787_v55 = vpop.eup %7786  ;;  %v6226_v44 = vadd.f32 1e-05, %v6222_v26 }
0x1a35   : > { %v7789_v23 = vpop.eup %7788  ;;  %v6232_v45 = vmul.f32 %v7787_v55, %v8825_v54 }
0x1a36   : > { %7792 = vrsqrt.f32 %v6226_v44  ;;  %v6231_v32 = vmul.f32 %v7789_v23, %v8827_v56 }
0x1a37   : > { %v6240_v20 = vmul.f32 %v6238_v12, %v6232_v45 }
0x1a38   : > { %v6239_v47 = vmul.f32 %v6238_v12, %v6231_v32 }
0x1a39   : > { %v6248_v2 = vadd.f32 %v6246_v46, %v6240_v20 }
0x1a3a   : > { %v6247_v27 = vadd.f32 %v6246_v46, %v6239_v47 }
0x1a3c   : > { %v7791_v1 = vpop.eup %7790  ;;  %7500 = vmatprep.mubr.msk.f32.mxu0 %vm193_vm0, %v6247_v27 }
0x1a3d   : > { %7501 = vmatmul.mubr.msk.f32.vlgmr.msra.gmra.mrb[74].mxu0 %vm193_vm0, %v6248_v2  ;;  %v6233_v49 = vmul.f32 %v7791_v1, %v8835_v17 }
0x1a3f   : > { %v6241_v34 = vmul.f32 %v6238_v12, %v6233_v49 }
0x1a40   : > { %v7793_v53 = vpop.eup %7792 }
0x1a41   : > { %v6249_v58 = vadd.f32 %v6246_v46, %v6241_v34  ;;  %v6234_v54 = vmul.f32 %v7793_v53, %v8839_v63 }
0x1a43   : > { %7503 = vmatprep.mubr.msk.f32.mxu0 %vm193_vm0, %v6249_v58  ;;  %v6242_v56 = vmul.f32 %v6238_v12, %v6234_v54 }
0x1a45   : > { %v6250_v15 = vadd.f32 %v6246_v46, %v6242_v56 }
0x1a47   : > { %7504 = vmatmul.mubr.msk.f32.gmra.mrb[76].mxu0 %vm193_vm0, %v6250_v15 }
0x1b10   : > { %v7502_v17 = vpop.f32.mrb[74].mxu0 }
0x1b11   : > { %v6344_v18 = vadd.f32 %v7502_v17, %v6896_v62  ;;  %v6338_v48 = vpop.f32.mrb[75].mxu0 }
0x1b12   : > { %v6339_v24 = vadd.f32 %v6896_v62, %v6338_v48  ;;  %v6538_v48 = vsub.s32 5, %v8439_v57 }
0x1b13   : > { %v6358_v0 = vmax.f32 %v6344_v18, 0.0 }
0x1b14   : > { %v6357_v63 = vmax.f32 %v6339_v24, 0.0 }
0x1b16   : > { %7522 = vmatprep.mubr.msk.f32.mxu1 %vm6374_vm6, %v6357_v63 }
0x1b17   : > { %7523 = vmatmul.mubr.msk.f32.vlgmr.msra.gmra.mrb[74].mxu1 %vm6374_vm6, %v6358_v0  ;;  %v6531_v0 = vrot.slane %v8880_v9, %v6530_v61 }
0x1b1a   : > { %v7505_v3 = vpop.f32.mrb[76].mxu0 }
0x1b1b   : > { %v6354_v19 = vadd.f32 %v7505_v3, %v6896_v62  ;;  %v6348_v50 = vpop.f32.mrb[77].mxu0 }
0x1b1c   : > { %v6349_v4 = vadd.f32 %v6896_v62, %v6348_v50 }
0x1b1d   : > { %v6360_v6 = vmax.f32 %v6354_v19, 0.0 }
0x1b1e   : > { %v6359_v5 = vmax.f32 %v6349_v4, 0.0  ;;  %v6539_v4 = vrot.slane %v8880_v9, %v6538_v48 }
0x1b20   : > { %7525 = vmatprep.mubr.msk.f32.mxu1 %vm6374_vm6, %v6359_v5 }
0x1b21   : > { %7526 = vmatmul.mubr.msk.f32.gmra.mrb[76].mxu1 %vm6374_vm6, %v6360_v6 }
0x1bea   : > { %v7524_v39 = vpop.f32.mrb[74].mxu1 }
0x1beb   : > { %v6459_v7 = vadd.f32 %v7524_v39, %v6901_v8  ;;  %v6453_v13 = vpop.f32.mrb[75].mxu1 }
0x1bec   : > { %v6454_v16 = vadd.f32 %v6901_v8, %v6453_v13 }
0x1bed   : > { %v6473_v22 = vadd.f32 %v6459_v7, %v6248_v2 }
0x1bee   : > { %v6472_v28 = vadd.f32 %v6454_v16, %v6247_v27 }
0x1bef   : > { %v6479_v30 = vsel %vm193_vm0, %v6473_v22, 0.0 }
0x1bf0   : > { %6480 = vadd.xlane.f32.xlu0 %v6479_v30  ;;  %v6476_v40 = vsel %vm193_vm0, %v6472_v28, 0.0 }
0x1bf1   : > { %6477 = vadd.xlane.f32.xlu1 %v6476_v40 }
0x1bf4   : > { %v7527_v42 = vpop.f32.mrb[76].mxu1 }
0x1bf5   : > { %v6469_v29 = vadd.f32 %v7527_v42, %v6901_v8  ;;  %v6463_v33 = vpop.f32.mrb[77].mxu1 }
0x1bf6   : > { %v6464_v51 = vadd.f32 %v6901_v8, %v6463_v33 }
0x1bf7   : > { %v6475_v14 = vadd.f32 %v6469_v29, %v6250_v15 }
0x1bf8   : > { %v6474_v37 = vadd.f32 %v6464_v51, %v6249_v58 }
0x1bf9   : > { %v6485_v60 = vsel %vm193_vm0, %v6475_v14, 0.0 }
0x1bfa   : > { %6486 = vadd.xlane.f32.xlu0 %v6485_v60  ;;  %v6482_v52 = vsel %vm193_vm0, %v6474_v37, 0.0 }
0x1bfb   : > { %6483 = vadd.xlane.f32.xlu1 %v6482_v52 }
0x1c7d   : > { %v6481_v11 = vpop.xlane.xlu0 %6480 }
0x1c7e   : > { %v6489_v41 = vmul.f32 0.03125, %v6481_v11  ;;  %v6478_v43 = vpop.xlane.xlu1 %6477 }
0x1c7f   : > { %v6488_v31 = vmul.f32 0.03125, %v6478_v43 }
0x1c80   : > { %v6493_v26 = vsub.f32 %v6473_v22, %v6489_v41 }
0x1c81   : > { %v6492_v35 = vsub.f32 %v6472_v28, %v6488_v31 }
0x1c82   : > { %v6497_v12 = vmul.f32 %v6493_v26, %v6493_v26 }
0x1c83   : > { %v6496_v55 = vmul.f32 %v6492_v35, %v6492_v35 }
0x1c84   : > { %v6503_v44 = vsel %vm193_vm0, %v6497_v12, 0.0 }
0x1c85   : > { %6504 = vadd.xlane.f32.xlu0 %v6503_v44  ;;  %v6500_v23 = vsel %vm193_vm0, %v6496_v55, 0.0 }
0x1c86   : > { %6501 = vadd.xlane.f32.xlu1 %v6500_v23 }
0x1c87   : > { %v6487_v45 = vpop.xlane.xlu0 %6486 }
0x1c88   : > { %v6491_v32 = vmul.f32 0.03125, %v6487_v45  ;;  %v6484_v46 = vpop.xlane.xlu1 %6483 }
0x1c89   : > { %v6490_v20 = vmul.f32 0.03125, %v6484_v46 }
0x1c8a   : > { %v6495_v47 = vsub.f32 %v6475_v14, %v6491_v32 }
0x1c8b   : > { %v6494_v27 = vsub.f32 %v6474_v37, %v6490_v20 }
0x1c8c   : > { %v6499_v2 = vmul.f32 %v6495_v47, %v6495_v47 }
0x1c8d   : > { %v6498_v1 = vmul.f32 %v6494_v27, %v6494_v27 }
0x1c8e   : > { %v6509_v49 = vsel %vm193_vm0, %v6499_v2, 0.0 }
0x1c8f   : > { %6510 = vadd.xlane.f32.xlu0 %v6509_v49  ;;  %v6506_v34 = vsel %vm193_vm0, %v6498_v1, 0.0  ;;  %v6544_v1 = vld [vmem:[%s8990_s2 + $0x140] sm:$0xf] }
0x1c90   : > { %6507 = vadd.xlane.f32.xlu1 %v6506_v34  ;;  %v6634_v49 = vrot.slane %v6544_v1, 3  ;;  %v6600_v48 = vrot.slane %v6544_v1, %v3155_v38 }
0x1c92   : > { %7592 = vpush %v6634_v49  ;;  %v6672_v49 = vsub.s32 %v8059_v25, %v8439_v57 }
0x1cc3   : > { %s7593_s11 = spop %7592 }
0x1d12   : > { %v6505_v53 = vpop.xlane.xlu0 %6504 }
0x1d13   : > { %v6513_v58 = vmul.f32 0.03125, %v6505_v53  ;;  %v6502_v54 = vpop.xlane.xlu1 %6501 }
0x1d14   : > { %v6512_v56 = vmul.f32 0.03125, %v6502_v54 }
0x1d15   : > { %v6517_v15 = vadd.f32 1e-05, %v6513_v58 }
0x1d16   : > { %v6516_v21 = vadd.f32 1e-05, %v6512_v56 }
0x1d17   : > { %7794 = vrsqrt.f32 %v6517_v15 }
0x1d18   : > { %7796 = vrsqrt.f32 %v6516_v21 }
0x1d1c   : > { %v6511_v10 = vpop.xlane.xlu0 %6510 }
0x1d1d   : > { %v6515_v62 = vmul.f32 0.03125, %v6511_v10  ;;  %v6508_v17 = vpop.xlane.xlu1 %6507 }
0x1d1e   : > { %v6514_v18 = vmul.f32 0.03125, %v6508_v17 }
0x1d1f   : > { %v6519_v24 = vadd.f32 1e-05, %v6515_v62 }
0x1d20   : > { %v6518_v63 = vadd.f32 1e-05, %v6514_v18 }
0x1d21   : > { %v7795_v3 = vpop.eup %7794  ;;  %7798 = vrsqrt.f32 %v6519_v24 }
0x1d22   : > { %v7797_v19 = vpop.eup %7796  ;;  %7800 = vrsqrt.f32 %v6518_v63  ;;  %v6525_v50 = vmul.f32 %v7795_v3, %v6493_v26  ;;  %v6608_v3 = vrot.slane %v6544_v1, %v3163_v59 }
0x1d23   : > { %v6524_v5 = vmul.f32 %v7797_v19, %v6492_v35 }
0x1d24   : > { %v6533_v6 = vmul.f32 %v6531_v0, %v6525_v50 }
0x1d25   : > { %v6532_v8 = vmul.f32 %v6531_v0, %v6524_v5 }
0x1d26   : > { %v6541_v39 = vadd.f32 %v6539_v4, %v6533_v6 }
0x1d27   : > { %v6540_v7 = vadd.f32 %v6539_v4, %v6532_v8 }
0x1d28   : > { %v6548_v13 = vsel %vm193_vm0, %v6541_v39, 0.0 }
0x1d29   : > { %6549 = vadd.xlane.f32.xlu0 %v6548_v13  ;;  %v6545_v16 = vsel %vm193_vm0, %v6540_v7, 0.0 }
0x1d2a   : > { %6546 = vadd.xlane.f32.xlu1 %v6545_v16 }
0x1d2b   : > { %v7799_v22 = vpop.eup %7798 }
0x1d2c   : > { %v7801_v28 = vpop.eup %7800  ;;  %v6527_v30 = vmul.f32 %v7799_v22, %v6495_v47 }
0x1d2d   : > { %v6526_v40 = vmul.f32 %v7801_v28, %v6494_v27 }
0x1d2e   : > { %v6535_v42 = vmul.f32 %v6531_v0, %v6527_v30 }
0x1d2f   : > { %v6534_v29 = vmul.f32 %v6531_v0, %v6526_v40 }
0x1d30   : > { %v6543_v33 = vadd.f32 %v6539_v4, %v6535_v42 }
0x1d31   : > { %v6542_v51 = vadd.f32 %v6539_v4, %v6534_v29  ;;  %v6616_v4 = vrot.slane %v6544_v1, %v6237_v36 }
0x1d32   : > { %v6554_v9 = vsel %vm193_vm0, %v6543_v33, 0.0 }
0x1d33   : > { %6555 = vadd.xlane.f32.xlu0 %v6554_v9  ;;  %v6551_v14 = vsel %vm193_vm0, %v6542_v51, 0.0 }
0x1d34   : > { %6552 = vadd.xlane.f32.xlu1 %v6551_v14  ;;  %v6636_v14 = vstv %s7593_s11 }
0x1db6   : > { %v6550_v37 = vpop.xlane.xlu0 %6549 }
0x1db7   : > { %v6558_v60 = vmul.f32 0.03125, %v6550_v37  ;;  %v6547_v52 = vpop.xlane.xlu1 %6546 }
0x1db8   : > { %v6557_v11 = vmul.f32 0.03125, %v6547_v52 }
0x1db9   : > { %v6562_v41 = vsub.f32 %v6541_v39, %v6558_v60 }
0x1dba   : > { %v6561_v43 = vsub.f32 %v6540_v7, %v6557_v11 }
0x1dbb   : > { %v6566_v31 = vmul.f32 %v6562_v41, %v6562_v41 }
0x1dbc   : > { %v6565_v26 = vmul.f32 %v6561_v43, %v6561_v43 }
0x1dbd   : > { %v6572_v35 = vsel %vm193_vm0, %v6566_v31, 0.0 }
0x1dbe   : > { %6573 = vadd.xlane.f32.xlu0 %v6572_v35  ;;  %v6569_v12 = vsel %vm193_vm0, %v6565_v26, 0.0 }
0x1dbf   : > { %6570 = vadd.xlane.f32.xlu1 %v6569_v12 }
0x1dc0   : > { %v6556_v55 = vpop.xlane.xlu0 %6555 }
0x1dc1   : > { %v6560_v44 = vmul.f32 0.03125, %v6556_v55  ;;  %v6553_v23 = vpop.xlane.xlu1 %6552 }
0x1dc2   : > { %v6559_v45 = vmul.f32 0.03125, %v6553_v23 }
0x1dc3   : > { %v6564_v32 = vsub.f32 %v6543_v33, %v6560_v44 }
0x1dc4   : > { %v6563_v46 = vsub.f32 %v6542_v51, %v6559_v45 }
0x1dc5   : > { %v6568_v20 = vmul.f32 %v6564_v32, %v6564_v32 }
0x1dc6   : > { %v6567_v47 = vmul.f32 %v6563_v46, %v6563_v46 }
0x1dc7   : > { %v6578_v27 = vsel %vm193_vm0, %v6568_v20, 0.0 }
0x1dc8   : > { %6579 = vadd.xlane.f32.xlu0 %v6578_v27  ;;  %v6575_v2 = vsel %vm193_vm0, %v6567_v47, 0.0 }
0x1dc9   : > { %6576 = vadd.xlane.f32.xlu1 %v6575_v2 }
0x1e4b   : > { %v6574_v34 = vpop.xlane.xlu0 %6573 }
0x1e4c   : > { %v6582_v53 = vmul.f32 0.03125, %v6574_v34  ;;  %v6571_v58 = vpop.xlane.xlu1 %6570 }
0x1e4d   : > { %v6581_v54 = vmul.f32 0.03125, %v6571_v58 }
0x1e4e   : > { %v6586_v56 = vadd.f32 1e-05, %v6582_v53 }
0x1e4f   : > { %v6585_v15 = vadd.f32 1e-05, %v6581_v54 }
0x1e50   : > { %7802 = vrsqrt.f32 %v6586_v56 }
0x1e51   : > { %7804 = vrsqrt.f32 %v6585_v15 }
0x1e55   : > { %v6580_v21 = vpop.xlane.xlu0 %6579 }
0x1e56   : > { %v6584_v10 = vmul.f32 0.03125, %v6580_v21  ;;  %v6577_v61 = vpop.xlane.xlu1 %6576 }
0x1e57   : > { %v6583_v62 = vmul.f32 0.03125, %v6577_v61 }
0x1e58   : > { %v6588_v17 = vadd.f32 1e-05, %v6584_v10 }
0x1e59   : > { %v6587_v18 = vadd.f32 1e-05, %v6583_v62 }
0x1e5a   : > { %v7803_v24 = vpop.eup %7802  ;;  %7806 = vrsqrt.f32 %v6588_v17 }
0x1e5b   : > { %v7805_v63 = vpop.eup %7804  ;;  %7808 = vrsqrt.f32 %v6587_v18  ;;  %v6594_v0 = vmul.f32 %v7803_v24, %v6562_v41 }
0x1e5c   : > { %v6593_v19 = vmul.f32 %v7805_v63, %v6561_v43 }
0x1e5d   : > { %v6602_v50 = vmul.f32 %v6600_v48, %v6594_v0 }
0x1e5e   : > { %v6601_v5 = vmul.f32 %v6600_v48, %v6593_v19 }
0x1e5f   : > { %v6610_v6 = vadd.f32 %v6608_v3, %v6602_v50 }
0x1e60   : > { %v6609_v8 = vadd.f32 %v6608_v3, %v6601_v5 }
0x1e61   : > { %v6618_v39 = vmul.f32 %v6616_v4, %v6610_v6 }
0x1e62   : > { %v6617_v7 = vmul.f32 %v6616_v4, %v6609_v8 }
0x1e63   : > { %v6624_v38 = vsel %vm193_vm0, %v6618_v39, 0.0 }
0x1e64   : > { %v7807_v13 = vpop.eup %7806  ;;  %6625 = vadd.xlane.f32.xlu0 %v6624_v38  ;;  %v6621_v16 = vsel %vm193_vm0, %v6617_v7, 0.0 }
0x1e65   : > { %v7809_v22 = vpop.eup %7808  ;;  %6622 = vadd.xlane.f32.xlu1 %v6621_v16  ;;  %v6596_v28 = vmul.f32 %v7807_v13, %v6564_v32 }
0x1e66   : > { %v6595_v59 = vmul.f32 %v7809_v22, %v6563_v46 }
0x1e67   : > { %v6604_v30 = vmul.f32 %v6600_v48, %v6596_v28 }
0x1e68   : > { %v6603_v40 = vmul.f32 %v6600_v48, %v6595_v59 }
0x1e69   : > { %v6612_v42 = vadd.f32 %v6608_v3, %v6604_v30 }
0x1e6a   : > { %v6611_v29 = vadd.f32 %v6608_v3, %v6603_v40 }
0x1e6b   : > { %v6620_v36 = vmul.f32 %v6616_v4, %v6612_v42 }
0x1e6c   : > { %v6619_v33 = vmul.f32 %v6616_v4, %v6611_v29 }
0x1e6d   : > { %v6630_v51 = vsel %vm193_vm0, %v6620_v36, 0.0 }
0x1e6e   : > { %6631 = vadd.xlane.f32.xlu0 %v6630_v51  ;;  %v6627_v9 = vsel %vm193_vm0, %v6619_v33, 0.0 }
0x1e6f   : > { %6628 = vadd.xlane.f32.xlu1 %v6627_v9 }
0x1ef1   : > { %v6626_v37 = vpop.xlane.xlu0 %6625 }
0x1ef2   : > { %v6639_v60 = vadd.f32 %v6636_v14, %v6626_v37  ;;  %v6623_v52 = vpop.xlane.xlu1 %6622 }
0x1ef3   : > { %v6638_v11 = vadd.f32 %v6636_v14, %v6623_v52 }
0x1ef4   : > { %v6907_v41 = vmul.f32 -1.442695, %v6639_v60 }
0x1ef5   : > { %v6906_v43 = vmul.f32 -1.442695, %v6638_v11 }
0x1ef6   : > { %7810 = vpow2.f32 %v6907_v41 }
0x1ef7   : > { %7812 = vpow2.f32 %v6906_v43 }
0x1efb   : > { %v6632_v31 = vpop.xlane.xlu0 %6631 }
0x1efc   : > { %v6641_v26 = vadd.f32 %v6636_v14, %v6632_v31  ;;  %v6629_v35 = vpop.xlane.xlu1 %6628 }
0x1efd   : > { %v6640_v12 = vadd.f32 %v6636_v14, %v6629_v35 }
0x1efe   : > { %v6909_v55 = vmul.f32 -1.442695, %v6641_v26 }
0x1eff   : > { %v6908_v44 = vmul.f32 -1.442695, %v6640_v12 }
0x1f00   : > { %7814 = vpow2.f32 %v6909_v55  ;;  %v7811_v23 = vpop.eup %7810 }
0x1f01   : > { %7816 = vpow2.f32 %v6908_v44  ;;  %v7813_v45 = vpop.eup %7812  ;;  %v6655_v32 = vadd.f32 1.0, %v7811_v23 }
0x1f02   : > { %v6654_v46 = vadd.f32 1.0, %v7813_v45 }
0x1f03   : > { %7818 = vrcp.f32 %v6655_v32 }
0x1f04   : > { %7820 = vrcp.f32 %v6654_v46 }
0x1f0a   : > { %v7815_v20 = vpop.eup %7814 }
0x1f0b   : > { %v7817_v47 = vpop.eup %7816  ;;  %v6657_v27 = vadd.f32 1.0, %v7815_v20 }
0x1f0c   : > { %v6656_v2 = vadd.f32 1.0, %v7817_v47 }
0x1f0d   : > { %7822 = vrcp.f32 %v6657_v27  ;;  %v7819_v1 = vpop.eup %7818 }
0x1f0e   : > { %7824 = vrcp.f32 %v6656_v2  ;;  %v7821_v34 = vpop.eup %7820  ;;  %v6677_v58 = vrot.slane %v7819_v1, %v6672_v49 }
0x1f0f   : > { %v6673_v53 = vrot.slane %v7821_v34, %v6672_v49 }
0x1f11   : > { %v6687_v10 = vsel %vm6686_vm7, %v6677_v58, %v6673_v53 }
0x1f17   : > { %v7823_v54 = vpop.eup %7822 }
0x1f18   : > { %v7825_v56 = vpop.eup %7824  ;;  %v6685_v21 = vrot.slane %v7823_v54, %v6672_v49 }
0x1f19   : > { %v6681_v15 = vrot.slane %v7825_v56, %v6672_v49 }
0x1f1b   : > { %v6689_v61 = vsel %vm6688_vm8, %v6681_v15, %v6687_v10 }
0x1f1c   : > { %v6691_v25 = vsel %vm6690_vm9, %v6685_v21, %v6689_v61 }
0x1f1d   : > { %6694 = vst.msk [vmem:[%s164_s9] sm:$0xf] %vm6693_vm10, %v6691_v25 }
0x1f1e   : > { %7844 = shalt.err (!%p7841_p3)
}
0x1f1f   : > { %s7845_s30 = scalar_lea.hbm %s8946_s4, 64  ;;  %s7849_s10 = scalar_lea.hbm %s8991_s3, 128 }
0x1f20   : > { %p7846_p4 = scmp.ne.s32.totalorder %s8946_s4, %s7845_s30  ;;  %p7850_p9 = scmp.lt.u32.totalorder %s8946_s4, %s8991_s3 }
0x1f21   : > { %p7851_p10 = scmp.lt.u32.totalorder %s7849_s10, %s7845_s30  ;;  %p7853_p12 = scmp.lt.u32.totalorder %s7845_s30, %s8946_s4 }
0x1f22   : > { %p7847_p7 = pnand %p7846_p4, %p7971_p5 }
0x1f23   : > { %p7852_p11 = por %p7851_p10, %p7850_p9 }
0x1f24   : > { %p7848_p8 = pneg %p7847_p7 }
0x1f25   : > { %p7854_p13 = por %p7853_p12, %p7852_p11 }
0x1f27   : > { %p7855_p0 = pnand %p7854_p13, %p7848_p8 }
0x1f29   : > { %7858 = shalt.err (!%p7855_p0)
}
0x1f2a   : > { %7594 = dma.vmem_to_hbm [thread:$0]  (%p7971_p5), %s8948_s28, 64, %s8946_s4, %s6696_s16  }
0x1f2b PF: > { %p7600_p1 = scmp.ge.s32.totalorder %s7893_s15, 2  ;;  %s6721_s17 = sand.u32 1, %s7881_s12  }
0x1f2c   : > { %s6722_s19 = scalar_lea.sflag [#allocation3], %s6721_s17 }
0x1f2d   : > { %p7597_p2 = pnand %p7600_p1, %p7975_p6 }
0x1f2f   : > { %7876 = dma.done.wait (!%p7597_p2), %s6722_s19, 64  }
0x1f30   : > { %7878 = vsyncadd (!%p7597_p2), %s6722_s19, 4294967232  ;;  %p13_p3 = scmp.ge.s32.totalorder %s7958_s18, 4   ;;  %s9003_s12 = smov %s7885_s13 }
0x1f31   : > { %s9004_s13 = smov %s7889_s14  ;;  %s9005_s14 = smov %s7969_s21 }
0x1f32   : > { %s9006_s15 = smov %s7958_s18  ;;  %15 = sbr.rel (!%p13_p3) target bundleno = 3 (0x3), region = 67 }
0x1f39   :  { %6727 = vsyncpa [#allocation3], 1 }
0x1f3a   :  { %6729 = vsyncpa [#allocation3 + $0x1], 1 }

</bundles_post_ra>
